<compile_context>
chip_gen: v7x
topology: tpu7x:2x2x1
jax: 0.10.0
libtpu: 0.0.40
codegen_flags: <defaults>
</compile_context>

<pallas_src>
import jax
import jax.numpy as jnp
from jax.experimental import pallas as pl
from jax.experimental.pallas import tpu as pltpu


# ----------------------------------------------------------------------------
# In-kernel helpers
# ----------------------------------------------------------------------------
def _dilate_max(a, step, axis):
    """max(a[i-step], a[i], a[i+step]) along `axis`; out-of-range reads act as -inf.

    Composing this primitive grows the max-window radius: 1 -> 2 -> 4 -> 6.
    """
    n = a.shape[axis]
    if step >= n:
        return a
    fill_shape = list(a.shape)
    fill_shape[axis] = step
    fill = jnp.full(fill_shape, -jnp.inf, a.dtype)
    fwd = jnp.concatenate(                                   # fwd[i] = a[i + step]
        [jax.lax.slice_in_dim(a, step, n, axis=axis), fill], axis=axis)
    bwd = jnp.concatenate(                                   # bwd[i] = a[i - step]
        [fill, jax.lax.slice_in_dim(a, 0, n - step, axis=axis)], axis=axis)
    return jnp.maximum(a, jnp.maximum(fwd, bwd))


def _spp_kernel(x_ref, o_ref):
    """x_ref: (1, H, W, TC)  ->  o_ref: (1, 4, H, W, TC) = [x, max5, max9, max13]."""
    x = x_ref[0]                                  # (H, W, TC), channels on lanes

    # Shared row-direction (H) running maxima: radius 1 -> 2 -> 4 -> 6.
    h1 = _dilate_max(x, 1, 0)
    h2 = _dilate_max(h1, 1, 0)     # radius 2 rows  (5x5 pool)
    h4 = _dilate_max(h2, 2, 0)     # radius 4 rows  (9x9 pool)
    h6 = _dilate_max(h4, 2, 0)     # radius 6 rows  (13x13 pool)

    # Column-direction (W) maxima per pyramid level.
    p5 = _dilate_max(_dilate_max(h2, 1, 1), 1, 1)                        # radius 2
    p9 = _dilate_max(_dilate_max(_dilate_max(h4, 1, 1), 1, 1), 2, 1)     # radius 4
    p13 = _dilate_max(
        _dilate_max(_dilate_max(_dilate_max(h6, 1, 1), 1, 1), 2, 1), 2, 1)  # radius 6

    o_ref[0, 0, :, :, :] = x
    o_ref[0, 1, :, :, :] = p5
    o_ref[0, 2, :, :, :] = p9
    o_ref[0, 3, :, :, :] = p13


# ----------------------------------------------------------------------------
# Wrapper
# ----------------------------------------------------------------------------
def _pick_channel_tile(C, H, W, itemsize):
    """Largest lane-dense channel tile that pipelines well and fits VMEM."""
    if C % 128 != 0:
        return C          # full-extent channel block is exempt from the 128 rule
    budget = 24 * 1024 * 1024         # stay well under the default scoped-VMEM limit
    for cand in (512, 256):
        # per step: 1 input block + 4-wide output block, double buffered -> ~10x
        if C % cand == 0 and C // cand >= 2 and 10 * H * W * cand * itemsize <= budget:
            return cand
    return 128


def spatial_pyramid_pooling(x_nchw):
    """SPP forward. x_nchw: (B, C, H, W) -> (B, 4C, H, W), cat order [x, p5, p9, p13]."""
    B, C, H, W = x_nchw.shape
    x = jnp.transpose(x_nchw, (0, 2, 3, 1))                  # NCHW -> NHWC (lanes = C)

    TC = _pick_channel_tile(C, H, W, x.dtype.itemsize)

    out5d = pl.pallas_call(
        _spp_kernel,
        out_shape=jax.ShapeDtypeStruct((B, 4, H, W, C), x.dtype),
        grid=(B, C // TC),
        in_specs=[pl.BlockSpec((1, H, W, TC), lambda b, c: (b, 0, 0, c))],
        out_specs=pl.BlockSpec((1, 4, H, W, TC), lambda b, c: (b, 0, 0, 0, c)),
        compiler_params=pltpu.CompilerParams(
            dimension_semantics=("parallel", "parallel")),
    )(x)

    # (B, 4, H, W, C) -> (B, 4, C, H, W) -> (B, 4C, H, W): channel index = f*C + c,
    # identical to torch.cat([x, p5, p9, p13], dim=1).
    return jnp.transpose(out5d, (0, 1, 4, 2, 3)).reshape(B, 4 * C, H, W)


# ----------------------------------------------------------------------------
# Demo / self-check
# ----------------------------------------------------------------------------
if __name__ == "__main__":
    key = jax.random.PRNGKey(0)
    B, C, H, W = 2, 256, 16, 16                  # SPP runs on a deep, small feature map
    x = jax.random.normal(key, (B, C, H, W), jnp.float32)

    spp = jax.jit(spatial_pyramid_pooling)
    out = spp(x)
    jax.block_until_ready(out)
    assert out.shape == (B, 4 * C, H, W)

    # Reference: stride-1 max pools with implicit -inf padding, channel concat.
    def ref_pool(v, k):
        pad = k // 2
        return jax.lax.reduce_window(
            v, -jnp.inf, jax.lax.max,
            (1, 1, k, k), (1, 1, 1, 1),
            ((0, 0), (0, 0), (pad, pad), (pad, pad)))

    ref = jnp.concatenate(
        [x, ref_pool(x, 5), ref_pool(x, 9), ref_pool(x, 13)], axis=1)
    assert bool(jnp.allclose(out, ref)), "Pallas SPP does not match reference"

    print("KERNEL_OK")
</pallas_src>

<mosaic_0001>
module attributes {stable_mosaic.version = 11 : i64} {
  func.func @_spp_kernel(%arg0: i32, %arg1: i32, %arg2: memref<1x16x16x128xf32, #tpu.memory_space<vmem>>, %arg3: memref<1x4x16x16x128xf32, #tpu.memory_space<vmem>>) attributes {dimension_semantics = [#tpu.dimension_semantics<parallel>, #tpu.dimension_semantics<parallel>], iteration_bounds = array<i64: 2, 2>, scalar_prefetch = 0 : i64, scratch_operands = 0 : i64, tpu.core_type = #tpu.core_type<tc>, window_params = [{transform_indices = @transform_0, window_bounds = array<i64: 1, 16, 16, 128>}, {transform_indices = @transform_1, window_bounds = array<i64: 1, 4, 16, 16, 128>}]} {
    %c0 = arith.constant 0 : index
    %c0_0 = arith.constant 0 : index
    %c0_1 = arith.constant 0 : index
    %c0_2 = arith.constant 0 : index
    %0 = vector.load %arg2[%c0, %c0_0, %c0_1, %c0_2] : memref<1x16x16x128xf32, #tpu.memory_space<vmem>>, vector<1x16x16x128xf32>
    %1 = vector.shape_cast %0 : vector<1x16x16x128xf32> to vector<16x16x128xf32>
    %cst = arith.constant 0xFF800000 : f32
    %2 = vector.broadcast %cst : f32 to vector<1x16x128xf32>
    %3 = vector.extract_strided_slice %1 {offsets = [1, 0, 0], sizes = [15, 16, 128], strides = [1, 1, 1]} : vector<16x16x128xf32> to vector<15x16x128xf32>
    %4 = tpu.concatenate %3, %2 in 0 : vector<15x16x128xf32>, vector<1x16x128xf32> -> vector<16x16x128xf32>
    %5 = vector.extract_strided_slice %1 {offsets = [0, 0, 0], sizes = [15, 16, 128], strides = [1, 1, 1]} : vector<16x16x128xf32> to vector<15x16x128xf32>
    %6 = tpu.concatenate %2, %5 in 0 : vector<1x16x128xf32>, vector<15x16x128xf32> -> vector<16x16x128xf32>
    %7 = arith.maximumf %4, %6 : vector<16x16x128xf32>
    %8 = arith.maximumf %1, %7 : vector<16x16x128xf32>
    %cst_3 = arith.constant 0xFF800000 : f32
    %9 = vector.broadcast %cst_3 : f32 to vector<1x16x128xf32>
    %10 = vector.extract_strided_slice %8 {offsets = [1, 0, 0], sizes = [15, 16, 128], strides = [1, 1, 1]} : vector<16x16x128xf32> to vector<15x16x128xf32>
    %11 = tpu.concatenate %10, %9 in 0 : vector<15x16x128xf32>, vector<1x16x128xf32> -> vector<16x16x128xf32>
    %12 = vector.extract_strided_slice %8 {offsets = [0, 0, 0], sizes = [15, 16, 128], strides = [1, 1, 1]} : vector<16x16x128xf32> to vector<15x16x128xf32>
    %13 = tpu.concatenate %9, %12 in 0 : vector<1x16x128xf32>, vector<15x16x128xf32> -> vector<16x16x128xf32>
    %14 = arith.maximumf %11, %13 : vector<16x16x128xf32>
    %15 = arith.maximumf %8, %14 : vector<16x16x128xf32>
    %cst_4 = arith.constant 0xFF800000 : f32
    %16 = vector.broadcast %cst_4 : f32 to vector<2x16x128xf32>
    %17 = vector.extract_strided_slice %15 {offsets = [2, 0, 0], sizes = [14, 16, 128], strides = [1, 1, 1]} : vector<16x16x128xf32> to vector<14x16x128xf32>
    %18 = tpu.concatenate %17, %16 in 0 : vector<14x16x128xf32>, vector<2x16x128xf32> -> vector<16x16x128xf32>
    %19 = vector.extract_strided_slice %15 {offsets = [0, 0, 0], sizes = [14, 16, 128], strides = [1, 1, 1]} : vector<16x16x128xf32> to vector<14x16x128xf32>
    %20 = tpu.concatenate %16, %19 in 0 : vector<2x16x128xf32>, vector<14x16x128xf32> -> vector<16x16x128xf32>
    %21 = arith.maximumf %18, %20 : vector<16x16x128xf32>
    %22 = arith.maximumf %15, %21 : vector<16x16x128xf32>
    %cst_5 = arith.constant 0xFF800000 : f32
    %23 = vector.broadcast %cst_5 : f32 to vector<2x16x128xf32>
    %24 = vector.extract_strided_slice %22 {offsets = [2, 0, 0], sizes = [14, 16, 128], strides = [1, 1, 1]} : vector<16x16x128xf32> to vector<14x16x128xf32>
    %25 = tpu.concatenate %24, %23 in 0 : vector<14x16x128xf32>, vector<2x16x128xf32> -> vector<16x16x128xf32>
    %26 = vector.extract_strided_slice %22 {offsets = [0, 0, 0], sizes = [14, 16, 128], strides = [1, 1, 1]} : vector<16x16x128xf32> to vector<14x16x128xf32>
    %27 = tpu.concatenate %23, %26 in 0 : vector<2x16x128xf32>, vector<14x16x128xf32> -> vector<16x16x128xf32>
    %28 = arith.maximumf %25, %27 : vector<16x16x128xf32>
    %29 = arith.maximumf %22, %28 : vector<16x16x128xf32>
    %cst_6 = arith.constant 0xFF800000 : f32
    %30 = vector.broadcast %cst_6 : f32 to vector<16x1x128xf32>
    %31 = vector.extract_strided_slice %15 {offsets = [0, 1, 0], sizes = [16, 15, 128], strides = [1, 1, 1]} : vector<16x16x128xf32> to vector<16x15x128xf32>
    %32 = tpu.concatenate %31, %30 in 1 : vector<16x15x128xf32>, vector<16x1x128xf32> -> vector<16x16x128xf32>
    %33 = vector.extract_strided_slice %15 {offsets = [0, 0, 0], sizes = [16, 15, 128], strides = [1, 1, 1]} : vector<16x16x128xf32> to vector<16x15x128xf32>
    %34 = tpu.concatenate %30, %33 in 1 : vector<16x1x128xf32>, vector<16x15x128xf32> -> vector<16x16x128xf32>
    %35 = arith.maximumf %32, %34 : vector<16x16x128xf32>
    %36 = arith.maximumf %15, %35 : vector<16x16x128xf32>
    %cst_7 = arith.constant 0xFF800000 : f32
    %37 = vector.broadcast %cst_7 : f32 to vector<16x1x128xf32>
    %38 = vector.extract_strided_slice %36 {offsets = [0, 1, 0], sizes = [16, 15, 128], strides = [1, 1, 1]} : vector<16x16x128xf32> to vector<16x15x128xf32>
    %39 = tpu.concatenate %38, %37 in 1 : vector<16x15x128xf32>, vector<16x1x128xf32> -> vector<16x16x128xf32>
    %40 = vector.extract_strided_slice %36 {offsets = [0, 0, 0], sizes = [16, 15, 128], strides = [1, 1, 1]} : vector<16x16x128xf32> to vector<16x15x128xf32>
    %41 = tpu.concatenate %37, %40 in 1 : vector<16x1x128xf32>, vector<16x15x128xf32> -> vector<16x16x128xf32>
    %42 = arith.maximumf %39, %41 : vector<16x16x128xf32>
    %43 = arith.maximumf %36, %42 : vector<16x16x128xf32>
    %cst_8 = arith.constant 0xFF800000 : f32
    %44 = vector.broadcast %cst_8 : f32 to vector<16x1x128xf32>
    %45 = vector.extract_strided_slice %22 {offsets = [0, 1, 0], sizes = [16, 15, 128], strides = [1, 1, 1]} : vector<16x16x128xf32> to vector<16x15x128xf32>
    %46 = tpu.concatenate %45, %44 in 1 : vector<16x15x128xf32>, vector<16x1x128xf32> -> vector<16x16x128xf32>
    %47 = vector.extract_strided_slice %22 {offsets = [0, 0, 0], sizes = [16, 15, 128], strides = [1, 1, 1]} : vector<16x16x128xf32> to vector<16x15x128xf32>
    %48 = tpu.concatenate %44, %47 in 1 : vector<16x1x128xf32>, vector<16x15x128xf32> -> vector<16x16x128xf32>
    %49 = arith.maximumf %46, %48 : vector<16x16x128xf32>
    %50 = arith.maximumf %22, %49 : vector<16x16x128xf32>
    %cst_9 = arith.constant 0xFF800000 : f32
    %51 = vector.broadcast %cst_9 : f32 to vector<16x1x128xf32>
    %52 = vector.extract_strided_slice %50 {offsets = [0, 1, 0], sizes = [16, 15, 128], strides = [1, 1, 1]} : vector<16x16x128xf32> to vector<16x15x128xf32>
    %53 = tpu.concatenate %52, %51 in 1 : vector<16x15x128xf32>, vector<16x1x128xf32> -> vector<16x16x128xf32>
    %54 = vector.extract_strided_slice %50 {offsets = [0, 0, 0], sizes = [16, 15, 128], strides = [1, 1, 1]} : vector<16x16x128xf32> to vector<16x15x128xf32>
    %55 = tpu.concatenate %51, %54 in 1 : vector<16x1x128xf32>, vector<16x15x128xf32> -> vector<16x16x128xf32>
    %56 = arith.maximumf %53, %55 : vector<16x16x128xf32>
    %57 = arith.maximumf %50, %56 : vector<16x16x128xf32>
    %cst_10 = arith.constant 0xFF800000 : f32
    %58 = vector.broadcast %cst_10 : f32 to vector<16x2x128xf32>
    %59 = vector.extract_strided_slice %57 {offsets = [0, 2, 0], sizes = [16, 14, 128], strides = [1, 1, 1]} : vector<16x16x128xf32> to vector<16x14x128xf32>
    %60 = tpu.concatenate %59, %58 in 1 : vector<16x14x128xf32>, vector<16x2x128xf32> -> vector<16x16x128xf32>
    %61 = vector.extract_strided_slice %57 {offsets = [0, 0, 0], sizes = [16, 14, 128], strides = [1, 1, 1]} : vector<16x16x128xf32> to vector<16x14x128xf32>
    %62 = tpu.concatenate %58, %61 in 1 : vector<16x2x128xf32>, vector<16x14x128xf32> -> vector<16x16x128xf32>
    %63 = arith.maximumf %60, %62 : vector<16x16x128xf32>
    %64 = arith.maximumf %57, %63 : vector<16x16x128xf32>
    %cst_11 = arith.constant 0xFF800000 : f32
    %65 = vector.broadcast %cst_11 : f32 to vector<16x1x128xf32>
    %66 = vector.extract_strided_slice %29 {offsets = [0, 1, 0], sizes = [16, 15, 128], strides = [1, 1, 1]} : vector<16x16x128xf32> to vector<16x15x128xf32>
    %67 = tpu.concatenate %66, %65 in 1 : vector<16x15x128xf32>, vector<16x1x128xf32> -> vector<16x16x128xf32>
    %68 = vector.extract_strided_slice %29 {offsets = [0, 0, 0], sizes = [16, 15, 128], strides = [1, 1, 1]} : vector<16x16x128xf32> to vector<16x15x128xf32>
    %69 = tpu.concatenate %65, %68 in 1 : vector<16x1x128xf32>, vector<16x15x128xf32> -> vector<16x16x128xf32>
    %70 = arith.maximumf %67, %69 : vector<16x16x128xf32>
    %71 = arith.maximumf %29, %70 : vector<16x16x128xf32>
    %cst_12 = arith.constant 0xFF800000 : f32
    %72 = vector.broadcast %cst_12 : f32 to vector<16x1x128xf32>
    %73 = vector.extract_strided_slice %71 {offsets = [0, 1, 0], sizes = [16, 15, 128], strides = [1, 1, 1]} : vector<16x16x128xf32> to vector<16x15x128xf32>
    %74 = tpu.concatenate %73, %72 in 1 : vector<16x15x128xf32>, vector<16x1x128xf32> -> vector<16x16x128xf32>
    %75 = vector.extract_strided_slice %71 {offsets = [0, 0, 0], sizes = [16, 15, 128], strides = [1, 1, 1]} : vector<16x16x128xf32> to vector<16x15x128xf32>
    %76 = tpu.concatenate %72, %75 in 1 : vector<16x1x128xf32>, vector<16x15x128xf32> -> vector<16x16x128xf32>
    %77 = arith.maximumf %74, %76 : vector<16x16x128xf32>
    %78 = arith.maximumf %71, %77 : vector<16x16x128xf32>
    %cst_13 = arith.constant 0xFF800000 : f32
    %79 = vector.broadcast %cst_13 : f32 to vector<16x2x128xf32>
    %80 = vector.extract_strided_slice %78 {offsets = [0, 2, 0], sizes = [16, 14, 128], strides = [1, 1, 1]} : vector<16x16x128xf32> to vector<16x14x128xf32>
    %81 = tpu.concatenate %80, %79 in 1 : vector<16x14x128xf32>, vector<16x2x128xf32> -> vector<16x16x128xf32>
    %82 = vector.extract_strided_slice %78 {offsets = [0, 0, 0], sizes = [16, 14, 128], strides = [1, 1, 1]} : vector<16x16x128xf32> to vector<16x14x128xf32>
    %83 = tpu.concatenate %79, %82 in 1 : vector<16x2x128xf32>, vector<16x14x128xf32> -> vector<16x16x128xf32>
    %84 = arith.maximumf %81, %83 : vector<16x16x128xf32>
    %85 = arith.maximumf %78, %84 : vector<16x16x128xf32>
    %cst_14 = arith.constant 0xFF800000 : f32
    %86 = vector.broadcast %cst_14 : f32 to vector<16x2x128xf32>
    %87 = vector.extract_strided_slice %85 {offsets = [0, 2, 0], sizes = [16, 14, 128], strides = [1, 1, 1]} : vector<16x16x128xf32> to vector<16x14x128xf32>
    %88 = tpu.concatenate %87, %86 in 1 : vector<16x14x128xf32>, vector<16x2x128xf32> -> vector<16x16x128xf32>
    %89 = vector.extract_strided_slice %85 {offsets = [0, 0, 0], sizes = [16, 14, 128], strides = [1, 1, 1]} : vector<16x16x128xf32> to vector<16x14x128xf32>
    %90 = tpu.concatenate %86, %89 in 1 : vector<16x2x128xf32>, vector<16x14x128xf32> -> vector<16x16x128xf32>
    %91 = arith.maximumf %88, %90 : vector<16x16x128xf32>
    %92 = arith.maximumf %85, %91 : vector<16x16x128xf32>
    %c0_15 = arith.constant 0 : index
    %c0_16 = arith.constant 0 : index
    %c0_17 = arith.constant 0 : index
    %c0_18 = arith.constant 0 : index
    %c0_19 = arith.constant 0 : index
    %93 = vector.load %arg3[%c0_15, %c0_16, %c0_17, %c0_18, %c0_19] : memref<1x4x16x16x128xf32, #tpu.memory_space<vmem>>, vector<1x1x16x16x128xf32>
    %94 = vector.shape_cast %93 : vector<1x1x16x16x128xf32> to vector<16x16x128xf32>
    %95 = vector.shape_cast %1 : vector<16x16x128xf32> to vector<1x1x16x16x128xf32>
    tpu.vector_store %arg3[%c0_15, %c0_16, %c0_17, %c0_18, %c0_19], %95 {strides = array<i32>} : memref<1x4x16x16x128xf32, #tpu.memory_space<vmem>>, vector<1x1x16x16x128xf32>,
    %c0_20 = arith.constant 0 : index
    %c1 = arith.constant 1 : index
    %c0_21 = arith.constant 0 : index
    %c0_22 = arith.constant 0 : index
    %c0_23 = arith.constant 0 : index
    %96 = vector.load %arg3[%c0_20, %c1, %c0_21, %c0_22, %c0_23] : memref<1x4x16x16x128xf32, #tpu.memory_space<vmem>>, vector<1x1x16x16x128xf32>
    %97 = vector.shape_cast %96 : vector<1x1x16x16x128xf32> to vector<16x16x128xf32>
    %98 = vector.shape_cast %43 : vector<16x16x128xf32> to vector<1x1x16x16x128xf32>
    tpu.vector_store %arg3[%c0_20, %c1, %c0_21, %c0_22, %c0_23], %98 {strides = array<i32>} : memref<1x4x16x16x128xf32, #tpu.memory_space<vmem>>, vector<1x1x16x16x128xf32>,
    %c0_24 = arith.constant 0 : index
    %c2 = arith.constant 2 : index
    %c0_25 = arith.constant 0 : index
    %c0_26 = arith.constant 0 : index
    %c0_27 = arith.constant 0 : index
    %99 = vector.load %arg3[%c0_24, %c2, %c0_25, %c0_26, %c0_27] : memref<1x4x16x16x128xf32, #tpu.memory_space<vmem>>, vector<1x1x16x16x128xf32>
    %100 = vector.shape_cast %99 : vector<1x1x16x16x128xf32> to vector<16x16x128xf32>
    %101 = vector.shape_cast %64 : vector<16x16x128xf32> to vector<1x1x16x16x128xf32>
    tpu.vector_store %arg3[%c0_24, %c2, %c0_25, %c0_26, %c0_27], %101 {strides = array<i32>} : memref<1x4x16x16x128xf32, #tpu.memory_space<vmem>>, vector<1x1x16x16x128xf32>,
    %c0_28 = arith.constant 0 : index
    %c3 = arith.constant 3 : index
    %c0_29 = arith.constant 0 : index
    %c0_30 = arith.constant 0 : index
    %c0_31 = arith.constant 0 : index
    %102 = vector.load %arg3[%c0_28, %c3, %c0_29, %c0_30, %c0_31] : memref<1x4x16x16x128xf32, #tpu.memory_space<vmem>>, vector<1x1x16x16x128xf32>
    %103 = vector.shape_cast %102 : vector<1x1x16x16x128xf32> to vector<16x16x128xf32>
    %104 = vector.shape_cast %92 : vector<16x16x128xf32> to vector<1x1x16x16x128xf32>
    tpu.vector_store %arg3[%c0_28, %c3, %c0_29, %c0_30, %c0_31], %104 {strides = array<i32>} : memref<1x4x16x16x128xf32, #tpu.memory_space<vmem>>, vector<1x1x16x16x128xf32>,
    return
  }
  func.func @transform_0(%arg0: i32, %arg1: i32) -> (i32, i32, i32, i32) {
    %c0_i32 = arith.constant 0 : i32
    %c0_i32_0 = arith.constant 0 : i32
    %c0_i32_1 = arith.constant 0 : i32
    return %arg0, %c0_i32, %c0_i32_0, %arg1 : i32, i32, i32, i32
  }
  func.func @transform_1(%arg0: i32, %arg1: i32) -> (i32, i32, i32, i32, i32) {
    %c0_i32 = arith.constant 0 : i32
    %c0_i32_0 = arith.constant 0 : i32
    %c0_i32_1 = arith.constant 0 : i32
    %c0_i32_2 = arith.constant 0 : i32
    return %arg0, %c0_i32, %c0_i32_0, %c0_i32_1, %arg1 : i32, i32, i32, i32, i32
  }
}

</mosaic_0001>

<bundles_post_ra>
// kernel: spatial_pyramid_pooling.1
= control target key start
LH: loop header
LB: loop body
LE: loop exit
PB: predicated region body
PF: predicated region fallthrough
CT: control target
= control target key end

     0   :  { %6 = vsyncpa [#allocation3], 0  ;;  %s5941_s0 = inlined_call_operand.hbm [shape: f32[2,16,16,256], index: 0, kind: input, shape index: {}]   ;;  %s5942_s1 = inlined_call_operand.vmem [shape: f32[2,4,16,16,256], index: 1, kind: output, shape index: {}]  }
   0x1   :  { %8 = vsyncpa [#allocation3 + $0x1], 0  ;;  %s4064_s6 = smov 0   ;;  %s4066_s7 = smov 0  }
   0x2   :  { %s4068_s8 = smov 0   ;;  %s4070_s9 = smov 0  }
   0x3   :  { %s4072_s10 = smov 0   ;;  %s4074_s11 = smov 0  }
   0x4   :  { %s4076_s12 = smov 0   ;;  %s4078_s13 = smov 0  }
   0x5 LB: > { %s3767_s14 = sadd.s32 4294967295, %s4048_s13   ;;  %s23_s15 = sadd.s32 1, %s4040_s11  ;;  %s4048_s13 = sphi %s4078_s13, %s14_s13   ;;  %s4044_s12 = sphi %s4076_s12, %s5992_s12   ;;  %s4040_s11 = sphi %s4074_s11, %s5991_s11   ;;  %s4036_s10 = sphi %s4072_s10, %s5990_s10   ;;  %s4032_s9 = sphi %s4070_s9, %s5989_s9   ;;  %s4028_s8 = sphi %s4068_s8, %s5988_s8   ;;  %s4024_s7 = sphi %s4066_s7, %s5987_s7   ;;  %s4020_s6 = sphi %s4064_s6, %s5986_s6  }
   0x6   : > { %p24_p0 = scmp.ge.s32.totalorder %s23_s15, 2  ;;  %s26_s16 = sadd.s32 1, %s4044_s12 }
   0x7   : > { %s35_s17 = sadd.s32 1, %s4028_s8  ;;  %p42_p1 = scmp.ne.s32.totalorder %s4028_s8, %s4024_s7 }
   0x8   : > { %s5994_s15 = smov (%p24_p0, %s23_s15), 0  ;;  %s5996_s16 = smov (!%p24_p0, %s26_s16), %s4044_s12 }
   0x9   : > { %s31_s18 = ssub.s32 %s4040_s11, %s5994_s15  ;;  %p43_p2 = scmp.eq.s32.totalorder %s4048_s13, 0 }
   0xa   : > { %p28_p3 = scmp.ge.s32.totalorder %s5996_s16, 2  ;;  %p48_p4 = scmp.ne.s32.totalorder %s4024_s7, %s4020_s6 }
   0xb   : > { %p4118_p5 = por %p43_p2, %p42_p1  ;;  %p49_p6 = scmp.eq.s32.totalorder %s3767_s14, 0 }
   0xc   : > { %s5998_s16 = smov (%p28_p3, %s5996_s16), 0  ;;  %p74_p8 = scmp.eq.s32.totalorder %s3767_s14, 3 }
   0xd   : > { %p4124_p7 = por %p49_p6, %p48_p4  ;;  %s30_s21 = ssub.s32 %s4044_s12, %s5998_s16 }
   0xe   : > { %s32_s22 = sor.u32 %s31_s18, %s30_s21  ;;  %p4133_p9 = por %p74_p8, %p42_p1 }
   0xf   : > { %p33_p10 = scmp.eq.s32.totalorder %s32_s22, 0  ;;  %p3884_p11 = scmp.lt.s32.totalorder %s4048_s13, 4 }
  0x10   : > { %s5956_s23 = scalar_select %p4133_p9, 1, 0 }
  0x11   : > { %s100_s24 = sand.u32 1, %s4028_s8   ;;  %s3772_s25 = sshll.u32 %s4044_s12, 6 }
  0x12   : > { %s4141_s26 = scalar_select %p33_p10, %s4028_s8, %s35_s17  }
  0x13   : > { %s3771_s27 = sshll.u32 %s100_s24, 8  ;;  %s109_s28 = sadd.s32 %s4040_s11, %s3772_s25 }
  0x14   : > { %s3773_s29 = sshll.u32 %s109_s28, 7  ;;  %s104_s30 = scalar_lea.vmem [#allocation2], %s3771_s27 }
  0x15   : > { %s112_s2 = sshll.u32 %s104_s30, 4  ;;  %s4147_s5 = scalar_lea.hbm %s5941_s0, %s3773_s29  ;;  %s4149_s2 = int_to_ptr.vmem [resolvable:$true] %s112_s2 }
  0x16   : > { %p4153_p12 = pnand %p3884_p11, %p4118_p5  ;;  %s4158_s14 = scalar_lea.sflag [#allocation3], %s100_s24 }
  0x17   : > { %s3952_s17 = scalar_lea.hbm %s4147_s5, 4096  ;;  %s3957_s19 = scalar_lea.hbm %s5941_s0, 16384 }
  0x18   : > { %p3953_p0 = scmp.ne.s32.totalorder %s4147_s5, %s3952_s17  ;;  %p3954_p1 = pneg %p4153_p12 }
  0x19   : > { %p3958_p4 = scmp.lt.u32.totalorder %s4147_s5, %s5941_s0  ;;  %p3959_p5 = scmp.lt.u32.totalorder %s3957_s19, %s3952_s17 }
  0x1a   : > { %p3955_p2 = pnand %p3954_p1, %p3953_p0  ;;  %p3961_p8 = scmp.lt.u32.totalorder %s3952_s17, %s4147_s5 }
  0x1b   : > { %p3960_p6 = por %p3959_p5, %p3958_p4 }
  0x1c   : > { %p3956_p3 = pneg %p3955_p2 }
  0x1d   : > { %p3962_p10 = por %p3961_p8, %p3960_p6 }
  0x1f   : > { %p3963_p11 = pnand %p3962_p10, %p3956_p3 }
  0x21   : > { %3966 = shalt.err (!%p3963_p11)
}
  0x22   : > { %s3967_s24 = scalar_lea.vmem %s4149_s2, 4096  ;;  %s4050_s27 = smov [#allocation2]  }
  0x23   : > { %p3968_p0 = scmp.ne.s32.totalorder %s4149_s2, %s3967_s24  ;;  %s3972_s28 = sshll.u32 %s4050_s27, 4  ;;  %s3973_s28 = int_to_ptr.vmem [resolvable:$false] %s3972_s28 }
  0x24   : > { %s3974_s29 = scalar_lea.vmem %s3973_s28, 8192  ;;  %p3975_p9 = scmp.lt.s32.totalorder %s4149_s2, %s3973_s28 }
  0x25   : > { %p3970_p2 = pnand %p3968_p0, %p3954_p1  ;;  %p3976_p4 = scmp.lt.s32.totalorder %s3974_s29, %s3967_s24 }
  0x27   : > { %p3971_p13 = pneg %p3970_p2  ;;  %p3977_p5 = por %p3976_p4, %p3975_p9 }
  0x29   : > { %p3978_p6 = pnand %p3977_p5, %p3971_p13 }
  0x2b   : > { %3981 = shalt.err (!%p3978_p6)
}
  0x2c   : > { %s4051_s30 = smov 256   ;;  %s4052_s3 = smov 128  }
  0x2d   : > { %s4053_s4 = smov 8   ;;  %p120_p1 = scmp.lt.s32.totalorder %s4048_s13, 5 }
  0x2e   : > { %3883 = dma.hbm_to_vmem [thread:$0]  (!%p4153_p12), %s4147_s5, 4096, %s4149_s2, %s4158_s14, %s4051_s30, %s4052_s3, %s4053_s4  }
  0x2f   : > { %p5958_p3 = scmp.ge.s32.totalorder %s4048_s13, 1 }
  0x31   : > { %p121_p8 = pnand %p5958_p3, %p120_p1 }
  0x33   : > { %124 = sbr.rel (%p121_p8) target bundleno = 614 (0x266), region = 24 }
  0x3a   : > { %s126_s17 = sand.u32 1, %s4024_s7  }
  0x3b   : > { %s3775_s18 = sshll.u32 %s126_s17, 8  ;;  %s127_s21 = scalar_lea.sflag [#allocation3], %s126_s17 }
  0x3c   : > { %s4190_s19 = scalar_lea.vmem [#allocation2], %s3775_s18 }
  0x3d   : > { %4015 = dma.done.wait (%p4124_p7), %s127_s21, 4096  }
  0x3e   : > { %4017 = vsyncadd (%p4124_p7), %s127_s21, 4294963200  ;;  %s3776_s2 = sshll.u32 %s126_s17, 10  ;;  %v148_v0 = vld [vmem:[%s4190_s19] sm:$0xff]  ;;  %v149_v1 = vld [vmem:[%s4190_s19 + $0x8] sm:$0xff]  ;;  %vm444_vm0 = vcmask 1046528   ;;  %vm541_vm1 = vcmask 1040384  }
  0x3f   : > { %v150_v2 = vld [vmem:[%s4190_s19 + $0x10] sm:$0xff]  ;;  %s4199_s5 = scalar_lea.vmem [#allocation4], %s3776_s2  ;;  %v151_v3 = vld [vmem:[%s4190_s19 + $0x18] sm:$0xff]  ;;  %v152_v4 = vld [vmem:[%s4190_s19 + $0x20] sm:$0xff]  ;;  %vm1598_vm2 = vcmask 1045504   ;;  %vm1695_vm3 = vcmask 1041408  }
  0x40   : > { %3008 = vst [vmem:[%s4199_s5] sm:$0xff] %v148_v0  ;;  %3009 = vst [vmem:[%s4199_s5 + $0x8] sm:$0xff] %v149_v1  ;;  %v153_v5 = vld [vmem:[%s4190_s19 + $0x28] sm:$0xff]  ;;  %v4207_v6 = vmax.f32 %v148_v0, %v150_v2  ;;  %v180_v7 = vmax.f32 %v152_v4, %v148_v0  ;;  %v154_v9 = vld [vmem:[%s4190_s19 + $0x30] sm:$0xff]  ;;  %v209_v12 = vmax.f32 %v149_v1, %v151_v3  ;;  %p5985_p7 = scmp.ne.s32.totalorder %s5956_s23, 0 }
  0x41   : > { %3010 = vst [vmem:[%s4199_s5 + $0x10] sm:$0xff] %v150_v2  ;;  %3011 = vst [vmem:[%s4199_s5 + $0x18] sm:$0xff] %v151_v3  ;;  %v181_v8 = vmax.f32 %v153_v5, %v149_v1  ;;  %v155_v10 = vld [vmem:[%s4190_s19 + $0x38] sm:$0xff]  ;;  %v4215_v11 = vld [vmem:[%s4190_s19 + $0x40] sm:$0xff]  ;;  %v182_v13 = vmax.f32 %v154_v9, %v150_v2  ;;  %s3874_s20 = sshll.u32 (%p5985_p7), %s4036_s10, 8 }
  0x42   : > { %3012 = vst [vmem:[%s4199_s5 + $0x20] sm:$0xff] %v152_v4  ;;  %3013 = vst [vmem:[%s4199_s5 + $0x28] sm:$0xff] %v153_v5  ;;  %v183_v14 = vmax.f32 %v155_v10, %v151_v3  ;;  %v184_v15 = vmax.f32 %v4215_v11, %v152_v4  ;;  %v4223_v16 = vld [vmem:[%s4190_s19 + $0x48] sm:$0xff]  ;;  %v4226_v17 = vld [vmem:[%s4190_s19 + $0x50] sm:$0xff]  ;;  %v210_v19 = vmax.f32 %v150_v2, %v180_v7  ;;  %s3147_s23 = sadd.s32 (%p5985_p7), %s4032_s9, %s3874_s20 }
  0x43   : > { %3014 = vst [vmem:[%s4199_s5 + $0x30] sm:$0xff] %v154_v9  ;;  %3015 = vst [vmem:[%s4199_s5 + $0x38] sm:$0xff] %v155_v10  ;;  %v4229_v18 = vld [vmem:[%s4190_s19 + $0x58] sm:$0xff]  ;;  %v4231_v20 = vmax.f32 %v151_v3, %v181_v8  ;;  %v185_v21 = vmax.f32 %v4223_v16, %v153_v5  ;;  %v186_v22 = vmax.f32 %v4226_v17, %v154_v9  ;;  %v4242_v23 = vld [vmem:[%s4190_s19 + $0x60] sm:$0xff]  ;;  %s3875_s6 = sshll.u32 (%p5985_p7), %s3147_s23, 3 }
  0x44   : > { %3016 = vst [vmem:[%s4199_s5 + $0x40] sm:$0xff] %v4215_v11  ;;  %3017 = vst [vmem:[%s4199_s5 + $0x48] sm:$0xff] %v4223_v16  ;;  %v4245_v24 = vld [vmem:[%s4190_s19 + $0x68] sm:$0xff]  ;;  %v4248_v25 = vld [vmem:[%s4190_s19 + $0x70] sm:$0xff]  ;;  %v4250_v26 = vmax.f32 %v152_v4, %v182_v13  ;;  %v4252_v27 = vmax.f32 %v153_v5, %v183_v14  ;;  %v4254_v28 = vmax.f32 %v154_v9, %v184_v15  ;;  %s5668_s25 = scalar_lea.vmem (%p5985_p7), %s5942_s1, %s3875_s6 }
  0x45   : > { %3018 = vst [vmem:[%s4199_s5 + $0x50] sm:$0xff] %v4226_v17  ;;  %3019 = vst [vmem:[%s4199_s5 + $0x58] sm:$0xff] %v4229_v18  ;;  %v187_v29 = vmax.f32 %v4229_v18, %v155_v10  ;;  %v4264_v30 = vld [vmem:[%s4190_s19 + $0x78] sm:$0xff]  ;;  %v4267_v31 = vld [vmem:[%s4190_s19 + $0x80] sm:$0xff]  ;;  %v4272_v33 = vmax.f32 %v155_v10, %v185_v21  ;;  %v4275_v34 = vmax.f32 %v4215_v11, %v186_v22 }
  0x46   : > { %3020 = vst [vmem:[%s4199_s5 + $0x60] sm:$0xff] %v4242_v23  ;;  %3021 = vst [vmem:[%s4199_s5 + $0x68] sm:$0xff] %v4245_v24  ;;  %v4270_v32 = vld [vmem:[%s4190_s19 + $0x88] sm:$0xff]  ;;  %v4284_v35 = vld [vmem:[%s4190_s19 + $0x90] sm:$0xff]  ;;  %v240_v38 = vmax.f32 %v4250_v26, %v4207_v6  ;;  %v241_v39 = vmax.f32 %v4252_v27, %v209_v12  ;;  %v242_v40 = vmax.f32 %v4254_v28, %v210_v19 }
  0x47   : > { %3022 = vst [vmem:[%s4199_s5 + $0x70] sm:$0xff] %v4248_v25  ;;  %3023 = vst [vmem:[%s4199_s5 + $0x78] sm:$0xff] %v4264_v30  ;;  %v4287_v36 = vld [vmem:[%s4190_s19 + $0x98] sm:$0xff]  ;;  %v4290_v37 = vld [vmem:[%s4190_s19 + $0xa0] sm:$0xff]  ;;  %v4297_v41 = vmax.f32 %v4223_v16, %v187_v29  ;;  %v4315_v45 = vmax.f32 %v4207_v6, %v210_v19  ;;  %v243_v46 = vmax.f32 %v4272_v33, %v4231_v20 }
  0x48   : > { %3024 = vst [vmem:[%s4199_s5 + $0x80] sm:$0xff] %v4267_v31  ;;  %3025 = vst [vmem:[%s4199_s5 + $0x88] sm:$0xff] %v4270_v32  ;;  %v4306_v42 = vld [vmem:[%s4190_s19 + $0xa8] sm:$0xff]  ;;  %v4309_v43 = vld [vmem:[%s4190_s19 + $0xb0] sm:$0xff]  ;;  %v188_v47 = vmax.f32 %v4242_v23, %v4215_v11  ;;  %v189_v48 = vmax.f32 %v4245_v24, %v4223_v16  ;;  %v4339_v52 = vmax.f32 %v209_v12, %v4231_v20 }
  0x49   : > { %3026 = vst [vmem:[%s4199_s5 + $0x90] sm:$0xff] %v4284_v35  ;;  %3027 = vst [vmem:[%s4199_s5 + $0x98] sm:$0xff] %v4287_v36  ;;  %v4312_v44 = vld [vmem:[%s4190_s19 + $0xb8] sm:$0xff]  ;;  %v4330_v49 = vld [vmem:[%s4190_s19 + $0xc0] sm:$0xff]  ;;  %v4341_v53 = vmax.f32 %v210_v19, %v240_v38  ;;  %v4344_v54 = vmax.f32 %v4231_v20, %v241_v39  ;;  %v244_v55 = vmax.f32 %v4275_v34, %v4250_v26 }
  0x4a   : > { %3028 = vst [vmem:[%s4199_s5 + $0xa0] sm:$0xff] %v4290_v37  ;;  %3029 = vst [vmem:[%s4199_s5 + $0xa8] sm:$0xff] %v4306_v42  ;;  %v4333_v50 = vld [vmem:[%s4190_s19 + $0xc8] sm:$0xff]  ;;  %v4336_v51 = vld [vmem:[%s4190_s19 + $0xd0] sm:$0xff]  ;;  %v4364_v59 = vmax.f32 %v4250_v26, %v242_v40  ;;  %v245_v60 = vmax.f32 %v4297_v41, %v4252_v27  ;;  %v218_v61 = vmax.f32 %v4226_v17, %v188_v47 }
  0x4b   : > { %3030 = vst [vmem:[%s4199_s5 + $0xb0] sm:$0xff] %v4309_v43  ;;  %3031 = vst [vmem:[%s4199_s5 + $0xb8] sm:$0xff] %v4312_v44  ;;  %v4355_v56 = vld [vmem:[%s4190_s19 + $0xd8] sm:$0xff]  ;;  %v4358_v57 = vld [vmem:[%s4190_s19 + $0xe0] sm:$0xff]  ;;  %v219_v62 = vmax.f32 %v4229_v18, %v189_v48  ;;  %v4383_v1 = vmax.f32 %v4252_v27, %v243_v46  ;;  %v190_v2 = vmax.f32 %v4248_v25, %v4226_v17 }
  0x4c   : > { %3032 = vst [vmem:[%s4199_s5 + $0xc0] sm:$0xff] %v4330_v49  ;;  %3033 = vst [vmem:[%s4199_s5 + $0xc8] sm:$0xff] %v4333_v50  ;;  %v4361_v58 = vld [vmem:[%s4190_s19 + $0xe8] sm:$0xff]  ;;  %v4377_v63 = vld [vmem:[%s4190_s19 + $0xf0] sm:$0xff]  ;;  %v191_v3 = vmax.f32 %v4264_v30, %v4229_v18  ;;  %v192_v4 = vmax.f32 %v4267_v31, %v4242_v23  ;;  %v246_v5 = vmax.f32 %v218_v61, %v4254_v28 }
  0x4d   : > { %3034 = vst [vmem:[%s4199_s5 + $0xd0] sm:$0xff] %v4336_v51  ;;  %3035 = vst [vmem:[%s4199_s5 + $0xd8] sm:$0xff] %v4355_v56  ;;  %v4380_v0 = vld [vmem:[%s4190_s19 + $0xf8] sm:$0xff]  ;;  %v247_v6 = vmax.f32 %v219_v62, %v4272_v33  ;;  %v193_v7 = vmax.f32 %v4270_v32, %v4245_v24  ;;  %v194_v8 = vmax.f32 %v4284_v35, %v4248_v25 }
  0x4e   : > { %3036 = vst [vmem:[%s4199_s5 + $0xe0] sm:$0xff] %v4358_v57  ;;  %3037 = vst [vmem:[%s4199_s5 + $0xe8] sm:$0xff] %v4361_v58  ;;  %v220_v9 = vmax.f32 %v4242_v23, %v190_v2  ;;  %v221_v10 = vmax.f32 %v4245_v24, %v191_v3  ;;  %v222_v11 = vmax.f32 %v4248_v25, %v192_v4 }
  0x4f   : > { %3038 = vst [vmem:[%s4199_s5 + $0xf0] sm:$0xff] %v4377_v63  ;;  %3039 = vst [vmem:[%s4199_s5 + $0xf8] sm:$0xff] %v4380_v0  ;;  %v195_v12 = vmax.f32 %v4287_v36, %v4264_v30  ;;  %v4407_v13 = vmax.f32 %v4254_v28, %v244_v55  ;;  %v4410_v14 = vmax.f32 %v4297_v41, %v247_v6 }
  0x50   : > { %v223_v15 = vmax.f32 %v4264_v30, %v193_v7  ;;  %v224_v16 = vmax.f32 %v4267_v31, %v194_v8  ;;  %v248_v17 = vmax.f32 %v220_v9, %v4275_v34  ;;  %v249_v18 = vmax.f32 %v221_v10, %v4297_v41 }
  0x51   : > { %v250_v19 = vmax.f32 %v222_v11, %v218_v61  ;;  %v225_v20 = vmax.f32 %v4270_v32, %v195_v12  ;;  %v4418_v21 = vmax.f32 %v4272_v33, %v245_v60  ;;  %v196_v24 = vmax.f32 %v4290_v37, %v4267_v31 }
  0x52   : > { %v251_v22 = vmax.f32 %v223_v15, %v219_v62  ;;  %v252_v23 = vmax.f32 %v224_v16, %v220_v9  ;;  %v4423_v25 = vmax.f32 %v4275_v34, %v246_v5  ;;  %v301_v26 = vmax.f32 %v4410_v14, %v4339_v52 }
  0x53   : > { %v4427_v27 = vmax.f32 %v219_v62, %v249_v18  ;;  %v253_v28 = vmax.f32 %v225_v20, %v221_v10  ;;  %v4429_v29 = vmax.f32 %v218_v61, %v248_v17  ;;  %v226_v38 = vmax.f32 %v4284_v35, %v196_v24 }
  0x54   : > { %v4431_v30 = vmax.f32 %v221_v10, %v251_v22  ;;  %v4433_v33 = vmax.f32 %v222_v11, %v252_v23  ;;  %v4436_v39 = vmax.f32 %v220_v9, %v250_v19  ;;  %v197_v34 = vmax.f32 %v4306_v42, %v4270_v32 }
  0x55   : > { %v4438_v31 = vmax.f32 %v223_v15, %v253_v28  ;;  %v198_v40 = vmax.f32 %v4309_v43, %v4284_v35  ;;  %v254_v46 = vmax.f32 %v226_v38, %v222_v11  ;;  %v199_v47 = vmax.f32 %v4312_v44, %v4287_v36 }
  0x56   : > { %v305_v41 = vmax.f32 %v4431_v30, %v4383_v1  ;;  %v200_v48 = vmax.f32 %v4330_v49, %v4290_v37  ;;  %v303_v55 = vmax.f32 %v4427_v27, %v4344_v54  ;;  %v227_v32 = vmax.f32 %v4287_v36, %v197_v34 }
  0x57   : > { %v307_v60 = vmax.f32 %v4438_v31, %v4418_v21  ;;  %v228_v35 = vmax.f32 %v4290_v37, %v198_v40  ;;  %v4459_v62 = vmax.f32 %v224_v16, %v254_v46  ;;  %v229_v2 = vmax.f32 %v4306_v42, %v199_v47 }
  0x58   : > { %v4457_v61 = vmax.f32 %v4410_v14, %v305_v41  ;;  %v230_v3 = vmax.f32 %v4309_v43, %v200_v48  ;;  %v255_v5 = vmax.f32 %v227_v32, %v223_v15  ;;  %v201_v7 = vmax.f32 %v4333_v50, %v4306_v42 }
  0x59   : > { %v4464_v4 = vmax.f32 %v4427_v27, %v307_v60  ;;  %v256_v6 = vmax.f32 %v228_v35, %v224_v16  ;;  %v257_v36 = vmax.f32 %v229_v2, %v225_v20  ;;  %v202_v37 = vmax.f32 %v4336_v51, %v4309_v43 }
  0x5a   : > { %v258_v8 = vmax.f32 %v230_v3, %v226_v38  ;;  %v203_v9 = vmax.f32 %v4355_v56, %v4312_v44  ;;  %v4472_v10 = vmax.f32 %v225_v20, %v255_v5  ;;  %v231_v12 = vmax.f32 %v4312_v44, %v201_v7 }
  0x5b   : > { %v4474_v11 = vmax.f32 %v226_v38, %v256_v6  ;;  %v204_v15 = vmax.f32 %v4358_v57, %v4330_v49  ;;  %v4479_v16 = vmax.f32 %v227_v32, %v257_v36  ;;  %v232_v17 = vmax.f32 %v4330_v49, %v202_v37 }
  0x5c   : > { %v4481_v42 = vmax.f32 %v228_v35, %v258_v8  ;;  %v233_v43 = vmax.f32 %v4333_v50, %v203_v9  ;;  %v309_v18 = vmax.f32 %v4472_v10, %v4410_v14  ;;  %v259_v19 = vmax.f32 %v231_v12, %v227_v32 }
  0x5d   : > { %v234_v20 = vmax.f32 %v4336_v51, %v204_v15  ;;  %v205_v44 = vmax.f32 %v4361_v58, %v4333_v50  ;;  %v311_v22 = vmax.f32 %v4479_v16, %v4427_v27  ;;  %v260_v23 = vmax.f32 %v232_v17, %v228_v35 }
  0x5e   : > { %v261_v24 = vmax.f32 %v233_v43, %v229_v2  ;;  %v206_v28 = vmax.f32 %v4377_v63, %v4336_v51  ;;  %v4495_v49 = vmax.f32 %v4431_v30, %v309_v18  ;;  %v4497_v38 = vmax.f32 %v229_v2, %v259_v19 }
  0x5f   : > { %v262_v34 = vmax.f32 %v234_v20, %v230_v3  ;;  %v235_v40 = vmax.f32 %v4355_v56, %v205_v44  ;;  %v4501_v41 = vmax.f32 %v4438_v31, %v311_v22  ;;  %v4503_v50 = vmax.f32 %v230_v3, %v260_v23 }
  0x60   : > { %5959 = vst [vmem:[#allocation6_spill] sm:$0xff] %v4495_v49  ;;  %v4505_v46 = vmax.f32 %v231_v12, %v261_v24  ;;  %v236_v47 = vmax.f32 %v4358_v57, %v206_v28  ;;  %v313_v51 = vmax.f32 %v4497_v38, %v4431_v30  ;;  %v238_v32 = vmax.f32 %v4377_v63, %v4358_v57 }
  0x61   : > { %5960 = vst [vmem:[#allocation7_spill] sm:$0xff] %v4501_v41  ;;  %v4510_v48 = vmax.f32 %v232_v17, %v262_v34  ;;  %v263_v60 = vmax.f32 %v235_v40, %v231_v12  ;;  %v207_v3 = vmax.f32 %v4380_v0, %v4355_v56  ;;  %v239_v5 = vmax.f32 %v4380_v0, %v4361_v58 }
  0x62   : > { %v315_v35 = vmax.f32 %v4505_v46, %v4438_v31  ;;  %v264_v2 = vmax.f32 %v236_v47, %v232_v17  ;;  %v4524_v6 = vmax.f32 %v4383_v1, %v301_v26  ;;  %v266_v57 = vmax.f32 %v238_v32, %v234_v20 }
  0x63   : > { %v4526_v7 = vmax.f32 %v233_v43, %v263_v60  ;;  %v4528_v63 = vmax.f32 %v238_v32, %v236_v47  ;;  %v4531_v36 = vmax.f32 %v4418_v21, %v303_v55  ;;  %v237_v0 = vmax.f32 %v4361_v58, %v207_v3 }
  0x64   : > { %v4533_v56 = vmax.f32 %v234_v20, %v264_v2  ;;  %v267_v8 = vmax.f32 %v239_v5, %v235_v40  ;;  %v4537_v37 = vmax.f32 %v4472_v10, %v313_v51  ;;  %v4541_v9 = vmax.f32 %v236_v47, %v266_v57 }
  0x65   : > { %v317_v26 = vmax.f32 %v4526_v7, %v4472_v10  ;;  %v322_v12 = vmax.f32 %v4528_v63, %v4503_v50  ;;  %v4546_v15 = vmax.f32 %v4479_v16, %v315_v35  ;;  %v265_v55 = vmax.f32 %v237_v0, %v233_v43 }
  0x66   : > { %5961 = vst [vmem:[#allocation8_spill] sm:$0xff] %v4537_v37  ;;  %v4548_v17 = vmax.f32 %v237_v0, %v267_v8  ;;  %v445_v58 = vrot.slane %v4315_v45, 1  ;;  %v320_v20 = vmax.f32 %v4541_v9, %v4481_v42  ;;  %v4560_v44 = vmax.f32 %v4528_v63, %v4533_v56 }
  0x67   : > { %5962 = vst [vmem:[#allocation9_spill] sm:$0xff] %v4546_v15  ;;  %v4552_v18 = vmax.f32 %v4497_v38, %v317_v26  ;;  %v4563_v22 = vmax.f32 %v4533_v56, %v322_v12  ;;  %v4565_v43 = vmax.f32 %v235_v40, %v265_v55  ;;  %v4567_v23 = vmax.f32 %v239_v5, %v237_v0 }
  0x68   : > { %5964 = vst [vmem:[#allocation11_spill] sm:$0xff] %v4560_v44  ;;  %v321_v24 = vmax.f32 %v4548_v17, %v4497_v38  ;;  %v4573_v28 = vmax.f32 %v4541_v9, %v4510_v48  ;;  %v4577_v34 = vmax.f32 %v4548_v17, %v4526_v7  ;;  %v446_v47 = vrot.slane %v4339_v52, 1 }
  0x69   : > { %5963 = vst [vmem:[#allocation10_spill] sm:$0xff] %v4552_v18  ;;  %5965 = vst [vmem:[#allocation12_spill] sm:$0xff] %v4563_v22  ;;  %v542_v51 = vrot.slane %v4315_v45, 7  ;;  %v4582_v40 = vmax.f32 %v4510_v48, %v320_v20  ;;  %v319_v60 = vmax.f32 %v4565_v43, %v4479_v16  ;;  %v543_v57 = vrot.slane %v4339_v52, 7 }
  0x6a   : > { %5966 = vst [vmem:[#allocation13_spill] sm:$0xff] %v4573_v28  ;;  %5967 = vst [vmem:[#allocation14_spill] sm:$0xff] %v4577_v34  ;;  %v4590_v2 = vmax.f32 %v4526_v7, %v321_v24  ;;  %v447_v3 = vsel %vm444_vm0, %v445_v58, %v446_v47  ;;  %v525_v5 = vsel %vm444_vm0, %v446_v47, -inf  ;;  %v4597_v0 = vmax.f32 %v4567_v23, %v4565_v43 }
  0x6b   : > { %5968 = vst [vmem:[#allocation15_spill] sm:$0xff] %v4582_v40  ;;  %v622_v26 = vsel %vm541_vm1, -inf, %v542_v51  ;;  %v448_v12 = vrot.slane %v4341_v53, 1  ;;  %v544_v55 = vsel %vm541_vm1, %v542_v51, %v543_v57  ;;  %v449_v24 = vrot.slane %v4344_v54, 1 }
  0x6c   : > { %5969 = vst [vmem:[#allocation16_spill] sm:$0xff] %v4590_v2  ;;  %v638_v20 = vmax.f32 %v447_v3, %v622_v26  ;;  %v545_v58 = vrot.slane %v4341_v53, 7  ;;  %v4606_v47 = vmax.f32 %v4505_v46, %v319_v60  ;;  %v639_v19 = vmax.f32 %v525_v5, %v544_v55 }
  0x6d   : > { %v546_v35 = vrot.slane %v4344_v54, 7  ;;  %v451_v32 = vrot.slane %v4364_v59, 1  ;;  %v450_v44 = vsel %vm444_vm0, %v448_v12, %v449_v24  ;;  %v526_v34 = vsel %vm444_vm0, %v449_v24, -inf }
  0x6e   : > { %v670_v8 = vmax.f32 %v4315_v45, %v638_v20  ;;  %v623_v51 = vsel %vm541_vm1, -inf, %v545_v58  ;;  %v671_v3 = vmax.f32 %v4339_v52, %v639_v19  ;;  %v452_v60 = vrot.slane %v4383_v1, 1 }
  0x6f   : > { %v547_v57 = vsel %vm541_vm1, %v545_v58, %v546_v35  ;;  %v640_v26 = vmax.f32 %v450_v44, %v623_v51  ;;  %v548_v22 = vrot.slane %v4364_v59, 7  ;;  %v549_v44 = vrot.slane %v4383_v1, 7 }
  0x70   : > { %v734_v5 = vrot.slane %v670_v8, 1  ;;  %v830_v55 = vrot.slane %v670_v8, 7  ;;  %v641_v28 = vmax.f32 %v526_v34, %v547_v57  ;;  %v735_v2 = vrot.slane %v671_v3, 1 }
  0x71   : > { %v831_v20 = vrot.slane %v671_v3, 7  ;;  %v672_v12 = vmax.f32 %v4341_v53, %v640_v26  ;;  %v453_v24 = vsel %vm444_vm0, %v451_v32, %v452_v60  ;;  %v527_v35 = vsel %vm444_vm0, %v452_v60, -inf }
  0x72   : > { %v910_v40 = vsel %vm541_vm1, -inf, %v830_v55  ;;  %v673_v19 = vmax.f32 %v4344_v54, %v641_v28  ;;  %v736_v58 = vsel %vm444_vm0, %v734_v5, %v735_v2  ;;  %v814_v34 = vsel %vm444_vm0, %v735_v2, -inf }
  0x73   : > { %v832_v51 = vsel %vm541_vm1, %v830_v55, %v831_v20  ;;  %v737_v57 = vrot.slane %v672_v12, 1  ;;  %v926_v18 = vmax.f32 %v736_v58, %v910_v40  ;;  %v833_v15 = vrot.slane %v672_v12, 7 }
  0x74   : > { %v927_v26 = vmax.f32 %v814_v34, %v832_v51  ;;  %v738_v32 = vrot.slane %v673_v19, 1  ;;  %v834_v37 = vrot.slane %v673_v19, 7  ;;  %v550_v28 = vsel %vm541_vm1, %v548_v22, %v549_v44 }
  0x75   : > { %v624_v60 = vsel %vm541_vm1, -inf, %v548_v22  ;;  %v454_v41 = vrot.slane %v4407_v13, 1  ;;  %v958_v49 = vmax.f32 %v670_v8, %v926_v18  ;;  %v911_v55 = vsel %vm541_vm1, -inf, %v833_v15 }
  0x76   : > { %v959_v5 = vmax.f32 %v671_v3, %v927_v26  ;;  %v739_v2 = vsel %vm444_vm0, %v737_v57, %v738_v32  ;;  %v815_v40 = vsel %vm444_vm0, %v738_v32, -inf  ;;  %v835_v58 = vsel %vm541_vm1, %v833_v15, %v834_v37 }
  0x77   : > { %v928_v20 = vmax.f32 %v739_v2, %v911_v55  ;;  %v642_v34 = vmax.f32 %v453_v24, %v624_v60  ;;  %3777 = vst [vmem:[%s4199_s5 + $0x100] sm:$0xff] %v958_v49  ;;  %v929_v44 = vmax.f32 %v815_v40, %v835_v58  ;;  %v643_v51 = vmax.f32 %v527_v35, %v550_v28 }
  0x78   : > { %3778 = vst [vmem:[%s4199_s5 + $0x108] sm:$0xff] %v959_v5  ;;  %v455_v22 = vrot.slane %v4418_v21, 1  ;;  %v551_v18 = vrot.slane %v4407_v13, 7  ;;  %v552_v57 = vrot.slane %v4418_v21, 7  ;;  %v457_v26 = vrot.slane %v4423_v25, 1 }
  0x79   : > { %v960_v8 = vmax.f32 %v672_v12, %v928_v20  ;;  %v674_v3 = vmax.f32 %v4364_v59, %v642_v34  ;;  %v961_v32 = vmax.f32 %v673_v19, %v929_v44  ;;  %v675_v37 = vmax.f32 %v4383_v1, %v643_v51 }
  0x7a   : > { %v456_v49 = vsel %vm444_vm0, %v454_v41, %v455_v22  ;;  %v528_v15 = vsel %vm444_vm0, %v455_v22, -inf  ;;  %v553_v28 = vsel %vm541_vm1, %v551_v18, %v552_v57  ;;  %v625_v12 = vsel %vm541_vm1, -inf, %v551_v18 }
  0x7b   : > { %3779 = vst [vmem:[%s4199_s5 + $0x110] sm:$0xff] %v960_v8  ;;  %v740_v24 = vrot.slane %v674_v3, 1  ;;  %v836_v35 = vrot.slane %v674_v3, 7  ;;  %3780 = vst [vmem:[%s4199_s5 + $0x118] sm:$0xff] %v961_v32  ;;  %v741_v60 = vrot.slane %v675_v37, 1  ;;  %v837_v5 = vrot.slane %v675_v37, 7 }
  0x7c   : > { %v644_v2 = vmax.f32 %v456_v49, %v625_v12  ;;  %v645_v55 = vmax.f32 %v528_v15, %v553_v28  ;;  %v458_v20 = vrot.slane %v4410_v14, 1  ;;  %v554_v41 = vrot.slane %v4423_v25, 7 }
  0x7d   : > { %v912_v19 = vsel %vm541_vm1, -inf, %v836_v35  ;;  %v555_v40 = vrot.slane %v4410_v14, 7  ;;  %v742_v58 = vsel %vm444_vm0, %v740_v24, %v741_v60  ;;  %v816_v34 = vsel %vm444_vm0, %v741_v60, -inf }
  0x7e   : > { %v838_v44 = vsel %vm541_vm1, %v836_v35, %v837_v5  ;;  %v676_v51 = vmax.f32 %v4407_v13, %v644_v2  ;;  %v930_v22 = vmax.f32 %v742_v58, %v912_v19  ;;  %v677_v8 = vmax.f32 %v4418_v21, %v645_v55 }
  0x7f   : > { %v931_v18 = vmax.f32 %v816_v34, %v838_v44  ;;  %v459_v57 = vsel %vm444_vm0, %v457_v26, %v458_v20  ;;  %v529_v15 = vsel %vm444_vm0, %v458_v20, -inf  ;;  %v556_v24 = vsel %vm541_vm1, %v554_v41, %v555_v40 }
  0x80   : > { %v743_v32 = vrot.slane %v676_v51, 1  ;;  %v839_v49 = vrot.slane %v676_v51, 7  ;;  %v962_v28 = vmax.f32 %v674_v3, %v930_v22  ;;  %v744_v60 = vrot.slane %v677_v8, 1 }
  0x81   : > { %v963_v12 = vmax.f32 %v675_v37, %v931_v18  ;;  %v840_v35 = vrot.slane %v677_v8, 7  ;;  %v626_v2 = vsel %vm541_vm1, -inf, %v554_v41  ;;  %v647_v19 = vmax.f32 %v529_v15, %v556_v24 }
  0x82   : > { %v913_v5 = vsel %vm541_vm1, -inf, %v839_v49  ;;  %v460_v58 = vrot.slane %v4429_v29, 1  ;;  %3781 = vst [vmem:[%s4199_s5 + $0x120] sm:$0xff] %v962_v28  ;;  %v745_v26 = vsel %vm444_vm0, %v743_v32, %v744_v60  ;;  %v817_v55 = vsel %vm444_vm0, %v744_v60, -inf }
  0x83   : > { %3782 = vst [vmem:[%s4199_s5 + $0x128] sm:$0xff] %v963_v12  ;;  %v841_v20 = vsel %vm541_vm1, %v839_v49, %v840_v35  ;;  %v646_v40 = vmax.f32 %v459_v57, %v626_v2  ;;  %v932_v3 = vmax.f32 %v745_v26, %v913_v5  ;;  %v679_v34 = vmax.f32 %v4410_v14, %v647_v19 }
  0x84   : > { %v933_v37 = vmax.f32 %v817_v55, %v841_v20  ;;  %v461_v41 = vrot.slane %v4427_v27, 1  ;;  %v557_v22 = vrot.slane %v4429_v29, 7  ;;  %v558_v18 = vrot.slane %v4427_v27, 7 }
  0x85   : > { %v678_v44 = vmax.f32 %v4423_v25, %v646_v40  ;;  %v463_v32 = vrot.slane %v4436_v39, 1  ;;  %v964_v15 = vmax.f32 %v676_v51, %v932_v3  ;;  %v747_v49 = vrot.slane %v679_v34, 1 }
  0x86   : > { %v965_v24 = vmax.f32 %v677_v8, %v933_v37  ;;  %v843_v57 = vrot.slane %v679_v34, 7  ;;  %v462_v60 = vsel %vm444_vm0, %v460_v58, %v461_v41  ;;  %v530_v14 = vsel %vm444_vm0, %v461_v41, -inf }
  0x87   : > { %v746_v28 = vrot.slane %v678_v44, 1  ;;  %v842_v12 = vrot.slane %v678_v44, 7  ;;  %3783 = vst [vmem:[%s4199_s5 + $0x130] sm:$0xff] %v964_v15  ;;  %v818_v35 = vsel %vm444_vm0, %v747_v49, -inf  ;;  %v559_v5 = vsel %vm541_vm1, %v557_v22, %v558_v18 }
  0x88   : > { %3784 = vst [vmem:[%s4199_s5 + $0x138] sm:$0xff] %v965_v24  ;;  %v627_v2 = vsel %vm541_vm1, -inf, %v557_v22  ;;  %v464_v19 = vrot.slane %v4431_v30, 1  ;;  %v649_v40 = vmax.f32 %v530_v14, %v559_v5  ;;  %v560_v22 = vrot.slane %v4436_v39, 7 }
  0x89   : > { %v748_v51 = vsel %vm444_vm0, %v746_v28, %v747_v49  ;;  %v914_v8 = vsel %vm541_vm1, -inf, %v842_v12  ;;  %v844_v26 = vsel %vm541_vm1, %v842_v12, %v843_v57  ;;  %v648_v55 = vmax.f32 %v462_v60, %v627_v2 }
  0x8a   : > { %v934_v58 = vmax.f32 %v748_v51, %v914_v8  ;;  %v935_v20 = vmax.f32 %v818_v35, %v844_v26  ;;  %v465_v3 = vsel %vm444_vm0, %v463_v32, %v464_v19  ;;  %v531_v41 = vsel %vm444_vm0, %v464_v19, -inf }
  0x8b   : > { %v680_v37 = vmax.f32 %v4429_v29, %v648_v55  ;;  %v561_v18 = vrot.slane %v4431_v30, 7  ;;  %v681_v49 = vmax.f32 %v4427_v27, %v649_v40  ;;  %v466_v57 = vrot.slane %v4433_v33, 1 }
  0x8c   : > { %v966_v15 = vmax.f32 %v678_v44, %v934_v58  ;;  %v967_v24 = vmax.f32 %v679_v34, %v935_v20  ;;  %v628_v32 = vsel %vm541_vm1, -inf, %v560_v22  ;;  %v467_v34 = vrot.slane %v4438_v31, 1 }
  0x8d   : > { %v749_v28 = vrot.slane %v680_v37, 1  ;;  %v845_v12 = vrot.slane %v680_v37, 7  ;;  %v562_v60 = vsel %vm541_vm1, %v560_v22, %v561_v18  ;;  %v750_v14 = vrot.slane %v681_v49, 1 }
  0x8e   : > { %3785 = vst [vmem:[%s4199_s5 + $0x140] sm:$0xff] %v966_v15  ;;  %3786 = vst [vmem:[%s4199_s5 + $0x148] sm:$0xff] %v967_v24  ;;  %v846_v35 = vrot.slane %v681_v49, 7  ;;  %v650_v5 = vmax.f32 %v465_v3, %v628_v32  ;;  %v651_v2 = vmax.f32 %v531_v41, %v562_v60  ;;  %v563_v27 = vrot.slane %v4433_v33, 7 }
  0x8f   : > { %v915_v19 = vsel %vm541_vm1, -inf, %v845_v12  ;;  %v564_v44 = vrot.slane %v4438_v31, 7  ;;  %v751_v51 = vsel %vm444_vm0, %v749_v28, %v750_v14  ;;  %v819_v8 = vsel %vm444_vm0, %v750_v14, -inf }
  0x90   : > { %v847_v26 = vsel %vm541_vm1, %v845_v12, %v846_v35  ;;  %v682_v55 = vmax.f32 %v4436_v39, %v650_v5  ;;  %v936_v58 = vmax.f32 %v751_v51, %v915_v19  ;;  %v683_v40 = vmax.f32 %v4431_v30, %v651_v2 }
  0x91   : > { %v937_v20 = vmax.f32 %v819_v8, %v847_v26  ;;  %v468_v3 = vsel %vm444_vm0, %v466_v57, %v467_v34  ;;  %v532_v18 = vsel %vm444_vm0, %v467_v34, -inf  ;;  %v565_v15 = vsel %vm541_vm1, %v563_v27, %v564_v44 }
  0x92   : > { %v752_v41 = vrot.slane %v682_v55, 1  ;;  %v848_v22 = vrot.slane %v682_v55, 7  ;;  %v968_v24 = vmax.f32 %v680_v37, %v936_v58  ;;  %v753_v60 = vrot.slane %v683_v40, 1 }
  0x93   : > { %v969_v28 = vmax.f32 %v681_v49, %v937_v20  ;;  %v849_v12 = vrot.slane %v683_v40, 7  ;;  %v629_v14 = vsel %vm541_vm1, -inf, %v563_v27  ;;  %v653_v35 = vmax.f32 %v532_v18, %v565_v15 }
  0x94   : > { %v916_v32 = vsel %vm541_vm1, -inf, %v848_v22  ;;  %v469_v5 = vrot.slane %v4459_v62, 1  ;;  %3787 = vst [vmem:[%s4199_s5 + $0x150] sm:$0xff] %v968_v24  ;;  %v754_v30 = vsel %vm444_vm0, %v752_v41, %v753_v60  ;;  %v820_v57 = vsel %vm444_vm0, %v753_v60, -inf }
  0x95   : > { %3788 = vst [vmem:[%s4199_s5 + $0x158] sm:$0xff] %v969_v28  ;;  %v850_v2 = vsel %vm541_vm1, %v848_v22, %v849_v12  ;;  %v652_v19 = vmax.f32 %v468_v3, %v629_v14  ;;  %v938_v37 = vmax.f32 %v754_v30, %v916_v32  ;;  %v685_v34 = vmax.f32 %v4438_v31, %v653_v35 }
  0x96   : > { %v939_v49 = vmax.f32 %v820_v57, %v850_v2  ;;  %v470_v27 = vrot.slane %v4472_v10, 1  ;;  %v566_v51 = vrot.slane %v4459_v62, 7  ;;  %v567_v8 = vrot.slane %v4472_v10, 7 }
  0x97   : > { %v684_v44 = vmax.f32 %v4433_v33, %v652_v19  ;;  %v472_v26 = vrot.slane %v4474_v11, 1  ;;  %v970_v58 = vmax.f32 %v682_v55, %v938_v37  ;;  %v756_v41 = vrot.slane %v685_v34, 1 }
  0x98   : > { %v971_v20 = vmax.f32 %v683_v40, %v939_v49  ;;  %v852_v3 = vrot.slane %v685_v34, 7  ;;  %v471_v15 = vsel %vm444_vm0, %v469_v5, %v470_v27  ;;  %v533_v31 = vsel %vm444_vm0, %v470_v27, -inf }
  0x99   : > { %v755_v22 = vrot.slane %v684_v44, 1  ;;  %v851_v18 = vrot.slane %v684_v44, 7  ;;  %3789 = vst [vmem:[%s4199_s5 + $0x160] sm:$0xff] %v970_v58  ;;  %v821_v24 = vsel %vm444_vm0, %v756_v41, -inf  ;;  %v568_v28 = vsel %vm541_vm1, %v566_v51, %v567_v8 }
  0x9a   : > { %3790 = vst [vmem:[%s4199_s5 + $0x168] sm:$0xff] %v971_v20  ;;  %v630_v60 = vsel %vm541_vm1, -inf, %v566_v51  ;;  %v473_v12 = vrot.slane %v4479_v16, 1  ;;  %v655_v30 = vmax.f32 %v533_v31, %v568_v28  ;;  %v569_v37 = vrot.slane %v4474_v11, 7 }
  0x9b   : > { %v757_v55 = vsel %vm444_vm0, %v755_v22, %v756_v41  ;;  %v917_v40 = vsel %vm541_vm1, -inf, %v851_v18  ;;  %v853_v32 = vsel %vm541_vm1, %v851_v18, %v852_v3  ;;  %v654_v14 = vmax.f32 %v471_v15, %v630_v60 }
  0x9c   : > { %v940_v35 = vmax.f32 %v757_v55, %v917_v40  ;;  %v941_v5 = vmax.f32 %v821_v24, %v853_v32  ;;  %v474_v57 = vsel %vm444_vm0, %v472_v26, %v473_v12  ;;  %v534_v19 = vsel %vm444_vm0, %v473_v12, -inf }
  0x9d   : > { %v686_v2 = vmax.f32 %v4459_v62, %v654_v14  ;;  %v570_v49 = vrot.slane %v4479_v16, 7  ;;  %v687_v8 = vmax.f32 %v4472_v10, %v655_v30  ;;  %v475_v58 = vrot.slane %v4481_v42, 1 }
  0x9e   : > { %v972_v27 = vmax.f32 %v684_v44, %v940_v35  ;;  %v973_v51 = vmax.f32 %v685_v34, %v941_v5  ;;  %v631_v26 = vsel %vm541_vm1, -inf, %v569_v37  ;;  %v476_v34 = vrot.slane %v4497_v38, 1 }
  0x9f   : > { %v758_v20 = vrot.slane %v686_v2, 1  ;;  %v854_v41 = vrot.slane %v686_v2, 7  ;;  %v571_v3 = vsel %vm541_vm1, %v569_v37, %v570_v49  ;;  %v759_v22 = vrot.slane %v687_v8, 1 }
  0xa0   : > { %3791 = vst [vmem:[%s4199_s5 + $0x170] sm:$0xff] %v972_v27  ;;  %3792 = vst [vmem:[%s4199_s5 + $0x178] sm:$0xff] %v973_v51  ;;  %v855_v18 = vrot.slane %v687_v8, 7  ;;  %v656_v15 = vmax.f32 %v474_v57, %v631_v26  ;;  %v657_v31 = vmax.f32 %v534_v19, %v571_v3  ;;  %v572_v10 = vrot.slane %v4481_v42, 7 }
  0xa1   : > { %v918_v24 = vsel %vm541_vm1, -inf, %v854_v41  ;;  %v573_v44 = vrot.slane %v4497_v38, 7  ;;  %v760_v28 = vsel %vm444_vm0, %v758_v20, %v759_v22  ;;  %v822_v60 = vsel %vm444_vm0, %v759_v22, -inf }
  0xa2   : > { %v856_v12 = vsel %vm541_vm1, %v854_v41, %v855_v18  ;;  %v688_v55 = vmax.f32 %v4474_v11, %v656_v15  ;;  %v942_v40 = vmax.f32 %v760_v28, %v918_v24  ;;  %v689_v14 = vmax.f32 %v4479_v16, %v657_v31 }
  0xa3   : > { %v943_v32 = vmax.f32 %v822_v60, %v856_v12  ;;  %v477_v35 = vsel %vm444_vm0, %v475_v58, %v476_v34  ;;  %v535_v57 = vsel %vm444_vm0, %v476_v34, -inf  ;;  %v574_v19 = vsel %vm541_vm1, %v572_v10, %v573_v44 }
  0xa4   : > { %v761_v5 = vrot.slane %v688_v55, 1  ;;  %v857_v30 = vrot.slane %v688_v55, 7  ;;  %v974_v37 = vmax.f32 %v686_v2, %v942_v40  ;;  %v762_v27 = vrot.slane %v689_v14, 1 }
  0xa5   : > { %v975_v49 = vmax.f32 %v687_v8, %v943_v32  ;;  %v858_v51 = vrot.slane %v689_v14, 7  ;;  %v632_v41 = vsel %vm541_vm1, -inf, %v572_v10  ;;  %v659_v3 = vmax.f32 %v535_v57, %v574_v19 }
  0xa6   : > { %v919_v20 = vsel %vm541_vm1, -inf, %v857_v30  ;;  %v478_v26 = vrot.slane %v4503_v50, 1  ;;  %3793 = vst [vmem:[%s4199_s5 + $0x180] sm:$0xff] %v974_v37  ;;  %v763_v16 = vsel %vm444_vm0, %v761_v5, %v762_v27  ;;  %v823_v58 = vsel %vm444_vm0, %v762_v27, -inf }
  0xa7   : > { %3794 = vst [vmem:[%s4199_s5 + $0x188] sm:$0xff] %v975_v49  ;;  %v859_v22 = vsel %vm541_vm1, %v857_v30, %v858_v51  ;;  %v658_v18 = vmax.f32 %v477_v35, %v632_v41  ;;  %v944_v2 = vmax.f32 %v763_v16, %v919_v20  ;;  %v691_v15 = vmax.f32 %v4497_v38, %v659_v3 }
  0xa8   : > { %v945_v8 = vmax.f32 %v823_v58, %v859_v22  ;;  %v479_v31 = vrot.slane %v4505_v46, 1  ;;  %v575_v34 = vrot.slane %v4503_v50, 7  ;;  %v576_v10 = vrot.slane %v4505_v46, 7 }
  0xa9   : > { %v690_v24 = vmax.f32 %v4481_v42, %v658_v18  ;;  %v481_v44 = vrot.slane %v4510_v48, 1  ;;  %v976_v28 = vmax.f32 %v688_v55, %v944_v2  ;;  %v765_v12 = vrot.slane %v691_v15, 1 }
  0xaa   : > { %v977_v60 = vmax.f32 %v689_v14, %v945_v8  ;;  %v861_v40 = vrot.slane %v691_v15, 7  ;;  %v480_v5 = vsel %vm444_vm0, %v478_v26, %v479_v31  ;;  %v536_v38 = vsel %vm444_vm0, %v479_v31, -inf }
  0xab   : > { %v764_v32 = vrot.slane %v690_v24, 1  ;;  %v860_v35 = vrot.slane %v690_v24, 7  ;;  %3795 = vst [vmem:[%s4199_s5 + $0x190] sm:$0xff] %v976_v28  ;;  %v824_v30 = vsel %vm444_vm0, %v765_v12, -inf  ;;  %v577_v57 = vsel %vm541_vm1, %v575_v34, %v576_v10 }
  0xac   : > { %3796 = vst [vmem:[%s4199_s5 + $0x198] sm:$0xff] %v977_v60  ;;  %v633_v19 = vsel %vm541_vm1, -inf, %v575_v34  ;;  %v482_v37 = vrot.slane %v4526_v7, 1  ;;  %v661_v41 = vmax.f32 %v536_v38, %v577_v57  ;;  %v578_v58 = vrot.slane %v4510_v48, 7 }
  0xad   : > { %v766_v55 = vsel %vm444_vm0, %v764_v32, %v765_v12  ;;  %v920_v14 = vsel %vm541_vm1, -inf, %v860_v35  ;;  %v862_v49 = vsel %vm541_vm1, %v860_v35, %v861_v40  ;;  %v660_v27 = vmax.f32 %v480_v5, %v633_v19 }
  0xae   : > { %v946_v51 = vmax.f32 %v766_v55, %v920_v14  ;;  %v947_v20 = vmax.f32 %v824_v30, %v862_v49  ;;  %v483_v3 = vsel %vm444_vm0, %v481_v44, %v482_v37  ;;  %v537_v16 = vsel %vm444_vm0, %v482_v37, -inf }
  0xaf   : > { %v692_v26 = vmax.f32 %v4503_v50, %v660_v27  ;;  %v579_v22 = vrot.slane %v4526_v7, 7  ;;  %v693_v8 = vmax.f32 %v4505_v46, %v661_v41  ;;  %v484_v31 = vrot.slane %v4533_v56, 1 }
  0xb0   : > { %v978_v18 = vmax.f32 %v690_v24, %v946_v51  ;;  %v979_v2 = vmax.f32 %v691_v15, %v947_v20  ;;  %v634_v44 = vsel %vm541_vm1, -inf, %v578_v58  ;;  %v485_v15 = vrot.slane %v4565_v43, 1 }
  0xb1   : > { %v767_v34 = vrot.slane %v692_v26, 1  ;;  %v863_v10 = vrot.slane %v692_v26, 7  ;;  %v580_v28 = vsel %vm541_vm1, %v578_v58, %v579_v22  ;;  %v768_v60 = vrot.slane %v693_v8, 1 }
  0xb2   : > { %3797 = vst [vmem:[%s4199_s5 + $0x1a0] sm:$0xff] %v978_v18  ;;  %3798 = vst [vmem:[%s4199_s5 + $0x1a8] sm:$0xff] %v979_v2  ;;  %v864_v12 = vrot.slane %v693_v8, 7  ;;  %v662_v40 = vmax.f32 %v483_v3, %v634_v44  ;;  %v663_v32 = vmax.f32 %v537_v16, %v580_v28  ;;  %v581_v24 = vrot.slane %v4533_v56, 7 }
  0xb3   : > { %v921_v35 = vsel %vm541_vm1, -inf, %v863_v10  ;;  %v582_v5 = vrot.slane %v4565_v43, 7  ;;  %v769_v38 = vsel %vm444_vm0, %v767_v34, %v768_v60  ;;  %v825_v30 = vsel %vm444_vm0, %v768_v60, -inf }
  0xb4   : > { %v865_v57 = vsel %vm541_vm1, %v863_v10, %v864_v12  ;;  %v694_v19 = vmax.f32 %v4510_v48, %v662_v40  ;;  %v948_v37 = vmax.f32 %v769_v38, %v921_v35  ;;  %v695_v14 = vmax.f32 %v4526_v7, %v663_v32 }
  0xb5   : > { %v949_v55 = vmax.f32 %v825_v30, %v865_v57  ;;  %v486_v49 = vsel %vm444_vm0, %v484_v31, %v485_v15  ;;  %v538_v20 = vsel %vm444_vm0, %v485_v15, -inf  ;;  %v583_v41 = vsel %vm541_vm1, %v581_v24, %v582_v5 }
  0xb6   : > { %v770_v27 = vrot.slane %v694_v19, 1  ;;  %v866_v51 = vrot.slane %v694_v19, 7  ;;  %v980_v3 = vmax.f32 %v692_v26, %v948_v37  ;;  %v771_v58 = vrot.slane %v695_v14, 1 }
  0xb7   : > { %v981_v16 = vmax.f32 %v693_v8, %v949_v55  ;;  %v867_v22 = vrot.slane %v695_v14, 7  ;;  %v635_v2 = vsel %vm541_vm1, -inf, %v581_v24  ;;  %v665_v34 = vmax.f32 %v538_v20, %v583_v41 }
  0xb8   : > { %v922_v18 = vsel %vm541_vm1, -inf, %v866_v51  ;;  %v487_v10 = vrot.slane %v4541_v9, 1  ;;  %3799 = vst [vmem:[%s4199_s5 + $0x1b0] sm:$0xff] %v980_v3  ;;  %v772_v7 = vsel %vm444_vm0, %v770_v27, %v771_v58  ;;  %v826_v31 = vsel %vm444_vm0, %v771_v58, -inf }
  0xb9   : > { %3800 = vst [vmem:[%s4199_s5 + $0x1b8] sm:$0xff] %v981_v16  ;;  %v868_v28 = vsel %vm541_vm1, %v866_v51, %v867_v22  ;;  %v664_v44 = vmax.f32 %v486_v49, %v635_v2  ;;  %v950_v26 = vmax.f32 %v772_v7, %v922_v18  ;;  %v697_v60 = vmax.f32 %v4565_v43, %v665_v34 }
  0xba   : > { %v951_v8 = vmax.f32 %v826_v31, %v868_v28  ;;  %v488_v12 = vrot.slane %v4548_v17, 1  ;;  %v584_v32 = vrot.slane %v4541_v9, 7  ;;  %v490_v35 = vrot.slane %v4528_v63, 1 }
  0xbb   : > { %v696_v40 = vmax.f32 %v4533_v56, %v664_v44  ;;  %v491_v15 = vrot.slane %v4567_v23, 1  ;;  %v982_v24 = vmax.f32 %v694_v19, %v950_v26  ;;  %v774_v38 = vrot.slane %v697_v60, 1 }
  0xbc   : > { %v983_v5 = vmax.f32 %v695_v14, %v951_v8  ;;  %v870_v30 = vrot.slane %v697_v60, 7  ;;  %v489_v55 = vsel %vm444_vm0, %v487_v10, %v488_v12  ;;  %v539_v49 = vsel %vm444_vm0, %v488_v12, -inf }
  0xbd   : > { %v773_v57 = vrot.slane %v696_v40, 1  ;;  %v869_v37 = vrot.slane %v696_v40, 7  ;;  %v5970_v27 = vmax.f32 %v4567_v23, %v4505_v46  ;;  %3801 = vst [vmem:[%s4199_s5 + $0x1c0] sm:$0xff] %v982_v24  ;;  %v827_v20 = vsel %vm444_vm0, %v774_v38, -inf }
  0xbe   : > { %3802 = vst [vmem:[%s4199_s5 + $0x1c8] sm:$0xff] %v983_v5  ;;  %v5971_v19 = vrot.slane %v4548_v17, 7  ;;  %v636_v41 = vsel %vm541_vm1, -inf, %v584_v32  ;;  %v492_v2 = vsel %vm444_vm0, %v490_v35, %v491_v15  ;;  %v540_v10 = vsel %vm444_vm0, %v491_v15, -inf }
  0xbf   : > { %v4824_v51 = vmax.f32 %v4565_v43, %v5970_v27  ;;  %v775_v3 = vsel %vm444_vm0, %v773_v57, %v774_v38  ;;  %v923_v16 = vsel %vm541_vm1, -inf, %v869_v37  ;;  %v871_v58 = vsel %vm541_vm1, %v869_v37, %v870_v30 }
  0xc0   : > { %v586_v14 = vsel %vm541_vm1, %v584_v32, %v5971_v19  ;;  %v666_v46 = vmax.f32 %v489_v55, %v636_v41  ;;  %v952_v22 = vmax.f32 %v775_v3, %v923_v16  ;;  %v953_v43 = vmax.f32 %v827_v20, %v871_v58 }
  0xc1   : > { %v667_v18 = vmax.f32 %v539_v49, %v586_v14  ;;  %v587_v7 = vrot.slane %v4528_v63, 7  ;;  %v4842_v31 = vmax.f32 %v4315_v45, %v4364_v59  ;;  %v4847_v8 = vmax.f32 %v4339_v52, %v4383_v1 }
  0xc2   : > { %v698_v34 = vmax.f32 %v4541_v9, %v666_v46  ;;  %v984_v28 = vmax.f32 %v696_v40, %v952_v22  ;;  %v985_v44 = vmax.f32 %v697_v60, %v953_v43  ;;  %v5972_v9 = vrot.slane %v4567_v23, 7 }
  0xc3   : > { %v699_v26 = vmax.f32 %v4548_v17, %v667_v18  ;;  %v637_v15 = vsel %vm541_vm1, -inf, %v587_v7  ;;  %v1022_v38 = vrot.slane %v4842_v31, 1  ;;  %v1023_v52 = vrot.slane %v4847_v8, 1 }
  0xc4   : > { %v776_v12 = vrot.slane %v698_v34, 1  ;;  %v872_v32 = vrot.slane %v698_v34, 7  ;;  %v589_v35 = vsel %vm541_vm1, %v587_v7, %v5972_v9  ;;  %3803 = vst [vmem:[%s4199_s5 + $0x1d0] sm:$0xff] %v984_v28  ;;  %3804 = vst [vmem:[%s4199_s5 + $0x1d8] sm:$0xff] %v985_v44  ;;  %v668_v40 = vmax.f32 %v492_v2, %v637_v15 }
  0xc5   : > { %v777_v24 = vrot.slane %v699_v26, 1  ;;  %v873_v5 = vrot.slane %v699_v26, 7  ;;  %v669_v60 = vmax.f32 %v540_v10, %v589_v35  ;;  %v1118_v1 = vrot.slane %v4842_v31, 7 }
  0xc6   : > { %v924_v17 = vsel %vm541_vm1, -inf, %v872_v32  ;;  %v700_v55 = vmax.f32 %v4528_v63, %v668_v40  ;;  %v1024_v19 = vsel %vm444_vm0, %v1022_v38, %v1023_v52  ;;  %v1102_v3 = vsel %vm444_vm0, %v1023_v52, -inf }
  0xc7   : > { %v778_v30 = vsel %vm444_vm0, %v776_v12, %v777_v24  ;;  %v828_v57 = vsel %vm444_vm0, %v777_v24, -inf  ;;  %v874_v37 = vsel %vm541_vm1, %v872_v32, %v873_v5  ;;  %v701_v20 = vmax.f32 %v4567_v23, %v669_v60 }
  0xc8   : > { %v954_v49 = vmax.f32 %v778_v30, %v924_v17  ;;  %v955_v27 = vmax.f32 %v828_v57, %v874_v37  ;;  %v779_v14 = vrot.slane %v700_v55, 1  ;;  %v875_v41 = vrot.slane %v700_v55, 7 }
  0xc9   : > { %v1119_v16 = vrot.slane %v4847_v8, 7  ;;  %v780_v22 = vrot.slane %v701_v20, 1  ;;  %v876_v43 = vrot.slane %v701_v20, 7  ;;  %v379_v63 = vmax.f32 %v4597_v0, %v4606_v47 }
  0xca   : > { %v986_v58 = vmax.f32 %v698_v34, %v954_v49  ;;  %v987_v46 = vmax.f32 %v699_v26, %v955_v27  ;;  %v925_v18 = vsel %vm541_vm1, -inf, %v875_v41  ;;  %v1198_v23 = vsel %vm541_vm1, -inf, %v1118_v1 }
  0xcb   : > { %v1120_v2 = vsel %vm541_vm1, %v1118_v1, %v1119_v16  ;;  %v781_v10 = vsel %vm444_vm0, %v779_v14, %v780_v22  ;;  %v829_v7 = vsel %vm444_vm0, %v780_v22, -inf  ;;  %v877_v34 = vsel %vm541_vm1, %v875_v41, %v876_v43 }
  0xcc   : > { %3805 = vst [vmem:[%s4199_s5 + $0x1e0] sm:$0xff] %v986_v58  ;;  %3806 = vst [vmem:[%s4199_s5 + $0x1e8] sm:$0xff] %v987_v46  ;;  %v1214_v28 = vmax.f32 %v1024_v19, %v1198_v23  ;;  %v956_v44 = vmax.f32 %v781_v10, %v925_v18  ;;  %v957_v26 = vmax.f32 %v829_v7, %v877_v34  ;;  %v1029_v24 = vrot.slane %v4524_v6, 1 }
  0xcd   : > { %v1215_v12 = vmax.f32 %v1102_v3, %v1120_v2  ;;  %v4879_v32 = vmax.f32 %v4341_v53, %v4407_v13  ;;  %v4884_v35 = vmax.f32 %v4344_v54, %v4418_v21  ;;  %v300_v15 = vmax.f32 %v4423_v25, %v4315_v45 }
  0xce   : > { %v1246_v9 = vmax.f32 %v4842_v31, %v1214_v28  ;;  %v988_v5 = vmax.f32 %v700_v55, %v956_v44  ;;  %v989_v40 = vmax.f32 %v701_v20, %v957_v26  ;;  %v1104_v43 = vsel %vm444_vm0, %v1029_v24, -inf }
  0xcf   : > { %v1247_v60 = vmax.f32 %v4847_v8, %v1215_v12  ;;  %v1025_v17 = vrot.slane %v4879_v32, 1  ;;  %v1026_v1 = vrot.slane %v4884_v35, 1  ;;  %v1121_v30 = vrot.slane %v4879_v32, 7 }
  0xd0   : > { %v1310_v38 = vrot.slane %v1246_v9, 1  ;;  %v1406_v52 = vrot.slane %v1246_v9, 7  ;;  %3807 = vst [vmem:[%s4199_s5 + $0x1f0] sm:$0xff] %v988_v5  ;;  %3808 = vst [vmem:[%s4199_s5 + $0x1f8] sm:$0xff] %v989_v40  ;;  %v1122_v45 = vrot.slane %v4884_v35, 7  ;;  %v4897_v57 = vmax.f32 %v4364_v59, %v300_v15 }
  0xd1   : > { %v1311_v54 = vrot.slane %v1247_v60, 1  ;;  %v1407_v21 = vrot.slane %v1247_v60, 7  ;;  %v1027_v55 = vsel %vm444_vm0, %v1025_v17, %v1026_v1  ;;  %v1103_v49 = vsel %vm444_vm0, %v1026_v1, -inf }
  0xd2   : > { %v1486_v37 = vsel %vm541_vm1, -inf, %v1406_v52  ;;  %v1199_v27 = vsel %vm541_vm1, -inf, %v1121_v30  ;;  %v1123_v41 = vsel %vm541_vm1, %v1121_v30, %v1122_v45  ;;  %v1028_v22 = vrot.slane %v4897_v57, 1 }
  0xd3   : > { %v1312_v20 = vsel %vm444_vm0, %v1310_v38, %v1311_v54  ;;  %v1390_v19 = vsel %vm444_vm0, %v1311_v54, -inf  ;;  %v1408_v14 = vsel %vm541_vm1, %v1406_v52, %v1407_v21  ;;  %v1216_v58 = vmax.f32 %v1027_v55, %v1199_v27 }
  0xd4   : > { %v1502_v3 = vmax.f32 %v1312_v20, %v1486_v37  ;;  %v1503_v16 = vmax.f32 %v1390_v19, %v1408_v14  ;;  %v1217_v46 = vmax.f32 %v1103_v49, %v1123_v41  ;;  %v1124_v18 = vrot.slane %v4897_v57, 7 }
  0xd5   : > { %v1125_v2 = vrot.slane %v4524_v6, 7  ;;  %v1248_v7 = vmax.f32 %v4879_v32, %v1216_v58  ;;  %v1030_v28 = vsel %vm444_vm0, %v1028_v22, %v1029_v24  ;;  %v302_v12 = vmax.f32 %v4429_v29, %v4341_v53 }
  0xd6   : > { %v1534_v23 = vmax.f32 %v1246_v9, %v1502_v3  ;;  %v1535_v10 = vmax.f32 %v1247_v60, %v1503_v16  ;;  %v1249_v34 = vmax.f32 %v4884_v35, %v1217_v46  ;;  %v1200_v26 = vsel %vm541_vm1, -inf, %v1124_v18 }
  0xd7   : > { %v1126_v44 = vsel %vm541_vm1, %v1124_v18, %v1125_v2  ;;  %v1313_v38 = vrot.slane %v1248_v7, 1  ;;  %v1409_v60 = vrot.slane %v1248_v7, 7  ;;  %v1218_v27 = vmax.f32 %v1030_v28, %v1200_v26 }
  0xd8   : > { %v1599_v15 = vrot.slane %v1534_v23, 2  ;;  %v1600_v5 = vrot.slane %v1535_v10, 2  ;;  %v1696_v40 = vrot.slane %v1534_v23, 6  ;;  %v1697_v17 = vrot.slane %v1535_v10, 6 }
  0xd9   : > { %v1314_v9 = vrot.slane %v1249_v34, 1  ;;  %v1410_v52 = vrot.slane %v1249_v34, 7  ;;  %v1487_v49 = vsel %vm541_vm1, -inf, %v1409_v60  ;;  %v1219_v20 = vmax.f32 %v1104_v43, %v1126_v44 }
  0xda   : > { %v1601_v1 = vsel %vm1598_vm2, %v1599_v15, %v1600_v5  ;;  %v1776_v30 = vsel %vm1695_vm3, -inf, %v1696_v40  ;;  %v1679_v24 = vsel %vm1598_vm2, %v1600_v5, -inf  ;;  %v1698_v54 = vsel %vm1695_vm3, %v1696_v40, %v1697_v17 }
  0xdb   : > { %v1792_v21 = vmax.f32 %v1601_v1, %v1776_v30  ;;  %v1793_v45 = vmax.f32 %v1679_v24, %v1698_v54  ;;  %v1315_v53 = vsel %vm444_vm0, %v1313_v38, %v1314_v9  ;;  %v1391_v37 = vsel %vm444_vm0, %v1314_v9, -inf }
  0xdc   : > { %v1411_v55 = vsel %vm541_vm1, %v1409_v60, %v1410_v52  ;;  %v1504_v41 = vmax.f32 %v1315_v53, %v1487_v49  ;;  %v1250_v16 = vmax.f32 %v4897_v57, %v1218_v27  ;;  %v1251_v58 = vmax.f32 %v4524_v6, %v1219_v20 }
  0xdd   : > { %v1824_v19 = vmax.f32 %v1534_v23, %v1792_v21  ;;  %v1825_v14 = vmax.f32 %v1535_v10, %v1793_v45  ;;  %v1505_v3 = vmax.f32 %v1391_v37, %v1411_v55  ;;  %v4929_v46 = vmax.f32 %v4407_v13, %v302_v12 }
  0xde   : > { %v1032_v22 = vrot.slane %v4531_v36, 1  ;;  %v1536_v18 = vmax.f32 %v1248_v7, %v1504_v41  ;;  %v1128_v28 = vrot.slane %v4531_v36, 7  ;;  %v304_v43 = vmax.f32 %v4436_v39, %v4364_v59 }
  0xdf   : > { %3809 = vst [vmem:[%s4199_s5 + $0x200] sm:$0xff] %v1824_v19  ;;  %3810 = vst [vmem:[%s4199_s5 + $0x208] sm:$0xff] %v1825_v14  ;;  %v1537_v2 = vmax.f32 %v1249_v34, %v1505_v3  ;;  %v1316_v23 = vrot.slane %v1250_v16, 1  ;;  %v1317_v10 = vrot.slane %v1251_v58, 1  ;;  %v1412_v44 = vrot.slane %v1250_v16, 7 }
  0xe0   : > { %v1413_v26 = vrot.slane %v1251_v58, 7  ;;  %v1602_v15 = vrot.slane %v1536_v18, 2  ;;  %v1699_v40 = vrot.slane %v1536_v18, 6  ;;  %v1031_v21 = vrot.slane %v4929_v46, 1 }
  0xe1   : > { %v1603_v5 = vrot.slane %v1537_v2, 2  ;;  %v1700_v12 = vrot.slane %v1537_v2, 6  ;;  %v1318_v17 = vsel %vm444_vm0, %v1316_v23, %v1317_v10  ;;  %v1392_v38 = vsel %vm444_vm0, %v1317_v10, -inf }
  0xe2   : > { %v1414_v7 = vsel %vm541_vm1, %v1412_v44, %v1413_v26  ;;  %v1488_v34 = vsel %vm541_vm1, -inf, %v1412_v44  ;;  %v1777_v59 = vsel %vm1695_vm3, -inf, %v1699_v40  ;;  %v1105_v45 = vsel %vm444_vm0, %v1032_v22, -inf }
  0xe3   : > { %v1604_v9 = vsel %vm1598_vm2, %v1602_v15, %v1603_v5  ;;  %v1680_v60 = vsel %vm1598_vm2, %v1603_v5, -inf  ;;  %v1701_v52 = vsel %vm1695_vm3, %v1699_v40, %v1700_v12  ;;  %v1506_v24 = vmax.f32 %v1318_v17, %v1488_v34 }
  0xe4   : > { %v1794_v1 = vmax.f32 %v1604_v9, %v1777_v59  ;;  %v1795_v30 = vmax.f32 %v1680_v60, %v1701_v52  ;;  %v1507_v54 = vmax.f32 %v1392_v38, %v1414_v7  ;;  %v1127_v53 = vrot.slane %v4929_v46, 7 }
  0xe5   : > { %v4949_v37 = vmax.f32 %v4423_v25, %v304_v43  ;;  %v1538_v27 = vmax.f32 %v1250_v16, %v1506_v24  ;;  %v1033_v19 = vsel %vm444_vm0, %v1031_v21, %v1032_v22  ;;  %v1131_v34 = vrot.slane %v4457_v61, 7 }
  0xe6   : > { %v1826_v55 = vmax.f32 %v1536_v18, %v1794_v1  ;;  %v1827_v49 = vmax.f32 %v1537_v2, %v1795_v30  ;;  %v1539_v20 = vmax.f32 %v1251_v58, %v1507_v54  ;;  %v1129_v14 = vsel %vm541_vm1, %v1127_v53, %v1128_v28 }
  0xe7   : > { %v1201_v41 = vsel %vm541_vm1, -inf, %v1127_v53  ;;  %v1034_v3 = vrot.slane %v4949_v37, 1  ;;  %v1605_v23 = vrot.slane %v1538_v27, 2  ;;  %v1702_v44 = vrot.slane %v1538_v27, 6 }
  0xe8   : > { %3811 = vst [vmem:[%s4199_s5 + $0x210] sm:$0xff] %v1826_v55  ;;  %3812 = vst [vmem:[%s4199_s5 + $0x218] sm:$0xff] %v1827_v49  ;;  %v1606_v10 = vrot.slane %v1539_v20, 2  ;;  %v1703_v26 = vrot.slane %v1539_v20, 6  ;;  %v1220_v43 = vmax.f32 %v1033_v19, %v1201_v41  ;;  %v1221_v15 = vmax.f32 %v1105_v45, %v1129_v14 }
  0xe9   : > { %v1035_v18 = vrot.slane %v4457_v61, 1  ;;  %v1130_v16 = vrot.slane %v4949_v37, 7  ;;  %v1778_v22 = vsel %vm1695_vm3, -inf, %v1702_v44  ;;  %v306_v49 = vmax.f32 %v4433_v33, %v4407_v13 }
  0xea   : > { %v1607_v58 = vsel %vm1598_vm2, %v1605_v23, %v1606_v10  ;;  %v1681_v2 = vsel %vm1598_vm2, %v1606_v10, -inf  ;;  %v1704_v28 = vsel %vm1695_vm3, %v1702_v44, %v1703_v26  ;;  %v1252_v12 = vmax.f32 %v4929_v46, %v1220_v43 }
  0xeb   : > { %v1796_v5 = vmax.f32 %v1607_v58, %v1778_v22  ;;  %v1797_v40 = vmax.f32 %v1681_v2, %v1704_v28  ;;  %v1253_v17 = vmax.f32 %v4531_v36, %v1221_v15  ;;  %v1036_v38 = vsel %vm444_vm0, %v1034_v3, %v1035_v18 }
  0xec   : > { %v1106_v7 = vsel %vm444_vm0, %v1035_v18, -inf  ;;  %v1202_v9 = vsel %vm541_vm1, -inf, %v1130_v16  ;;  %v1319_v52 = vrot.slane %v1252_v12, 1  ;;  %v1415_v30 = vrot.slane %v1252_v12, 7 }
  0xed   : > { %v1828_v59 = vmax.f32 %v1538_v27, %v1796_v5  ;;  %v1829_v60 = vmax.f32 %v1539_v20, %v1797_v40  ;;  %v1320_v1 = vrot.slane %v1253_v17, 1  ;;  %v1416_v24 = vrot.slane %v1253_v17, 7 }
  0xee   : > { %v1132_v54 = vsel %vm541_vm1, %v1130_v16, %v1131_v34  ;;  %v1222_v21 = vmax.f32 %v1036_v38, %v1202_v9  ;;  %v1489_v20 = vsel %vm541_vm1, -inf, %v1415_v30  ;;  %v1038_v14 = vrot.slane %v4464_v4, 1 }
  0xef   : > { %3813 = vst [vmem:[%s4199_s5 + $0x220] sm:$0xff] %v1828_v59  ;;  %3814 = vst [vmem:[%s4199_s5 + $0x228] sm:$0xff] %v1829_v60  ;;  %v1321_v45 = vsel %vm444_vm0, %v1319_v52, %v1320_v1  ;;  %v1393_v53 = vsel %vm444_vm0, %v1320_v1, -inf  ;;  %v1223_v55 = vmax.f32 %v1106_v7, %v1132_v54  ;;  %v1417_v27 = vsel %vm541_vm1, %v1415_v30, %v1416_v24 }
  0xf0   : > { %v1254_v19 = vmax.f32 %v4949_v37, %v1222_v21  ;;  %v1508_v41 = vmax.f32 %v1321_v45, %v1489_v20  ;;  %v1509_v3 = vmax.f32 %v1393_v53, %v1417_v27  ;;  %v4982_v10 = vmax.f32 %v4429_v29, %v306_v49  ;;  %v5973_v49 = vld [vmem:[#allocation6_spill] sm:$0xff] }
  0xf1   : > { %v1255_v23 = vmax.f32 %v4457_v61, %v1223_v55  ;;  %v1107_v43 = vsel %vm444_vm0, %v1038_v14, -inf  ;;  %v1134_v13 = vrot.slane %v4464_v4, 7  ;;  %v308_v5 = vmax.f32 %v4459_v62, %v4423_v25 }
  0xf2   : > { %v1322_v44 = vrot.slane %v1254_v19, 1  ;;  %v1418_v26 = vrot.slane %v1254_v19, 7  ;;  %v1540_v15 = vmax.f32 %v1252_v12, %v1508_v41  ;;  %v1541_v18 = vmax.f32 %v1253_v17, %v1509_v3 }
  0xf3   : > { %v1323_v16 = vrot.slane %v1255_v23, 1  ;;  %v1419_v58 = vrot.slane %v1255_v23, 7  ;;  %v1037_v2 = vrot.slane %v4982_v10, 1  ;;  %v1133_v28 = vrot.slane %v4982_v10, 7 }
  0xf4   : > { %v1490_v22 = vsel %vm541_vm1, -inf, %v1418_v26  ;;  %v1608_v40 = vrot.slane %v1540_v15, 2  ;;  %v1609_v38 = vrot.slane %v1541_v18, 2  ;;  %v1705_v7 = vrot.slane %v1540_v15, 6 }
  0xf5   : > { %v1706_v34 = vrot.slane %v1541_v18, 6  ;;  %v1324_v9 = vsel %vm444_vm0, %v1322_v44, %v1323_v16  ;;  %v1394_v12 = vsel %vm444_vm0, %v1323_v16, -inf  ;;  %v1420_v17 = vsel %vm541_vm1, %v1418_v26, %v1419_v58 }
  0xf6   : > { %v1039_v59 = vsel %vm444_vm0, %v1037_v2, %v1038_v14  ;;  %v1610_v60 = vsel %vm1598_vm2, %v1608_v40, %v1609_v38  ;;  %v1779_v52 = vsel %vm1695_vm3, -inf, %v1705_v7  ;;  %v1682_v1 = vsel %vm1598_vm2, %v1609_v38, -inf }
  0xf7   : > { %v1707_v25 = vsel %vm1695_vm3, %v1705_v7, %v1706_v34  ;;  %v1798_v30 = vmax.f32 %v1610_v60, %v1779_v52  ;;  %v1510_v54 = vmax.f32 %v1324_v9, %v1490_v22  ;;  %v1511_v21 = vmax.f32 %v1394_v12, %v1420_v17 }
  0xf8   : > { %v1799_v24 = vmax.f32 %v1682_v1, %v1707_v25  ;;  %v1135_v45 = vsel %vm541_vm1, %v1133_v28, %v1134_v13  ;;  %v1203_v53 = vsel %vm541_vm1, -inf, %v1133_v28  ;;  %v5002_v55 = vmax.f32 %v4436_v39, %v308_v5 }
  0xf9   : > { %v1041_v27 = vrot.slane %v5973_v49, 1  ;;  %v1830_v20 = vmax.f32 %v1540_v15, %v1798_v30  ;;  %v1542_v41 = vmax.f32 %v1254_v19, %v1510_v54  ;;  %v1543_v3 = vmax.f32 %v1255_v23, %v1511_v21 }
  0xfa   : > { %v1831_v14 = vmax.f32 %v1541_v18, %v1799_v24  ;;  %v1224_v44 = vmax.f32 %v1039_v59, %v1203_v53  ;;  %v1225_v26 = vmax.f32 %v1107_v43, %v1135_v45  ;;  %v1040_v16 = vrot.slane %v5002_v55, 1 }
  0xfb   : > { %v1108_v58 = vsel %vm444_vm0, %v1041_v27, -inf  ;;  %3815 = vst [vmem:[%s4199_s5 + $0x230] sm:$0xff] %v1830_v20  ;;  %v1611_v13 = vrot.slane %v1542_v41, 2  ;;  %v1612_v22 = vrot.slane %v1543_v3, 2  ;;  %v1708_v2 = vrot.slane %v1542_v41, 6 }
  0xfc   : > { %3816 = vst [vmem:[%s4199_s5 + $0x238] sm:$0xff] %v1831_v14  ;;  %v1709_v28 = vrot.slane %v1543_v3, 6  ;;  %v1256_v5 = vmax.f32 %v4982_v10, %v1224_v44  ;;  %v1257_v40 = vmax.f32 %v4464_v4, %v1225_v26  ;;  %v1042_v15 = vsel %vm444_vm0, %v1040_v16, %v1041_v27  ;;  %v5974_v44 = vld [vmem:[#allocation7_spill] sm:$0xff] }
  0xfd   : > { %v1136_v19 = vrot.slane %v5002_v55, 7  ;;  %v1613_v23 = vsel %vm1598_vm2, %v1611_v13, %v1612_v22  ;;  %v1780_v43 = vsel %vm1695_vm3, -inf, %v1708_v2  ;;  %v1683_v18 = vsel %vm1598_vm2, %v1612_v22, -inf }
  0xfe   : > { %v1710_v38 = vsel %vm1695_vm3, %v1708_v2, %v1709_v28  ;;  %v1800_v7 = vmax.f32 %v1613_v23, %v1780_v43  ;;  %v1325_v9 = vrot.slane %v1256_v5, 1  ;;  %v1326_v12 = vrot.slane %v1257_v40, 1 }
  0xff   : > { %v1801_v34 = vmax.f32 %v1683_v18, %v1710_v38  ;;  %v1421_v17 = vrot.slane %v1256_v5, 7  ;;  %v1422_v59 = vrot.slane %v1257_v40, 7  ;;  %v1137_v60 = vrot.slane %v5973_v49, 7 }
 0x100   : > { %v1204_v52 = vsel %vm541_vm1, -inf, %v1136_v19  ;;  %v1832_v1 = vmax.f32 %v1542_v41, %v1800_v7  ;;  %v1327_v30 = vsel %vm444_vm0, %v1325_v9, %v1326_v12  ;;  %v1395_v24 = vsel %vm444_vm0, %v1326_v12, -inf }
 0x101   : > { %v1833_v25 = vmax.f32 %v1543_v3, %v1801_v34  ;;  %v1423_v54 = vsel %vm541_vm1, %v1421_v17, %v1422_v59  ;;  %v1491_v21 = vsel %vm541_vm1, -inf, %v1421_v17  ;;  %v1138_v45 = vsel %vm541_vm1, %v1136_v19, %v1137_v60 }
 0x102   : > { %v1226_v53 = vmax.f32 %v1042_v15, %v1204_v52  ;;  %3817 = vst [vmem:[%s4199_s5 + $0x240] sm:$0xff] %v1832_v1  ;;  %v1512_v27 = vmax.f32 %v1327_v30, %v1491_v21  ;;  %v1513_v20 = vmax.f32 %v1395_v24, %v1423_v54  ;;  %v1227_v14 = vmax.f32 %v1108_v58, %v1138_v45 }
 0x103   : > { %3818 = vst [vmem:[%s4199_s5 + $0x248] sm:$0xff] %v1833_v25  ;;  %v310_v41 = vmax.f32 %v4474_v11, %v4429_v29  ;;  %v1044_v26 = vrot.slane %v5974_v44, 1  ;;  %v1140_v16 = vrot.slane %v5974_v44, 7  ;;  %v312_v13 = vmax.f32 %v4481_v42, %v4436_v39 }
 0x104   : > { %v1258_v3 = vmax.f32 %v5002_v55, %v1226_v53  ;;  %v1544_v22 = vmax.f32 %v1256_v5, %v1512_v27  ;;  %v1545_v2 = vmax.f32 %v1257_v40, %v1513_v20  ;;  %v1259_v28 = vmax.f32 %v5973_v49, %v1227_v14 }
 0x105   : > { %v5035_v15 = vmax.f32 %v4433_v33, %v310_v41  ;;  %v1109_v29 = vsel %vm444_vm0, %v1044_v26, -inf  ;;  %v5039_v23 = vmax.f32 %v4459_v62, %v312_v13 }
 0x106   : > { %v1328_v58 = vrot.slane %v1258_v3, 1  ;;  %v1424_v19 = vrot.slane %v1258_v3, 7  ;;  %v1614_v43 = vrot.slane %v1544_v22, 2  ;;  %v1615_v18 = vrot.slane %v1545_v2, 2 }
 0x107   : > { %v1711_v38 = vrot.slane %v1544_v22, 6  ;;  %v1712_v7 = vrot.slane %v1545_v2, 6  ;;  %v1329_v34 = vrot.slane %v1259_v28, 1  ;;  %v1425_v39 = vrot.slane %v1259_v28, 7 }
 0x108   : > { %v1492_v5 = vsel %vm541_vm1, -inf, %v1424_v19  ;;  %v1043_v40 = vrot.slane %v5035_v15, 1  ;;  %v1616_v9 = vsel %vm1598_vm2, %v1614_v43, %v1615_v18  ;;  %v1684_v17 = vsel %vm1598_vm2, %v1615_v18, -inf }
 0x109   : > { %v1781_v12 = vsel %vm1695_vm3, -inf, %v1711_v38  ;;  %v1713_v59 = vsel %vm1695_vm3, %v1711_v38, %v1712_v7  ;;  %v1330_v1 = vsel %vm444_vm0, %v1328_v58, %v1329_v34  ;;  %v1396_v25 = vsel %vm444_vm0, %v1329_v34, -inf  ;;  %v5975_v58 = vld [vmem:[#allocation8_spill] sm:$0xff] }
 0x10a   : > { %v1802_v60 = vmax.f32 %v1616_v9, %v1781_v12  ;;  %v1803_v52 = vmax.f32 %v1684_v17, %v1713_v59  ;;  %v1426_v30 = vsel %vm541_vm1, %v1424_v19, %v1425_v39  ;;  %v1514_v24 = vmax.f32 %v1330_v1, %v1492_v5 }
 0x10b   : > { %v1045_v54 = vsel %vm444_vm0, %v1043_v40, %v1044_v26  ;;  %v1139_v21 = vrot.slane %v5035_v15, 7  ;;  %v1515_v27 = vmax.f32 %v1396_v25, %v1426_v30  ;;  %v1046_v20 = vrot.slane %v5039_v23, 1 }
 0x10c   : > { %v1834_v45 = vmax.f32 %v1544_v22, %v1802_v60  ;;  %v1835_v53 = vmax.f32 %v1545_v2, %v1803_v52  ;;  %v1546_v14 = vmax.f32 %v1258_v3, %v1514_v24  ;;  %v1047_v43 = vrot.slane %v5975_v58, 1 }
 0x10d   : > { %v1141_v41 = vsel %vm541_vm1, %v1139_v21, %v1140_v16  ;;  %v1205_v13 = vsel %vm541_vm1, -inf, %v1139_v21  ;;  %v1547_v19 = vmax.f32 %v1259_v28, %v1515_v27  ;;  %v1142_v26 = vrot.slane %v5039_v23, 7 }
 0x10e   : > { %3819 = vst [vmem:[%s4199_s5 + $0x250] sm:$0xff] %v1834_v45  ;;  %3820 = vst [vmem:[%s4199_s5 + $0x258] sm:$0xff] %v1835_v53  ;;  %v1228_v18 = vmax.f32 %v1045_v54, %v1205_v13  ;;  %v1229_v38 = vmax.f32 %v1109_v29, %v1141_v41  ;;  %v1617_v7 = vrot.slane %v1546_v14, 2  ;;  %v1714_v22 = vrot.slane %v1546_v14, 6 }
 0x10f   : > { %v1048_v2 = vsel %vm444_vm0, %v1046_v20, %v1047_v43  ;;  %v1110_v34 = vsel %vm444_vm0, %v1047_v43, -inf  ;;  %v1618_v3 = vrot.slane %v1547_v19, 2  ;;  %v1715_v39 = vrot.slane %v1547_v19, 6 }
 0x110   : > { %v1260_v16 = vmax.f32 %v5035_v15, %v1228_v18  ;;  %v1261_v5 = vmax.f32 %v5974_v44, %v1229_v38  ;;  %v1782_v40 = vsel %vm1695_vm3, -inf, %v1714_v22  ;;  %v1143_v28 = vrot.slane %v5975_v58, 7 }
 0x111   : > { %v1206_v29 = vsel %vm541_vm1, -inf, %v1142_v26  ;;  %v314_v9 = vmax.f32 %v4503_v50, %v4433_v33  ;;  %v1619_v12 = vsel %vm1598_vm2, %v1617_v7, %v1618_v3  ;;  %v1685_v17 = vsel %vm1598_vm2, %v1618_v3, -inf }
 0x112   : > { %v1716_v59 = vsel %vm1695_vm3, %v1714_v22, %v1715_v39  ;;  %v1331_v60 = vrot.slane %v1260_v16, 1  ;;  %v1804_v52 = vmax.f32 %v1619_v12, %v1782_v40  ;;  %v1332_v25 = vrot.slane %v1261_v5, 1  ;;  %v5976_v22 = vld [vmem:[#allocation9_spill] sm:$0xff] }
 0x113   : > { %v1805_v1 = vmax.f32 %v1685_v17, %v1716_v59  ;;  %v1427_v30 = vrot.slane %v1260_v16, 7  ;;  %v1428_v24 = vrot.slane %v1261_v5, 7  ;;  %v1144_v54 = vsel %vm541_vm1, %v1142_v26, %v1143_v28 }
 0x114   : > { %v1230_v21 = vmax.f32 %v1048_v2, %v1206_v29  ;;  %v5073_v45 = vmax.f32 %v4474_v11, %v314_v9  ;;  %v1836_v33 = vmax.f32 %v1546_v14, %v1804_v52  ;;  %v1333_v27 = vsel %vm444_vm0, %v1331_v60, %v1332_v25 }
 0x115   : > { %v1837_v53 = vmax.f32 %v1547_v19, %v1805_v1  ;;  %v1397_v20 = vsel %vm444_vm0, %v1332_v25, -inf  ;;  %v1429_v41 = vsel %vm541_vm1, %v1427_v30, %v1428_v24  ;;  %v1493_v13 = vsel %vm541_vm1, -inf, %v1427_v30 }
 0x116   : > { %v1231_v43 = vmax.f32 %v1110_v34, %v1144_v54  ;;  %v1262_v18 = vmax.f32 %v5039_v23, %v1230_v21  ;;  %3821 = vst [vmem:[%s4199_s5 + $0x260] sm:$0xff] %v1836_v33  ;;  %v1516_v38 = vmax.f32 %v1333_v27, %v1493_v13  ;;  %v1517_v26 = vmax.f32 %v1397_v20, %v1429_v41 }
 0x117   : > { %3822 = vst [vmem:[%s4199_s5 + $0x268] sm:$0xff] %v1837_v53  ;;  %v1049_v7 = vrot.slane %v5073_v45, 1  ;;  %v1050_v14 = vrot.slane %v5976_v22, 1  ;;  %v1145_v39 = vrot.slane %v5073_v45, 7  ;;  %v1146_v59 = vrot.slane %v5976_v22, 7 }
 0x118   : > { %v1263_v19 = vmax.f32 %v5975_v58, %v1231_v43  ;;  %v1334_v2 = vrot.slane %v1262_v18, 1  ;;  %v1430_v3 = vrot.slane %v1262_v18, 7  ;;  %v1548_v40 = vmax.f32 %v1260_v16, %v1516_v38 }
 0x119   : > { %v1549_v28 = vmax.f32 %v1261_v5, %v1517_v26  ;;  %v1051_v34 = vsel %vm444_vm0, %v1049_v7, %v1050_v14  ;;  %v1111_v29 = vsel %vm444_vm0, %v1050_v14, -inf  ;;  %v1147_v5 = vsel %vm541_vm1, %v1145_v39, %v1146_v59  ;;  %v5977_v7 = vld [vmem:[#allocation10_spill] sm:$0xff] }
 0x11a   : > { %v1335_v9 = vrot.slane %v1263_v19, 1  ;;  %v1431_v12 = vrot.slane %v1263_v19, 7  ;;  %v1494_v17 = vsel %vm541_vm1, -inf, %v1430_v3  ;;  %v1620_v60 = vrot.slane %v1548_v40, 2 }
 0x11b   : > { %v1621_v52 = vrot.slane %v1549_v28, 2  ;;  %v1717_v1 = vrot.slane %v1548_v40, 6  ;;  %v1718_v25 = vrot.slane %v1549_v28, 6  ;;  %v1207_v43 = vsel %vm541_vm1, -inf, %v1145_v39 }
 0x11c   : > { %v1336_v30 = vsel %vm444_vm0, %v1334_v2, %v1335_v9  ;;  %v1398_v24 = vsel %vm444_vm0, %v1335_v9, -inf  ;;  %v1432_v16 = vsel %vm541_vm1, %v1430_v3, %v1431_v12  ;;  %v1233_v38 = vmax.f32 %v1111_v29, %v1147_v5 }
 0x11d   : > { %v1622_v54 = vsel %vm1598_vm2, %v1620_v60, %v1621_v52  ;;  %v1783_v21 = vsel %vm1695_vm3, -inf, %v1717_v1  ;;  %v1686_v33 = vsel %vm1598_vm2, %v1621_v52, -inf  ;;  %v1719_v53 = vsel %vm1695_vm3, %v1717_v1, %v1718_v25 }
 0x11e   : > { %v1806_v27 = vmax.f32 %v1622_v54, %v1783_v21  ;;  %v1807_v20 = vmax.f32 %v1686_v33, %v1719_v53  ;;  %v1518_v41 = vmax.f32 %v1336_v30, %v1494_v17  ;;  %v1519_v13 = vmax.f32 %v1398_v24, %v1432_v16 }
 0x11f   : > { %v316_v26 = vmax.f32 %v4510_v48, %v4459_v62  ;;  %v1053_v14 = vrot.slane %v5977_v7, 1  ;;  %v1232_v59 = vmax.f32 %v1051_v34, %v1207_v43  ;;  %v1265_v60 = vmax.f32 %v5976_v22, %v1233_v38 }
 0x120   : > { %v1838_v2 = vmax.f32 %v1548_v40, %v1806_v27  ;;  %v1839_v3 = vmax.f32 %v1549_v28, %v1807_v20  ;;  %v1550_v9 = vmax.f32 %v1262_v18, %v1518_v41  ;;  %v1551_v12 = vmax.f32 %v1263_v19, %v1519_v13 }
 0x121   : > { %v5104_v52 = vmax.f32 %v4481_v42, %v316_v26  ;;  %v1112_v17 = vsel %vm444_vm0, %v1053_v14, -inf  ;;  %v1264_v48 = vmax.f32 %v5073_v45, %v1232_v59  ;;  %v1338_v40 = vrot.slane %v1265_v60, 1 }
 0x122   : > { %3823 = vst [vmem:[%s4199_s5 + $0x270] sm:$0xff] %v1838_v2  ;;  %3824 = vst [vmem:[%s4199_s5 + $0x278] sm:$0xff] %v1839_v3  ;;  %v1623_v39 = vrot.slane %v1550_v9, 2  ;;  %v1624_v29 = vrot.slane %v1551_v12, 2  ;;  %v1720_v1 = vrot.slane %v1550_v9, 6  ;;  %v1721_v62 = vrot.slane %v1551_v12, 6 }
 0x123   : > { %v1434_v28 = vrot.slane %v1265_v60, 7  ;;  %v1052_v18 = vrot.slane %v5104_v52, 1  ;;  %v1337_v16 = vrot.slane %v1264_v48, 1  ;;  %v1399_v5 = vsel %vm444_vm0, %v1338_v40, -inf }
 0x124   : > { %v1625_v19 = vsel %vm1598_vm2, %v1623_v39, %v1624_v29  ;;  %v1784_v34 = vsel %vm1695_vm3, -inf, %v1720_v1  ;;  %v1687_v42 = vsel %vm1598_vm2, %v1624_v29, -inf  ;;  %v1722_v25 = vsel %vm1695_vm3, %v1720_v1, %v1721_v62 }
 0x125   : > { %v1808_v30 = vmax.f32 %v1625_v19, %v1784_v34  ;;  %v1809_v24 = vmax.f32 %v1687_v42, %v1722_v25  ;;  %v1433_v54 = vrot.slane %v1264_v48, 7  ;;  %v1054_v21 = vsel %vm444_vm0, %v1052_v18, %v1053_v14 }
 0x126   : > { %v1148_v33 = vrot.slane %v5104_v52, 7  ;;  %v1149_v53 = vrot.slane %v5977_v7, 7  ;;  %v1339_v41 = vsel %vm444_vm0, %v1337_v16, %v1338_v40  ;;  %v5978_v13 = vmax.f32 %v4533_v56, %v4474_v11 }
 0x127   : > { %v1840_v27 = vmax.f32 %v1550_v9, %v1808_v30  ;;  %v1841_v20 = vmax.f32 %v1551_v12, %v1809_v24  ;;  %v1435_v38 = vsel %vm541_vm1, %v1433_v54, %v1434_v28  ;;  %v1495_v26 = vsel %vm541_vm1, -inf, %v1433_v54 }
 0x128   : > { %v5124_v43 = vmax.f32 %v4503_v50, %v5978_v13  ;;  %v1150_v14 = vsel %vm541_vm1, %v1148_v33, %v1149_v53  ;;  %v1208_v2 = vsel %vm541_vm1, -inf, %v1148_v33  ;;  %v1520_v3 = vmax.f32 %v1339_v41, %v1495_v26 }
 0x129   : > { %3825 = vst [vmem:[%s4199_s5 + $0x280] sm:$0xff] %v1840_v27  ;;  %3826 = vst [vmem:[%s4199_s5 + $0x288] sm:$0xff] %v1841_v20  ;;  %v1521_v9 = vmax.f32 %v1399_v5, %v1435_v38  ;;  %v1234_v12 = vmax.f32 %v1054_v21, %v1208_v2  ;;  %v1235_v59 = vmax.f32 %v1112_v17, %v1150_v14  ;;  %v1056_v11 = vrot.slane %v4606_v47, 1 }
 0x12a   : > { %v1055_v39 = vrot.slane %v5124_v43, 1  ;;  %v1151_v50 = vrot.slane %v5124_v43, 7  ;;  %v1152_v56 = vrot.slane %v4606_v47, 7  ;;  %v1552_v29 = vmax.f32 %v1264_v48, %v1520_v3 }
 0x12b   : > { %v1553_v1 = vmax.f32 %v1265_v60, %v1521_v9  ;;  %v1266_v62 = vmax.f32 %v5104_v52, %v1234_v12  ;;  %v1267_v40 = vmax.f32 %v5977_v7, %v1235_v59  ;;  %v1113_v18 = vsel %vm444_vm0, %v1056_v11, -inf }
 0x12c   : > { %v1057_v28 = vsel %vm444_vm0, %v1055_v39, %v1056_v11  ;;  %v1153_v17 = vsel %vm541_vm1, %v1151_v50, %v1152_v56  ;;  %v1209_v19 = vsel %vm541_vm1, -inf, %v1151_v50  ;;  %v1626_v34 = vrot.slane %v1552_v29, 2  ;;  %v5979_v11 = vld [vmem:[#allocation15_spill] sm:$0xff]  ;;  %v5980_v56 = vld [vmem:[#allocation16_spill] sm:$0xff] }
 0x12d   : > { %v1627_v42 = vrot.slane %v1553_v1, 2  ;;  %v1723_v25 = vrot.slane %v1552_v29, 6  ;;  %v1724_v30 = vrot.slane %v1553_v1, 6  ;;  %v1340_v24 = vrot.slane %v1266_v62, 1 }
 0x12e   : > { %v1341_v16 = vrot.slane %v1267_v40, 1  ;;  %v1436_v48 = vrot.slane %v1266_v62, 7  ;;  %v1437_v60 = vrot.slane %v1267_v40, 7  ;;  %v1236_v26 = vmax.f32 %v1057_v28, %v1209_v19 }
 0x12f   : > { %v1628_v5 = vsel %vm1598_vm2, %v1626_v34, %v1627_v42  ;;  %v1785_v54 = vsel %vm1695_vm3, -inf, %v1723_v25  ;;  %v1688_v21 = vsel %vm1598_vm2, %v1627_v42, -inf  ;;  %v1725_v33 = vsel %vm1695_vm3, %v1723_v25, %v1724_v30 }
 0x130   : > { %v1810_v53 = vmax.f32 %v1628_v5, %v1785_v54  ;;  %v1811_v27 = vmax.f32 %v1688_v21, %v1725_v33  ;;  %v1342_v20 = vsel %vm444_vm0, %v1340_v24, %v1341_v16  ;;  %v1400_v41 = vsel %vm444_vm0, %v1341_v16, -inf }
 0x131   : > { %v1438_v13 = vsel %vm541_vm1, %v1436_v48, %v1437_v60  ;;  %v1496_v38 = vsel %vm541_vm1, -inf, %v1436_v48  ;;  %v1237_v14 = vmax.f32 %v1113_v18, %v1153_v17  ;;  %v1268_v59 = vmax.f32 %v5124_v43, %v1236_v26 }
 0x132   : > { %v1842_v2 = vmax.f32 %v1552_v29, %v1810_v53  ;;  %v1843_v3 = vmax.f32 %v1553_v1, %v1811_v27  ;;  %v1522_v9 = vmax.f32 %v1342_v20, %v1496_v38  ;;  %v1523_v12 = vmax.f32 %v1400_v41, %v1438_v13 }
 0x133   : > { %v1269_v39 = vmax.f32 %v4606_v47, %v1237_v14  ;;  %v1058_v50 = vrot.slane %v5979_v11, 1  ;;  %v1059_v34 = vrot.slane %v5980_v56, 1  ;;  %v1154_v30 = vrot.slane %v5979_v11, 7 }
 0x134   : > { %3827 = vst [vmem:[%s4199_s5 + $0x290] sm:$0xff] %v1842_v2  ;;  %3828 = vst [vmem:[%s4199_s5 + $0x298] sm:$0xff] %v1843_v3  ;;  %v1554_v42 = vmax.f32 %v1266_v62, %v1522_v9  ;;  %v1555_v25 = vmax.f32 %v1267_v40, %v1523_v12  ;;  %v1155_v28 = vrot.slane %v5980_v56, 7  ;;  %v1343_v29 = vrot.slane %v1268_v59, 1 }
 0x135   : > { %v1344_v1 = vrot.slane %v1269_v39, 1  ;;  %v1439_v18 = vrot.slane %v1268_v59, 7  ;;  %v1440_v17 = vrot.slane %v1269_v39, 7  ;;  %v1060_v38 = vsel %vm444_vm0, %v1058_v50, %v1059_v34 }
 0x136   : > { %v1629_v19 = vrot.slane %v1554_v42, 2  ;;  %v1630_v24 = vrot.slane %v1555_v25, 2  ;;  %v1726_v16 = vrot.slane %v1554_v42, 6  ;;  %v1727_v48 = vrot.slane %v1555_v25, 6 }
 0x137   : > { %v1345_v60 = vsel %vm444_vm0, %v1343_v29, %v1344_v1  ;;  %v1401_v5 = vsel %vm444_vm0, %v1344_v1, -inf  ;;  %v1441_v54 = vsel %vm541_vm1, %v1439_v18, %v1440_v17  ;;  %v1497_v62 = vsel %vm541_vm1, -inf, %v1439_v18  ;;  %v5981_v17 = vld [vmem:[#allocation12_spill] sm:$0xff] }
 0x138   : > { %v1631_v40 = vsel %vm1598_vm2, %v1629_v19, %v1630_v24  ;;  %v1786_v21 = vsel %vm1695_vm3, -inf, %v1726_v16  ;;  %v1689_v33 = vsel %vm1598_vm2, %v1630_v24, -inf  ;;  %v1728_v53 = vsel %vm1695_vm3, %v1726_v16, %v1727_v48 }
 0x139   : > { %v1812_v27 = vmax.f32 %v1631_v40, %v1786_v21  ;;  %v1813_v20 = vmax.f32 %v1689_v33, %v1728_v53  ;;  %v1524_v41 = vmax.f32 %v1345_v60, %v1497_v62  ;;  %v1525_v13 = vmax.f32 %v1401_v5, %v1441_v54 }
 0x13a   : > { %v1114_v26 = vsel %vm444_vm0, %v1059_v34, -inf  ;;  %v1156_v14 = vsel %vm541_vm1, %v1154_v30, %v1155_v28  ;;  %v1210_v2 = vsel %vm541_vm1, -inf, %v1154_v30  ;;  %v1061_v19 = vrot.slane %v5981_v17, 1 }
 0x13b   : > { %v1844_v3 = vmax.f32 %v1554_v42, %v1812_v27  ;;  %v1845_v9 = vmax.f32 %v1555_v25, %v1813_v20  ;;  %v1556_v12 = vmax.f32 %v1268_v59, %v1524_v41  ;;  %v1557_v29 = vmax.f32 %v1269_v39, %v1525_v13 }
 0x13c   : > { %v1238_v1 = vmax.f32 %v1060_v38, %v1210_v2  ;;  %v1239_v18 = vmax.f32 %v1114_v26, %v1156_v14  ;;  %v1062_v24 = vrot.slane %v4824_v51, 1  ;;  %v1157_v27 = vrot.slane %v5981_v17, 7 }
 0x13d   : > { %3829 = vst [vmem:[%s4199_s5 + $0x2a0] sm:$0xff] %v1844_v3  ;;  %3830 = vst [vmem:[%s4199_s5 + $0x2a8] sm:$0xff] %v1845_v9  ;;  %v1632_v16 = vrot.slane %v1556_v12, 2  ;;  %v1633_v50 = vrot.slane %v1557_v29, 2  ;;  %v1729_v48 = vrot.slane %v1556_v12, 6  ;;  %v1730_v34 = vrot.slane %v1557_v29, 6 }
 0x13e   : > { %v1270_v28 = vmax.f32 %v5979_v11, %v1238_v1  ;;  %v1271_v30 = vmax.f32 %v5980_v56, %v1239_v18  ;;  %v1063_v42 = vsel %vm444_vm0, %v1061_v19, %v1062_v24  ;;  %v1115_v59 = vsel %vm444_vm0, %v1062_v24, -inf }
 0x13f   : > { %v1634_v39 = vsel %vm1598_vm2, %v1632_v16, %v1633_v50  ;;  %v1787_v25 = vsel %vm1695_vm3, -inf, %v1729_v48  ;;  %v1690_v60 = vsel %vm1598_vm2, %v1633_v50, -inf  ;;  %v1731_v5 = vsel %vm1695_vm3, %v1729_v48, %v1730_v34  ;;  %v5983_v16 = vld [vmem:[#allocation14_spill] sm:$0xff] }
 0x140   : > { %v1814_v54 = vmax.f32 %v1634_v39, %v1787_v25  ;;  %v1815_v62 = vmax.f32 %v1690_v60, %v1731_v5  ;;  %v1346_v40 = vrot.slane %v1270_v28, 1  ;;  %v1347_v21 = vrot.slane %v1271_v30, 1 }
 0x141   : > { %v1442_v33 = vrot.slane %v1270_v28, 7  ;;  %v1443_v53 = vrot.slane %v1271_v30, 7  ;;  %v1158_v20 = vrot.slane %v4824_v51, 7  ;;  %v1211_v9 = vsel %vm541_vm1, -inf, %v1157_v27 }
 0x142   : > { %v1846_v41 = vmax.f32 %v1556_v12, %v1814_v54  ;;  %v1847_v13 = vmax.f32 %v1557_v29, %v1815_v62  ;;  %v1348_v38 = vsel %vm444_vm0, %v1346_v40, %v1347_v21  ;;  %v1402_v26 = vsel %vm444_vm0, %v1347_v21, -inf  ;;  %v5982_v12 = vld [vmem:[#allocation13_spill] sm:$0xff] }
 0x143   : > { %v1444_v14 = vsel %vm541_vm1, %v1442_v33, %v1443_v53  ;;  %v1498_v2 = vsel %vm541_vm1, -inf, %v1442_v33  ;;  %v1159_v3 = vsel %vm541_vm1, %v1157_v27, %v1158_v20  ;;  %v1240_v19 = vmax.f32 %v1063_v42, %v1211_v9 }
 0x144   : > { %3831 = vst [vmem:[%s4199_s5 + $0x2b0] sm:$0xff] %v1846_v41  ;;  %3832 = vst [vmem:[%s4199_s5 + $0x2b8] sm:$0xff] %v1847_v13  ;;  %v1526_v1 = vmax.f32 %v1348_v38, %v1498_v2  ;;  %v1527_v18 = vmax.f32 %v1402_v26, %v1444_v14  ;;  %v1241_v24 = vmax.f32 %v1115_v59, %v1159_v3  ;;  %v1064_v29 = vrot.slane %v5982_v12, 1 }
 0x145   : > { %v1065_v50 = vrot.slane %v5983_v16, 1  ;;  %v1160_v48 = vrot.slane %v5982_v12, 7  ;;  %v1161_v34 = vrot.slane %v5983_v16, 7  ;;  %v1272_v60 = vmax.f32 %v5981_v17, %v1240_v19 }
 0x146   : > { %v1558_v39 = vmax.f32 %v1270_v28, %v1526_v1  ;;  %v1559_v25 = vmax.f32 %v1271_v30, %v1527_v18  ;;  %v1273_v5 = vmax.f32 %v4824_v51, %v1241_v24 }
 0x147   : > { %v1066_v54 = vsel %vm444_vm0, %v1064_v29, %v1065_v50  ;;  %v1116_v62 = vsel %vm444_vm0, %v1065_v50, -inf  ;;  %v1162_v42 = vsel %vm541_vm1, %v1160_v48, %v1161_v34  ;;  %v1212_v59 = vsel %vm541_vm1, -inf, %v1160_v48 }
 0x148   : > { %v1635_v40 = vrot.slane %v1558_v39, 2  ;;  %v1636_v21 = vrot.slane %v1559_v25, 2  ;;  %v1732_v33 = vrot.slane %v1558_v39, 6  ;;  %v1733_v53 = vrot.slane %v1559_v25, 6 }
 0x149   : > { %v1349_v27 = vrot.slane %v1272_v60, 1  ;;  %v1350_v20 = vrot.slane %v1273_v5, 1  ;;  %v1445_v28 = vrot.slane %v1272_v60, 7  ;;  %v1446_v30 = vrot.slane %v1273_v5, 7 }
 0x14a   : > { %v1637_v41 = vsel %vm1598_vm2, %v1635_v40, %v1636_v21  ;;  %v1788_v13 = vsel %vm1695_vm3, -inf, %v1732_v33  ;;  %v1691_v38 = vsel %vm1598_vm2, %v1636_v21, -inf  ;;  %v1734_v26 = vsel %vm1695_vm3, %v1732_v33, %v1733_v53  ;;  %v5984_v33 = vld [vmem:[#allocation11_spill] sm:$0xff] }
 0x14b   : > { %v1816_v14 = vmax.f32 %v1637_v41, %v1788_v13  ;;  %v1817_v2 = vmax.f32 %v1691_v38, %v1734_v26  ;;  %v1351_v3 = vsel %vm444_vm0, %v1349_v27, %v1350_v20  ;;  %v1403_v9 = vsel %vm444_vm0, %v1350_v20, -inf }
 0x14c   : > { %v1447_v1 = vsel %vm541_vm1, %v1445_v28, %v1446_v30  ;;  %v1499_v18 = vsel %vm541_vm1, -inf, %v1445_v28  ;;  %v1242_v19 = vmax.f32 %v1066_v54, %v1212_v59  ;;  %v1243_v24 = vmax.f32 %v1116_v62, %v1162_v42 }
 0x14d   : > { %v1848_v29 = vmax.f32 %v1558_v39, %v1816_v14  ;;  %v1849_v50 = vmax.f32 %v1559_v25, %v1817_v2  ;;  %v1528_v48 = vmax.f32 %v1351_v3, %v1499_v18  ;;  %v1529_v34 = vmax.f32 %v1403_v9, %v1447_v1 }
 0x14e   : > { %v1274_v40 = vmax.f32 %v5982_v12, %v1242_v19  ;;  %v1275_v21 = vmax.f32 %v5983_v16, %v1243_v24  ;;  %v1067_v53 = vrot.slane %v5984_v33, 1  ;;  %v1068_v27 = vrot.slane %v4597_v0, 1 }
 0x14f   : > { %3833 = vst [vmem:[%s4199_s5 + $0x2c0] sm:$0xff] %v1848_v29  ;;  %3834 = vst [vmem:[%s4199_s5 + $0x2c8] sm:$0xff] %v1849_v50  ;;  %v1560_v20 = vmax.f32 %v1272_v60, %v1528_v48  ;;  %v1561_v30 = vmax.f32 %v1273_v5, %v1529_v34  ;;  %v1163_v28 = vrot.slane %v5984_v33, 7  ;;  %v1164_v54 = vrot.slane %v4597_v0, 7 }
 0x150   : > { %v1352_v39 = vrot.slane %v1274_v40, 1  ;;  %v1353_v25 = vrot.slane %v1275_v21, 1  ;;  %v1448_v62 = vrot.slane %v1274_v40, 7  ;;  %v1449_v42 = vrot.slane %v1275_v21, 7 }
 0x151   : > { %v1638_v59 = vrot.slane %v1560_v20, 2  ;;  %v1639_v41 = vrot.slane %v1561_v30, 2  ;;  %v1735_v13 = vrot.slane %v1560_v20, 6  ;;  %v1736_v38 = vrot.slane %v1561_v30, 6 }
 0x152   : > { %v1354_v26 = vsel %vm444_vm0, %v1352_v39, %v1353_v25  ;;  %v1404_v14 = vsel %vm444_vm0, %v1353_v25, -inf  ;;  %v1450_v2 = vsel %vm541_vm1, %v1448_v62, %v1449_v42  ;;  %v1500_v60 = vsel %vm541_vm1, -inf, %v1448_v62 }
 0x153   : > { %v1640_v5 = vsel %vm1598_vm2, %v1638_v59, %v1639_v41  ;;  %v1789_v3 = vsel %vm1695_vm3, -inf, %v1735_v13  ;;  %v1692_v9 = vsel %vm1598_vm2, %v1639_v41, -inf  ;;  %v1737_v1 = vsel %vm1695_vm3, %v1735_v13, %v1736_v38 }
 0x154   : > { %v1818_v18 = vmax.f32 %v1640_v5, %v1789_v3  ;;  %v1819_v19 = vmax.f32 %v1692_v9, %v1737_v1  ;;  %v1530_v24 = vmax.f32 %v1354_v26, %v1500_v60  ;;  %v1531_v29 = vmax.f32 %v1404_v14, %v1450_v2 }
 0x155   : > { %v1069_v50 = vsel %vm444_vm0, %v1067_v53, %v1068_v27  ;;  %v1117_v48 = vsel %vm444_vm0, %v1068_v27, -inf  ;;  %v1165_v34 = vsel %vm541_vm1, %v1163_v28, %v1164_v54  ;;  %v1213_v39 = vsel %vm541_vm1, -inf, %v1163_v28 }
 0x156   : > { %v1850_v25 = vmax.f32 %v1560_v20, %v1818_v18  ;;  %v1851_v62 = vmax.f32 %v1561_v30, %v1819_v19  ;;  %v1562_v42 = vmax.f32 %v1274_v40, %v1530_v24  ;;  %v1563_v59 = vmax.f32 %v1275_v21, %v1531_v29 }
 0x157   : > { %v1244_v41 = vmax.f32 %v1069_v50, %v1213_v39  ;;  %v1245_v13 = vmax.f32 %v1117_v48, %v1165_v34  ;;  %v380_v38 = vmax.f32 %v4842_v31, %v4897_v57  ;;  %v381_v26 = vmax.f32 %v4847_v8, %v4524_v6 }
 0x158   : > { %3835 = vst [vmem:[%s4199_s5 + $0x2d0] sm:$0xff] %v1850_v25  ;;  %3836 = vst [vmem:[%s4199_s5 + $0x2d8] sm:$0xff] %v1851_v62  ;;  %v1641_v53 = vrot.slane %v1562_v42, 2  ;;  %v1642_v27 = vrot.slane %v1563_v59, 2  ;;  %v1738_v14 = vrot.slane %v1562_v42, 6  ;;  %v1739_v54 = vrot.slane %v1563_v59, 6 }
 0x159   : > { %v1276_v28 = vmax.f32 %v5984_v33, %v1244_v41  ;;  %v1277_v20 = vmax.f32 %v4597_v0, %v1245_v13  ;;  %v1888_v40 = vrot.slane %v380_v38, 1  ;;  %v1889_v21 = vrot.slane %v381_v26, 1 }
 0x15a   : > { %v1643_v30 = vsel %vm1598_vm2, %v1641_v53, %v1642_v27  ;;  %v1790_v2 = vsel %vm1695_vm3, -inf, %v1738_v14  ;;  %v1693_v60 = vsel %vm1598_vm2, %v1642_v27, -inf  ;;  %v1740_v5 = vsel %vm1695_vm3, %v1738_v14, %v1739_v54 }
 0x15b   : > { %v1820_v3 = vmax.f32 %v1643_v30, %v1790_v2  ;;  %v1821_v9 = vmax.f32 %v1693_v60, %v1740_v5  ;;  %v1355_v1 = vrot.slane %v1276_v28, 1  ;;  %v1356_v18 = vrot.slane %v1277_v20, 1 }
 0x15c   : > { %v1451_v19 = vrot.slane %v1276_v28, 7  ;;  %v1452_v24 = vrot.slane %v1277_v20, 7  ;;  %v1890_v29 = vsel %vm444_vm0, %v1888_v40, %v1889_v21  ;;  %v1968_v50 = vsel %vm444_vm0, %v1889_v21, -inf }
 0x15d   : > { %v1852_v48 = vmax.f32 %v1562_v42, %v1820_v3  ;;  %v1853_v34 = vmax.f32 %v1563_v59, %v1821_v9  ;;  %v1357_v39 = vsel %vm444_vm0, %v1355_v1, %v1356_v18  ;;  %v1405_v25 = vsel %vm444_vm0, %v1356_v18, -inf }
 0x15e   : > { %v1453_v62 = vsel %vm541_vm1, %v1451_v19, %v1452_v24  ;;  %v1501_v41 = vsel %vm541_vm1, -inf, %v1451_v19  ;;  %v1984_v13 = vrot.slane %v380_v38, 7  ;;  %v1985_v53 = vrot.slane %v381_v26, 7 }
 0x15f   : > { %3837 = vst [vmem:[%s4199_s5 + $0x2e0] sm:$0xff] %v1852_v48  ;;  %3838 = vst [vmem:[%s4199_s5 + $0x2e8] sm:$0xff] %v1853_v34  ;;  %v1532_v27 = vmax.f32 %v1357_v39, %v1501_v41  ;;  %v1533_v14 = vmax.f32 %v1405_v25, %v1453_v62  ;;  %v382_v54 = vmax.f32 %v4879_v32, %v4929_v46 }
 0x160   : > { %v383_v42 = vmax.f32 %v4884_v35, %v4531_v36  ;;  %v1986_v59 = vsel %vm541_vm1, %v1984_v13, %v1985_v53  ;;  %v2064_v40 = vsel %vm541_vm1, -inf, %v1984_v13  ;;  %v356_v21 = vmax.f32 %v4949_v37, %v4842_v31 }
 0x161   : > { %v357_v30 = vmax.f32 %v4457_v61, %v4847_v8  ;;  %v1564_v2 = vmax.f32 %v1276_v28, %v1532_v27  ;;  %v1565_v60 = vmax.f32 %v1277_v20, %v1533_v14  ;;  %v2080_v5 = vmax.f32 %v1890_v29, %v2064_v40 }
 0x162   : > { %v2081_v3 = vmax.f32 %v1968_v50, %v1986_v59  ;;  %v1891_v9 = vrot.slane %v382_v54, 1  ;;  %v1892_v1 = vrot.slane %v383_v42, 1  ;;  %v1987_v18 = vrot.slane %v382_v54, 7 }
 0x163   : > { %v1988_v19 = vrot.slane %v383_v42, 7  ;;  %v1644_v24 = vrot.slane %v1564_v2, 2  ;;  %v1645_v48 = vrot.slane %v1565_v60, 2  ;;  %v1741_v34 = vrot.slane %v1564_v2, 6 }
 0x164   : > { %v1742_v39 = vrot.slane %v1565_v60, 6  ;;  %v2112_v25 = vmax.f32 %v380_v38, %v2080_v5  ;;  %v2113_v62 = vmax.f32 %v381_v26, %v2081_v3  ;;  %v1893_v41 = vsel %vm444_vm0, %v1891_v9, %v1892_v1 }
 0x165   : > { %v1969_v31 = vsel %vm444_vm0, %v1892_v1, -inf  ;;  %v1646_v8 = vsel %vm1598_vm2, %v1644_v24, %v1645_v48  ;;  %v1791_v28 = vsel %vm1695_vm3, -inf, %v1741_v34  ;;  %v1694_v20 = vsel %vm1598_vm2, %v1645_v48, -inf }
 0x166   : > { %v1743_v29 = vsel %vm1695_vm3, %v1741_v34, %v1742_v39  ;;  %v1822_v50 = vmax.f32 %v1646_v8, %v1791_v28  ;;  %v2176_v53 = vrot.slane %v2112_v25, 1  ;;  %v2177_v27 = vrot.slane %v2113_v62, 1 }
 0x167   : > { %v1823_v13 = vmax.f32 %v1694_v20, %v1743_v29  ;;  %v2272_v38 = vrot.slane %v2112_v25, 7  ;;  %v2273_v26 = vrot.slane %v2113_v62, 7  ;;  %v1989_v14 = vsel %vm541_vm1, %v1987_v18, %v1988_v19 }
 0x168   : > { %v2065_v59 = vsel %vm541_vm1, -inf, %v1987_v18  ;;  %v1854_v40 = vmax.f32 %v1564_v2, %v1822_v50  ;;  %v2178_v3 = vsel %vm444_vm0, %v2176_v53, %v2177_v27  ;;  %v2256_v9 = vsel %vm444_vm0, %v2177_v27, -inf }
 0x169   : > { %v1855_v5 = vmax.f32 %v1565_v60, %v1823_v13  ;;  %v2274_v1 = vsel %vm541_vm1, %v2272_v38, %v2273_v26  ;;  %v2352_v24 = vsel %vm541_vm1, -inf, %v2272_v38  ;;  %v2082_v48 = vmax.f32 %v1893_v41, %v2065_v59 }
 0x16a   : > { %v2083_v34 = vmax.f32 %v1969_v31, %v1989_v14  ;;  %3839 = vst [vmem:[%s4199_s5 + $0x2f0] sm:$0xff] %v1854_v40  ;;  %v2368_v39 = vmax.f32 %v2178_v3, %v2352_v24  ;;  %v2369_v8 = vmax.f32 %v2256_v9, %v2274_v1  ;;  %v5275_v19 = vmax.f32 %v4897_v57, %v356_v21 }
 0x16b   : > { %3840 = vst [vmem:[%s4199_s5 + $0x2f8] sm:$0xff] %v1855_v5  ;;  %v5278_v2 = vmax.f32 %v4524_v6, %v357_v30  ;;  %v2114_v60 = vmax.f32 %v382_v54, %v2082_v48  ;;  %v358_v28 = vmax.f32 %v4982_v10, %v4879_v32  ;;  %v359_v20 = vmax.f32 %v4464_v4, %v4884_v35 }
 0x16c   : > { %v2115_v18 = vmax.f32 %v383_v42, %v2083_v34  ;;  %v2400_v41 = vmax.f32 %v2112_v25, %v2368_v39  ;;  %v2401_v31 = vmax.f32 %v2113_v62, %v2369_v8  ;;  %v1894_v29 = vrot.slane %v5275_v19, 1 }
 0x16d   : > { %v1895_v50 = vrot.slane %v5278_v2, 1  ;;  %v2179_v13 = vrot.slane %v2114_v60, 1  ;;  %v2275_v53 = vrot.slane %v2114_v60, 7  ;;  %v1990_v34 = vrot.slane %v5275_v19, 7 }
 0x16e   : > { %v2180_v21 = vrot.slane %v2115_v18, 1  ;;  %v2276_v27 = vrot.slane %v2115_v18, 7  ;;  %v2464_v30 = vrot.slane %v2400_v41, 2  ;;  %v2465_v38 = vrot.slane %v2401_v31, 2 }
 0x16f   : > { %v2560_v54 = vrot.slane %v2400_v41, 6  ;;  %v2561_v42 = vrot.slane %v2401_v31, 6  ;;  %v2353_v25 = vsel %vm541_vm1, -inf, %v2275_v53  ;;  %v1896_v24 = vsel %vm444_vm0, %v1894_v29, %v1895_v50 }
 0x170   : > { %v2181_v26 = vsel %vm444_vm0, %v2179_v13, %v2180_v21  ;;  %v2257_v32 = vsel %vm444_vm0, %v2180_v21, -inf  ;;  %v2277_v35 = vsel %vm541_vm1, %v2275_v53, %v2276_v27  ;;  %v2466_v62 = vsel %vm1598_vm2, %v2464_v30, %v2465_v38 }
 0x171   : > { %v2544_v14 = vsel %vm1598_vm2, %v2465_v38, -inf  ;;  %v2562_v59 = vsel %vm1695_vm3, %v2560_v54, %v2561_v42  ;;  %v2640_v40 = vsel %vm1695_vm3, -inf, %v2560_v54  ;;  %v2370_v9 = vmax.f32 %v2181_v26, %v2353_v25 }
 0x172   : > { %v2656_v5 = vmax.f32 %v2466_v62, %v2640_v40  ;;  %v2657_v3 = vmax.f32 %v2544_v14, %v2562_v59  ;;  %v2371_v1 = vmax.f32 %v2257_v32, %v2277_v35  ;;  %v1970_v48 = vsel %vm444_vm0, %v1895_v50, -inf }
 0x173   : > { %v1991_v39 = vrot.slane %v5278_v2, 7  ;;  %v2402_v21 = vmax.f32 %v2114_v60, %v2370_v9  ;;  %v2066_v30 = vsel %vm541_vm1, -inf, %v1990_v34  ;;  %v5301_v38 = vmax.f32 %v4929_v46, %v358_v28 }
 0x174   : > { %v2688_v8 = vmax.f32 %v2400_v41, %v2656_v5  ;;  %v2689_v13 = vmax.f32 %v2401_v31, %v2657_v3  ;;  %v2403_v53 = vmax.f32 %v2115_v18, %v2371_v1  ;;  %v5304_v54 = vmax.f32 %v4531_v36, %v359_v20 }
 0x175   : > { %v1992_v27 = vsel %vm541_vm1, %v1990_v34, %v1991_v39  ;;  %v2467_v32 = vrot.slane %v2402_v21, 2  ;;  %v2563_v41 = vrot.slane %v2402_v21, 6  ;;  %v2084_v3 = vmax.f32 %v1896_v24, %v2066_v30 }
 0x176   : > { %v2752_v29 = vrot.slane %v2688_v8, 2  ;;  %v2753_v50 = vrot.slane %v2689_v13, 2  ;;  %v2848_v42 = vrot.slane %v2688_v8, 6  ;;  %v2849_v26 = vrot.slane %v2689_v13, 6 }
 0x177   : > { %v2468_v35 = vrot.slane %v2403_v53, 2  ;;  %v2564_v31 = vrot.slane %v2403_v53, 6  ;;  %v2641_v5 = vsel %vm1695_vm3, -inf, %v2563_v41  ;;  %v2085_v9 = vmax.f32 %v1970_v48, %v1992_v27 }
 0x178   : > { %v2754_v60 = vsel %vm1598_vm2, %v2752_v29, %v2753_v50  ;;  %v2928_v18 = vsel %vm1695_vm3, -inf, %v2848_v42  ;;  %v2832_v25 = vsel %vm1598_vm2, %v2753_v50, -inf  ;;  %v2850_v28 = vsel %vm1695_vm3, %v2848_v42, %v2849_v26 }
 0x179   : > { %v2944_v62 = vmax.f32 %v2754_v60, %v2928_v18  ;;  %v2945_v20 = vmax.f32 %v2832_v25, %v2850_v28  ;;  %v2469_v14 = vsel %vm1598_vm2, %v2467_v32, %v2468_v35  ;;  %v2545_v59 = vsel %vm1598_vm2, %v2468_v35, -inf }
 0x17a   : > { %v2565_v40 = vsel %vm1695_vm3, %v2563_v41, %v2564_v31  ;;  %v2658_v39 = vmax.f32 %v2469_v14, %v2641_v5  ;;  %v2116_v50 = vmax.f32 %v5275_v19, %v2084_v3  ;;  %v2117_v42 = vmax.f32 %v5278_v2, %v2085_v9 }
 0x17b   : > { %v2976_v1 = vmax.f32 %v2688_v8, %v2944_v62  ;;  %v2977_v34 = vmax.f32 %v2689_v13, %v2945_v20  ;;  %v2659_v29 = vmax.f32 %v2545_v59, %v2565_v40  ;;  %v1897_v26 = vrot.slane %v5301_v38, 1 }
 0x17c   : > { %v1898_v32 = vrot.slane %v5304_v54, 1  ;;  %v2690_v35 = vmax.f32 %v2402_v21, %v2658_v39  ;;  %v1993_v41 = vrot.slane %v5301_v38, 7  ;;  %v1994_v24 = vrot.slane %v5304_v54, 7 }
 0x17d   : > { %3841 = vst [vmem:[%s4199_s5 + $0x300] sm:$0xff] %v2976_v1  ;;  %3842 = vst [vmem:[%s4199_s5 + $0x308] sm:$0xff] %v2977_v34  ;;  %v2691_v31 = vmax.f32 %v2403_v53, %v2659_v29  ;;  %v2182_v48 = vrot.slane %v2116_v50, 1  ;;  %v2183_v8 = vrot.slane %v2117_v42, 1  ;;  %v2278_v13 = vrot.slane %v2116_v50, 7 }
 0x17e   : > { %v2279_v27 = vrot.slane %v2117_v42, 7  ;;  %v2755_v30 = vrot.slane %v2690_v35, 2  ;;  %v2851_v60 = vrot.slane %v2690_v35, 6  ;;  %v1899_v9 = vsel %vm444_vm0, %v1897_v26, %v1898_v32 }
 0x17f   : > { %v2756_v19 = vrot.slane %v2691_v31, 2  ;;  %v2852_v2 = vrot.slane %v2691_v31, 6  ;;  %v2184_v18 = vsel %vm444_vm0, %v2182_v48, %v2183_v8  ;;  %v2258_v25 = vsel %vm444_vm0, %v2183_v8, -inf }
 0x180   : > { %v2280_v28 = vsel %vm541_vm1, %v2278_v13, %v2279_v27  ;;  %v2354_v21 = vsel %vm541_vm1, -inf, %v2278_v13  ;;  %v2929_v62 = vsel %vm1695_vm3, -inf, %v2851_v60  ;;  %v1971_v1 = vsel %vm444_vm0, %v1898_v32, -inf }
 0x181   : > { %v2757_v53 = vsel %vm1598_vm2, %v2755_v30, %v2756_v19  ;;  %v2833_v20 = vsel %vm1598_vm2, %v2756_v19, -inf  ;;  %v2853_v14 = vsel %vm1695_vm3, %v2851_v60, %v2852_v2  ;;  %v2372_v5 = vmax.f32 %v2184_v18, %v2354_v21 }
 0x182   : > { %v2946_v59 = vmax.f32 %v2757_v53, %v2929_v62  ;;  %v2947_v40 = vmax.f32 %v2833_v20, %v2853_v14  ;;  %v2373_v3 = vmax.f32 %v2258_v25, %v2280_v28  ;;  %v1995_v34 = vsel %vm541_vm1, %v1993_v41, %v1994_v24 }
 0x183   : > { %v2067_v39 = vsel %vm541_vm1, -inf, %v1993_v41  ;;  %v2404_v8 = vmax.f32 %v2116_v50, %v2372_v5  ;;  %v2087_v30 = vmax.f32 %v1971_v1, %v1995_v34  ;;  %v360_v19 = vmax.f32 %v5002_v55, %v4897_v57 }
 0x184   : > { %v2978_v29 = vmax.f32 %v2690_v35, %v2946_v59  ;;  %v2979_v48 = vmax.f32 %v2691_v31, %v2947_v40  ;;  %v2405_v13 = vmax.f32 %v2117_v42, %v2373_v3  ;;  %v2086_v27 = vmax.f32 %v1899_v9, %v2067_v39 }
 0x185   : > { %v361_v60 = vmax.f32 %v5973_v49, %v4524_v6  ;;  %v2470_v26 = vrot.slane %v2404_v8, 2  ;;  %v2566_v2 = vrot.slane %v2404_v8, 6  ;;  %v2119_v35 = vmax.f32 %v5304_v54, %v2087_v30 }
 0x186   : > { %3843 = vst [vmem:[%s4199_s5 + $0x310] sm:$0xff] %v2978_v29  ;;  %3844 = vst [vmem:[%s4199_s5 + $0x318] sm:$0xff] %v2979_v48  ;;  %v2471_v32 = vrot.slane %v2405_v13, 2  ;;  %v2567_v24 = vrot.slane %v2405_v13, 6  ;;  %v2118_v41 = vmax.f32 %v5301_v38, %v2086_v27  ;;  %v388_v50 = vmax.f32 %v4949_v37, %v360_v19 }
 0x187   : > { %v389_v42 = vmax.f32 %v4457_v61, %v361_v60  ;;  %v2642_v18 = vsel %vm1695_vm3, -inf, %v2566_v2  ;;  %v2186_v53 = vrot.slane %v2119_v35, 1  ;;  %v2282_v38 = vrot.slane %v2119_v35, 7 }
 0x188   : > { %v2472_v31 = vsel %vm1598_vm2, %v2470_v26, %v2471_v32  ;;  %v2546_v57 = vsel %vm1598_vm2, %v2471_v32, -inf  ;;  %v2568_v6 = vsel %vm1695_vm3, %v2566_v2, %v2567_v24  ;;  %v2185_v21 = vrot.slane %v2118_v41, 1 }
 0x189   : > { %v2660_v25 = vmax.f32 %v2472_v31, %v2642_v18  ;;  %v2661_v28 = vmax.f32 %v2546_v57, %v2568_v6  ;;  %v2281_v62 = vrot.slane %v2118_v41, 7  ;;  %v1900_v20 = vrot.slane %v388_v50, 1 }
 0x18a   : > { %v1901_v54 = vrot.slane %v389_v42, 1  ;;  %v2187_v40 = vsel %vm444_vm0, %v2185_v21, %v2186_v53  ;;  %v2259_v5 = vsel %vm444_vm0, %v2186_v53, -inf  ;;  %v363_v21 = vmax.f32 %v5974_v44, %v4531_v36 }
 0x18b   : > { %v2692_v14 = vmax.f32 %v2404_v8, %v2660_v25  ;;  %v2693_v59 = vmax.f32 %v2405_v13, %v2661_v28  ;;  %v2283_v3 = vsel %vm541_vm1, %v2281_v62, %v2282_v38  ;;  %v2355_v9 = vsel %vm541_vm1, -inf, %v2281_v62 }
 0x18c   : > { %v1902_v1 = vsel %vm444_vm0, %v1900_v20, %v1901_v54  ;;  %v1972_v34 = vsel %vm444_vm0, %v1901_v54, -inf  ;;  %v2374_v30 = vmax.f32 %v2187_v40, %v2355_v9  ;;  %v2375_v19 = vmax.f32 %v2259_v5, %v2283_v3 }
 0x18d   : > { %v2758_v39 = vrot.slane %v2692_v14, 2  ;;  %v2759_v29 = vrot.slane %v2693_v59, 2  ;;  %v2854_v48 = vrot.slane %v2692_v14, 6  ;;  %v2855_v27 = vrot.slane %v2693_v59, 6 }
 0x18e   : > { %v1996_v8 = vrot.slane %v388_v50, 7  ;;  %v1997_v13 = vrot.slane %v389_v42, 7  ;;  %v2406_v57 = vmax.f32 %v2118_v41, %v2374_v30  ;;  %v2407_v6 = vmax.f32 %v2119_v35, %v2375_v19 }
 0x18f   : > { %v2760_v60 = vsel %vm1598_vm2, %v2758_v39, %v2759_v29  ;;  %v2930_v26 = vsel %vm1695_vm3, -inf, %v2854_v48  ;;  %v2834_v32 = vsel %vm1598_vm2, %v2759_v29, -inf  ;;  %v2856_v2 = vsel %vm1695_vm3, %v2854_v48, %v2855_v27 }
 0x190   : > { %v2948_v24 = vmax.f32 %v2760_v60, %v2930_v26  ;;  %v2949_v31 = vmax.f32 %v2834_v32, %v2856_v2  ;;  %v1998_v18 = vsel %vm541_vm1, %v1996_v8, %v1997_v13  ;;  %v2068_v25 = vsel %vm541_vm1, -inf, %v1996_v8 }
 0x191   : > { %v362_v28 = vmax.f32 %v5035_v15, %v4929_v46  ;;  %v2473_v38 = vrot.slane %v2406_v57, 2  ;;  %v2474_v20 = vrot.slane %v2407_v6, 2  ;;  %v2569_v54 = vrot.slane %v2406_v57, 6 }
 0x192   : > { %v2980_v53 = vmax.f32 %v2692_v14, %v2948_v24  ;;  %v2981_v62 = vmax.f32 %v2693_v59, %v2949_v31  ;;  %v2570_v40 = vrot.slane %v2407_v6, 6  ;;  %v2088_v5 = vmax.f32 %v1902_v1, %v2068_v25 }
 0x193   : > { %v2089_v3 = vmax.f32 %v1972_v34, %v1998_v18  ;;  %v2475_v41 = vsel %vm1598_vm2, %v2473_v38, %v2474_v20  ;;  %v2547_v35 = vsel %vm1598_vm2, %v2474_v20, -inf  ;;  %v390_v9 = vmax.f32 %v4982_v10, %v362_v28 }
 0x194   : > { %3845 = vst [vmem:[%s4199_s5 + $0x320] sm:$0xff] %v2980_v53  ;;  %3846 = vst [vmem:[%s4199_s5 + $0x328] sm:$0xff] %v2981_v62  ;;  %v391_v46 = vmax.f32 %v4464_v4, %v363_v21  ;;  %v2571_v36 = vsel %vm1695_vm3, %v2569_v54, %v2570_v40  ;;  %v2643_v14 = vsel %vm1695_vm3, -inf, %v2569_v54  ;;  %v2120_v59 = vmax.f32 %v388_v50, %v2088_v5 }
 0x195   : > { %v2121_v39 = vmax.f32 %v389_v42, %v2089_v3  ;;  %v2662_v29 = vmax.f32 %v2475_v41, %v2643_v14  ;;  %v2663_v48 = vmax.f32 %v2547_v35, %v2571_v36  ;;  %v1903_v1 = vrot.slane %v390_v9, 1 }
 0x196   : > { %v1904_v34 = vrot.slane %v391_v46, 1  ;;  %v2188_v27 = vrot.slane %v2120_v59, 1  ;;  %v2284_v19 = vrot.slane %v2120_v59, 7  ;;  %v364_v14 = vmax.f32 %v5039_v23, %v4949_v37 }
 0x197   : > { %v2189_v30 = vrot.slane %v2121_v39, 1  ;;  %v2285_v8 = vrot.slane %v2121_v39, 7  ;;  %v2694_v13 = vmax.f32 %v2406_v57, %v2662_v29  ;;  %v2695_v60 = vmax.f32 %v2407_v6, %v2663_v48 }
 0x198   : > { %v1905_v26 = vsel %vm444_vm0, %v1903_v1, %v1904_v34  ;;  %v1973_v32 = vsel %vm444_vm0, %v1904_v34, -inf  ;;  %v2356_v42 = vsel %vm541_vm1, -inf, %v2284_v19  ;;  %v1999_v57 = vrot.slane %v390_v9, 7 }
 0x199   : > { %v2190_v2 = vsel %vm444_vm0, %v2188_v27, %v2189_v30  ;;  %v2260_v24 = vsel %vm444_vm0, %v2189_v30, -inf  ;;  %v2286_v50 = vsel %vm541_vm1, %v2284_v19, %v2285_v8  ;;  %v2761_v31 = vrot.slane %v2694_v13, 2 }
 0x19a   : > { %v2762_v18 = vrot.slane %v2695_v60, 2  ;;  %v2857_v25 = vrot.slane %v2694_v13, 6  ;;  %v2858_v28 = vrot.slane %v2695_v60, 6  ;;  %v2376_v21 = vmax.f32 %v2190_v2, %v2356_v42 }
 0x19b   : > { %v2377_v53 = vmax.f32 %v2260_v24, %v2286_v50  ;;  %v2000_v6 = vrot.slane %v391_v46, 7  ;;  %v2069_v36 = vsel %vm541_vm1, -inf, %v1999_v57  ;;  %v365_v29 = vmax.f32 %v5975_v58, %v4457_v61 }
 0x19c   : > { %v2763_v62 = vsel %vm1598_vm2, %v2761_v31, %v2762_v18  ;;  %v2931_v38 = vsel %vm1695_vm3, -inf, %v2857_v25  ;;  %v2835_v20 = vsel %vm1598_vm2, %v2762_v18, -inf  ;;  %v2859_v54 = vsel %vm1695_vm3, %v2857_v25, %v2858_v28 }
 0x19d   : > { %v2950_v40 = vmax.f32 %v2763_v62, %v2931_v38  ;;  %v2951_v5 = vmax.f32 %v2835_v20, %v2859_v54  ;;  %v2408_v3 = vmax.f32 %v2120_v59, %v2376_v21  ;;  %v2409_v41 = vmax.f32 %v2121_v39, %v2377_v53 }
 0x19e   : > { %v2001_v35 = vsel %vm541_vm1, %v1999_v57, %v2000_v6  ;;  %v2090_v8 = vmax.f32 %v1905_v26, %v2069_v36  ;;  %v392_v24 = vmax.f32 %v5002_v55, %v364_v14  ;;  %v393_v37 = vmax.f32 %v5973_v49, %v365_v29 }
 0x19f   : > { %v2982_v48 = vmax.f32 %v2694_v13, %v2950_v40  ;;  %v2983_v1 = vmax.f32 %v2695_v60, %v2951_v5  ;;  %v2476_v34 = vrot.slane %v2408_v3, 2  ;;  %v2477_v27 = vrot.slane %v2409_v41, 2 }
 0x1a0   : > { %v2572_v30 = vrot.slane %v2408_v3, 6  ;;  %v2573_v19 = vrot.slane %v2409_v41, 6  ;;  %v2091_v2 = vmax.f32 %v1973_v32, %v2001_v35  ;;  %v2122_v60 = vmax.f32 %v390_v9, %v2090_v8 }
 0x1a1   : > { %3847 = vst [vmem:[%s4199_s5 + $0x330] sm:$0xff] %v2982_v48  ;;  %3848 = vst [vmem:[%s4199_s5 + $0x338] sm:$0xff] %v2983_v1  ;;  %v2478_v59 = vsel %vm1598_vm2, %v2476_v34, %v2477_v27  ;;  %v2548_v39 = vsel %vm1598_vm2, %v2477_v27, -inf  ;;  %v1906_v26 = vrot.slane %v392_v24, 1  ;;  %v1907_v32 = vrot.slane %v393_v37, 1 }
 0x1a2   : > { %v2574_v61 = vsel %vm1695_vm3, %v2572_v30, %v2573_v19  ;;  %v2644_v13 = vsel %vm1695_vm3, -inf, %v2572_v30  ;;  %v2123_v50 = vmax.f32 %v391_v46, %v2091_v2  ;;  %v2191_v18 = vrot.slane %v2122_v60, 1 }
 0x1a3   : > { %v2664_v42 = vmax.f32 %v2478_v59, %v2644_v13  ;;  %v2665_v31 = vmax.f32 %v2548_v39, %v2574_v61  ;;  %v2287_v28 = vrot.slane %v2122_v60, 7  ;;  %v1908_v6 = vsel %vm444_vm0, %v1906_v26, %v1907_v32 }
 0x1a4   : > { %v2192_v25 = vrot.slane %v2123_v50, 1  ;;  %v2288_v21 = vrot.slane %v2123_v50, 7  ;;  %v1974_v62 = vsel %vm444_vm0, %v1907_v32, -inf  ;;  %v366_v39 = vmax.f32 %v5073_v45, %v4982_v10 }
 0x1a5   : > { %v2696_v53 = vmax.f32 %v2408_v3, %v2664_v42  ;;  %v2697_v57 = vmax.f32 %v2409_v41, %v2665_v31  ;;  %v2357_v46 = vsel %vm541_vm1, -inf, %v2287_v28  ;;  %v2002_v3 = vrot.slane %v392_v24, 7 }
 0x1a6   : > { %v2193_v38 = vsel %vm444_vm0, %v2191_v18, %v2192_v25  ;;  %v2261_v20 = vsel %vm444_vm0, %v2192_v25, -inf  ;;  %v2289_v9 = vsel %vm541_vm1, %v2287_v28, %v2288_v21  ;;  %v2003_v41 = vrot.slane %v393_v37, 7 }
 0x1a7   : > { %v2764_v54 = vrot.slane %v2696_v53, 2  ;;  %v2765_v40 = vrot.slane %v2697_v57, 2  ;;  %v2860_v5 = vrot.slane %v2696_v53, 6  ;;  %v2861_v35 = vrot.slane %v2697_v57, 6 }
 0x1a8   : > { %v2378_v36 = vmax.f32 %v2193_v38, %v2357_v46  ;;  %v2379_v14 = vmax.f32 %v2261_v20, %v2289_v9  ;;  %v2004_v2 = vsel %vm541_vm1, %v2002_v3, %v2003_v41  ;;  %v2070_v59 = vsel %vm541_vm1, -inf, %v2002_v3 }
 0x1a9   : > { %v2766_v29 = vsel %vm1598_vm2, %v2764_v54, %v2765_v40  ;;  %v2932_v48 = vsel %vm1695_vm3, -inf, %v2860_v5  ;;  %v2836_v1 = vsel %vm1598_vm2, %v2765_v40, -inf  ;;  %v2862_v34 = vsel %vm1695_vm3, %v2860_v5, %v2861_v35 }
 0x1aa   : > { %v2952_v27 = vmax.f32 %v2766_v29, %v2932_v48  ;;  %v2953_v30 = vmax.f32 %v2836_v1, %v2862_v34  ;;  %v2410_v19 = vmax.f32 %v2122_v60, %v2378_v36  ;;  %v2411_v8 = vmax.f32 %v2123_v50, %v2379_v14 }
 0x1ab   : > { %v367_v61 = vmax.f32 %v5976_v22, %v4464_v4  ;;  %v2092_v25 = vmax.f32 %v1908_v6, %v2070_v59  ;;  %v2093_v28 = vmax.f32 %v1974_v62, %v2004_v2  ;;  %v394_v21 = vmax.f32 %v5035_v15, %v366_v39 }
 0x1ac   : > { %v2984_v13 = vmax.f32 %v2696_v53, %v2952_v27  ;;  %v2985_v42 = vmax.f32 %v2697_v57, %v2953_v30  ;;  %v2479_v31 = vrot.slane %v2410_v19, 2  ;;  %v2480_v26 = vrot.slane %v2411_v8, 2 }
 0x1ad   : > { %v2575_v32 = vrot.slane %v2410_v19, 6  ;;  %v2576_v18 = vrot.slane %v2411_v8, 6  ;;  %v395_v10 = vmax.f32 %v5974_v44, %v367_v61  ;;  %v2124_v57 = vmax.f32 %v392_v24, %v2092_v25 }
 0x1ae   : > { %3849 = vst [vmem:[%s4199_s5 + $0x340] sm:$0xff] %v2984_v13  ;;  %3850 = vst [vmem:[%s4199_s5 + $0x348] sm:$0xff] %v2985_v42  ;;  %v2481_v60 = vsel %vm1598_vm2, %v2479_v31, %v2480_v26  ;;  %v2549_v50 = vsel %vm1598_vm2, %v2480_v26, -inf  ;;  %v2125_v38 = vmax.f32 %v393_v37, %v2093_v28  ;;  %v1909_v6 = vrot.slane %v394_v21, 1 }
 0x1af   : > { %v2577_v4 = vsel %vm1695_vm3, %v2575_v32, %v2576_v18  ;;  %v2645_v53 = vsel %vm1695_vm3, -inf, %v2575_v32  ;;  %v1910_v62 = vrot.slane %v395_v10, 1  ;;  %v2194_v46 = vrot.slane %v2124_v57, 1 }
 0x1b0   : > { %v2666_v20 = vmax.f32 %v2481_v60, %v2645_v53  ;;  %v2667_v9 = vmax.f32 %v2549_v50, %v2577_v4  ;;  %v2195_v54 = vrot.slane %v2125_v38, 1  ;;  %v2290_v40 = vrot.slane %v2124_v57, 7 }
 0x1b1   : > { %v2291_v5 = vrot.slane %v2125_v38, 7  ;;  %v1911_v14 = vsel %vm444_vm0, %v1909_v6, %v1910_v62  ;;  %v1975_v3 = vsel %vm444_vm0, %v1910_v62, -inf  ;;  %v368_v28 = vmax.f32 %v5104_v52, %v5002_v55 }
 0x1b2   : > { %v2698_v35 = vmax.f32 %v2410_v19, %v2666_v20  ;;  %v2699_v36 = vmax.f32 %v2411_v8, %v2667_v9  ;;  %v2196_v41 = vsel %vm444_vm0, %v2194_v46, %v2195_v54  ;;  %v2262_v29 = vsel %vm444_vm0, %v2195_v54, -inf }
 0x1b3   : > { %v2292_v24 = vsel %vm541_vm1, %v2290_v40, %v2291_v5  ;;  %v2358_v37 = vsel %vm541_vm1, -inf, %v2290_v40  ;;  %v2005_v19 = vrot.slane %v394_v21, 7  ;;  %v2006_v8 = vrot.slane %v395_v10, 7 }
 0x1b4   : > { %v2767_v48 = vrot.slane %v2698_v35, 2  ;;  %v2768_v1 = vrot.slane %v2699_v36, 2  ;;  %v2863_v34 = vrot.slane %v2698_v35, 6  ;;  %v2864_v27 = vrot.slane %v2699_v36, 6 }
 0x1b5   : > { %v2380_v30 = vmax.f32 %v2196_v41, %v2358_v37  ;;  %v2381_v2 = vmax.f32 %v2262_v29, %v2292_v24  ;;  %v2007_v18 = vsel %vm541_vm1, %v2005_v19, %v2006_v8  ;;  %v2071_v25 = vsel %vm541_vm1, -inf, %v2005_v19 }
 0x1b6   : > { %v2769_v59 = vsel %vm1598_vm2, %v2767_v48, %v2768_v1  ;;  %v2933_v39 = vsel %vm1695_vm3, -inf, %v2863_v34  ;;  %v2837_v61 = vsel %vm1598_vm2, %v2768_v1, -inf  ;;  %v2865_v13 = vsel %vm1695_vm3, %v2863_v34, %v2864_v27 }
 0x1b7   : > { %v2954_v42 = vmax.f32 %v2769_v59, %v2933_v39  ;;  %v2955_v31 = vmax.f32 %v2837_v61, %v2865_v13  ;;  %v2412_v26 = vmax.f32 %v2124_v57, %v2380_v30  ;;  %v2413_v32 = vmax.f32 %v2125_v38, %v2381_v2 }
 0x1b8   : > { %v369_v60 = vmax.f32 %v5977_v7, %v5973_v49  ;;  %v2094_v62 = vmax.f32 %v1911_v14, %v2071_v25  ;;  %v2095_v46 = vmax.f32 %v1975_v3, %v2007_v18  ;;  %v396_v54 = vmax.f32 %v5039_v23, %v368_v28 }
 0x1b9   : > { %v2986_v50 = vmax.f32 %v2698_v35, %v2954_v42  ;;  %v2987_v4 = vmax.f32 %v2699_v36, %v2955_v31  ;;  %v2482_v53 = vrot.slane %v2412_v26, 2  ;;  %v2483_v20 = vrot.slane %v2413_v32, 2 }
 0x1ba   : > { %v2578_v9 = vrot.slane %v2412_v26, 6  ;;  %v2579_v6 = vrot.slane %v2413_v32, 6  ;;  %v397_v55 = vmax.f32 %v5975_v58, %v369_v60  ;;  %v2126_v5 = vmax.f32 %v394_v21, %v2094_v62 }
 0x1bb   : > { %3851 = vst [vmem:[%s4199_s5 + $0x350] sm:$0xff] %v2986_v50  ;;  %3852 = vst [vmem:[%s4199_s5 + $0x358] sm:$0xff] %v2987_v4  ;;  %v2484_v57 = vsel %vm1598_vm2, %v2482_v53, %v2483_v20  ;;  %v2550_v38 = vsel %vm1598_vm2, %v2483_v20, -inf  ;;  %v2127_v35 = vmax.f32 %v395_v10, %v2095_v46  ;;  %v1912_v14 = vrot.slane %v396_v54, 1 }
 0x1bc   : > { %v2580_v49 = vsel %vm1695_vm3, %v2578_v9, %v2579_v6  ;;  %v2646_v40 = vsel %vm1695_vm3, -inf, %v2578_v9  ;;  %v1913_v3 = vrot.slane %v397_v55, 1  ;;  %v2197_v29 = vrot.slane %v2126_v5, 1 }
 0x1bd   : > { %v2668_v36 = vmax.f32 %v2484_v57, %v2646_v40  ;;  %v2669_v41 = vmax.f32 %v2550_v38, %v2580_v49  ;;  %v2198_v24 = vrot.slane %v2127_v35, 1  ;;  %v2293_v37 = vrot.slane %v2126_v5, 7 }
 0x1be   : > { %v2294_v48 = vrot.slane %v2127_v35, 7  ;;  %v1914_v27 = vsel %vm444_vm0, %v1912_v14, %v1913_v3  ;;  %v1976_v30 = vsel %vm444_vm0, %v1913_v3, -inf  ;;  %v2008_v31 = vrot.slane %v396_v54, 7 }
 0x1bf   : > { %v2700_v1 = vmax.f32 %v2412_v26, %v2668_v36  ;;  %v2701_v34 = vmax.f32 %v2413_v32, %v2669_v41  ;;  %v2199_v2 = vsel %vm444_vm0, %v2197_v29, %v2198_v24  ;;  %v2263_v19 = vsel %vm444_vm0, %v2198_v24, -inf }
 0x1c0   : > { %v2295_v21 = vsel %vm541_vm1, %v2293_v37, %v2294_v48  ;;  %v2359_v10 = vsel %vm541_vm1, -inf, %v2293_v37  ;;  %v2009_v26 = vrot.slane %v397_v55, 7  ;;  %v2072_v9 = vsel %vm541_vm1, -inf, %v2008_v31 }
 0x1c1   : > { %v2770_v8 = vrot.slane %v2700_v1, 2  ;;  %v2771_v59 = vrot.slane %v2701_v34, 2  ;;  %v2866_v39 = vrot.slane %v2700_v1, 6  ;;  %v2867_v61 = vrot.slane %v2701_v34, 6 }
 0x1c2   : > { %v2382_v13 = vmax.f32 %v2199_v2, %v2359_v10  ;;  %v2383_v42 = vmax.f32 %v2263_v19, %v2295_v21  ;;  %v2010_v20 = vsel %vm541_vm1, %v2008_v31, %v2009_v26  ;;  %v370_v6 = vmax.f32 %v5124_v43, %v5035_v15 }
 0x1c3   : > { %v2772_v32 = vsel %vm1598_vm2, %v2770_v8, %v2771_v59  ;;  %v2934_v18 = vsel %vm1695_vm3, -inf, %v2866_v39  ;;  %v2838_v25 = vsel %vm1598_vm2, %v2771_v59, -inf  ;;  %v2868_v28 = vsel %vm1695_vm3, %v2866_v39, %v2867_v61 }
 0x1c4   : > { %v2956_v60 = vmax.f32 %v2772_v32, %v2934_v18  ;;  %v2957_v50 = vmax.f32 %v2838_v25, %v2868_v28  ;;  %v2414_v4 = vmax.f32 %v2126_v5, %v2382_v13  ;;  %v2415_v53 = vmax.f32 %v2127_v35, %v2383_v42 }
 0x1c5   : > { %v371_v62 = vmax.f32 %v4606_v47, %v5974_v44  ;;  %v2096_v41 = vmax.f32 %v1914_v27, %v2072_v9  ;;  %v2097_v14 = vmax.f32 %v1976_v30, %v2010_v20  ;;  %v398_v3 = vmax.f32 %v5073_v45, %v370_v6 }
 0x1c6   : > { %v2988_v46 = vmax.f32 %v2700_v1, %v2956_v60  ;;  %v2989_v57 = vmax.f32 %v2701_v34, %v2957_v50  ;;  %v2485_v38 = vrot.slane %v2414_v4, 2  ;;  %v2486_v49 = vrot.slane %v2415_v53, 2 }
 0x1c7   : > { %v2581_v40 = vrot.slane %v2414_v4, 6  ;;  %v2582_v36 = vrot.slane %v2415_v53, 6  ;;  %v399_v15 = vmax.f32 %v5976_v22, %v371_v62  ;;  %v2128_v24 = vmax.f32 %v396_v54, %v2096_v41 }
 0x1c8   : > { %3853 = vst [vmem:[%s4199_s5 + $0x360] sm:$0xff] %v2988_v46  ;;  %3854 = vst [vmem:[%s4199_s5 + $0x368] sm:$0xff] %v2989_v57  ;;  %v2487_v5 = vsel %vm1598_vm2, %v2485_v38, %v2486_v49  ;;  %v2551_v35 = vsel %vm1598_vm2, %v2486_v49, -inf  ;;  %v2129_v37 = vmax.f32 %v397_v55, %v2097_v14  ;;  %v1915_v34 = vrot.slane %v398_v3, 1 }
 0x1c9   : > { %v2583_v44 = vsel %vm1695_vm3, %v2581_v40, %v2582_v36  ;;  %v2647_v29 = vsel %vm1695_vm3, -inf, %v2581_v40  ;;  %v1916_v27 = vrot.slane %v399_v15, 1  ;;  %v2200_v30 = vrot.slane %v2128_v24, 1 }
 0x1ca   : > { %v2670_v48 = vmax.f32 %v2487_v5, %v2647_v29  ;;  %v2671_v1 = vmax.f32 %v2551_v35, %v2583_v44  ;;  %v2201_v2 = vrot.slane %v2129_v37, 1  ;;  %v2296_v19 = vrot.slane %v2128_v24, 7 }
 0x1cb   : > { %v2297_v21 = vrot.slane %v2129_v37, 7  ;;  %v1917_v59 = vsel %vm444_vm0, %v1915_v34, %v1916_v27  ;;  %v1977_v39 = vsel %vm444_vm0, %v1916_v27, -inf  ;;  %v2011_v28 = vrot.slane %v398_v3, 7 }
 0x1cc   : > { %v2702_v10 = vmax.f32 %v2414_v4, %v2670_v48  ;;  %v2703_v8 = vmax.f32 %v2415_v53, %v2671_v1  ;;  %v2202_v61 = vsel %vm444_vm0, %v2200_v30, %v2201_v2  ;;  %v2264_v13 = vsel %vm444_vm0, %v2201_v2, -inf }
 0x1cd   : > { %v2298_v54 = vsel %vm541_vm1, %v2296_v19, %v2297_v21  ;;  %v2360_v55 = vsel %vm541_vm1, -inf, %v2296_v19  ;;  %v2012_v60 = vrot.slane %v399_v15, 7  ;;  %v2073_v38 = vsel %vm541_vm1, -inf, %v2011_v28 }
 0x1ce   : > { %v2773_v42 = vrot.slane %v2702_v10, 2  ;;  %v2774_v31 = vrot.slane %v2703_v8, 2  ;;  %v2869_v26 = vrot.slane %v2702_v10, 6  ;;  %v2870_v32 = vrot.slane %v2703_v8, 6 }
 0x1cf   : > { %v2384_v18 = vmax.f32 %v2202_v61, %v2360_v55  ;;  %v2385_v25 = vmax.f32 %v2264_v13, %v2298_v54  ;;  %v2013_v57 = vsel %vm541_vm1, %v2011_v28, %v2012_v60  ;;  %v372_v49 = vmax.f32 %v5979_v11, %v5039_v23 }
 0x1d0   : > { %v2775_v50 = vsel %vm1598_vm2, %v2773_v42, %v2774_v31  ;;  %v2935_v4 = vsel %vm1695_vm3, -inf, %v2869_v26  ;;  %v2839_v53 = vsel %vm1598_vm2, %v2774_v31, -inf  ;;  %v2871_v20 = vsel %vm1695_vm3, %v2869_v26, %v2870_v32 }
 0x1d1   : > { %v2958_v9 = vmax.f32 %v2775_v50, %v2935_v4  ;;  %v2959_v6 = vmax.f32 %v2839_v53, %v2871_v20  ;;  %v2416_v62 = vmax.f32 %v2128_v24, %v2384_v18  ;;  %v2417_v46 = vmax.f32 %v2129_v37, %v2385_v25 }
 0x1d2   : > { %v373_v40 = vmax.f32 %v5980_v56, %v5975_v58  ;;  %v2098_v29 = vmax.f32 %v1917_v59, %v2073_v38  ;;  %v2099_v48 = vmax.f32 %v1977_v39, %v2013_v57  ;;  %v400_v1 = vmax.f32 %v5104_v52, %v372_v49 }
 0x1d3   : > { %v2990_v36 = vmax.f32 %v2702_v10, %v2958_v9  ;;  %v2991_v41 = vmax.f32 %v2703_v8, %v2959_v6  ;;  %v2488_v14 = vrot.slane %v2416_v62, 2  ;;  %v2489_v5 = vrot.slane %v2417_v46, 2 }
 0x1d4   : > { %v2584_v35 = vrot.slane %v2416_v62, 6  ;;  %v2585_v44 = vrot.slane %v2417_v46, 6  ;;  %v401_v23 = vmax.f32 %v5977_v7, %v373_v40  ;;  %v2130_v27 = vmax.f32 %v398_v3, %v2098_v29 }
 0x1d5   : > { %3855 = vst [vmem:[%s4199_s5 + $0x370] sm:$0xff] %v2990_v36  ;;  %3856 = vst [vmem:[%s4199_s5 + $0x378] sm:$0xff] %v2991_v41  ;;  %v2490_v24 = vsel %vm1598_vm2, %v2488_v14, %v2489_v5  ;;  %v2552_v37 = vsel %vm1598_vm2, %v2489_v5, -inf  ;;  %v2131_v30 = vmax.f32 %v399_v15, %v2099_v48  ;;  %v1918_v21 = vrot.slane %v400_v1, 1 }
 0x1d6   : > { %v2586_v58 = vsel %vm1695_vm3, %v2584_v35, %v2585_v44  ;;  %v2648_v34 = vsel %vm1695_vm3, -inf, %v2584_v35  ;;  %v1919_v10 = vrot.slane %v401_v23, 1  ;;  %v2203_v8 = vrot.slane %v2130_v27, 1 }
 0x1d7   : > { %v2672_v2 = vmax.f32 %v2490_v24, %v2648_v34  ;;  %v2673_v19 = vmax.f32 %v2552_v37, %v2586_v58  ;;  %v2204_v59 = vrot.slane %v2131_v30, 1  ;;  %v2299_v39 = vrot.slane %v2130_v27, 7 }
 0x1d8   : > { %v2300_v61 = vrot.slane %v2131_v30, 7  ;;  %v1920_v55 = vsel %vm444_vm0, %v1918_v21, %v1919_v10  ;;  %v1978_v42 = vsel %vm444_vm0, %v1919_v10, -inf  ;;  %v2014_v4 = vrot.slane %v400_v1, 7 }
 0x1d9   : > { %v2704_v13 = vmax.f32 %v2416_v62, %v2672_v2  ;;  %v2705_v54 = vmax.f32 %v2417_v46, %v2673_v19  ;;  %v2205_v31 = vsel %vm444_vm0, %v2203_v8, %v2204_v59  ;;  %v2265_v26 = vsel %vm444_vm0, %v2204_v59, -inf }
 0x1da   : > { %v2301_v3 = vsel %vm541_vm1, %v2299_v39, %v2300_v61  ;;  %v2361_v15 = vsel %vm541_vm1, -inf, %v2299_v39  ;;  %v2015_v53 = vrot.slane %v401_v23, 7  ;;  %v2074_v36 = vsel %vm541_vm1, -inf, %v2014_v4 }
 0x1db   : > { %v2776_v32 = vrot.slane %v2704_v13, 2  ;;  %v2777_v18 = vrot.slane %v2705_v54, 2  ;;  %v2872_v25 = vrot.slane %v2704_v13, 6  ;;  %v2873_v28 = vrot.slane %v2705_v54, 6 }
 0x1dc   : > { %v2386_v60 = vmax.f32 %v2205_v31, %v2361_v15  ;;  %v2387_v50 = vmax.f32 %v2265_v26, %v2301_v3  ;;  %v2016_v40 = vsel %vm541_vm1, %v2014_v4, %v2015_v53  ;;  %v374_v41 = vmax.f32 %v5981_v17, %v5073_v45 }
 0x1dd   : > { %v2778_v20 = vsel %vm1598_vm2, %v2776_v32, %v2777_v18  ;;  %v2936_v9 = vsel %vm1695_vm3, -inf, %v2872_v25  ;;  %v2840_v6 = vsel %vm1598_vm2, %v2777_v18, -inf  ;;  %v2874_v62 = vsel %vm1695_vm3, %v2872_v25, %v2873_v28 }
 0x1de   : > { %v2960_v46 = vmax.f32 %v2778_v20, %v2936_v9  ;;  %v2961_v57 = vmax.f32 %v2840_v6, %v2874_v62  ;;  %v2418_v38 = vmax.f32 %v2130_v27, %v2386_v60  ;;  %v2419_v49 = vmax.f32 %v2131_v30, %v2387_v50 }
 0x1df   : > { %v375_v14 = vmax.f32 %v4824_v51, %v5976_v22  ;;  %v2100_v37 = vmax.f32 %v1920_v55, %v2074_v36  ;;  %v2101_v58 = vmax.f32 %v1978_v42, %v2016_v40  ;;  %v402_v30 = vmax.f32 %v5124_v43, %v374_v41 }
 0x1e0   : > { %v2992_v5 = vmax.f32 %v2704_v13, %v2960_v46  ;;  %v2993_v35 = vmax.f32 %v2705_v54, %v2961_v57  ;;  %v2491_v44 = vrot.slane %v2418_v38, 2  ;;  %v2492_v29 = vrot.slane %v2419_v49, 2 }
 0x1e1   : > { %v2587_v48 = vrot.slane %v2418_v38, 6  ;;  %v2588_v24 = vrot.slane %v2419_v49, 6  ;;  %v403_v45 = vmax.f32 %v4606_v47, %v375_v14  ;;  %v2132_v19 = vmax.f32 %v400_v1, %v2100_v37 }
 0x1e2   : > { %3857 = vst [vmem:[%s4199_s5 + $0x380] sm:$0xff] %v2992_v5  ;;  %3858 = vst [vmem:[%s4199_s5 + $0x388] sm:$0xff] %v2993_v35  ;;  %v2493_v34 = vsel %vm1598_vm2, %v2491_v44, %v2492_v29  ;;  %v2553_v27 = vsel %vm1598_vm2, %v2492_v29, -inf  ;;  %v2133_v21 = vmax.f32 %v401_v23, %v2101_v58  ;;  %v1921_v59 = vrot.slane %v402_v30, 1 }
 0x1e3   : > { %v2589_v22 = vsel %vm1695_vm3, %v2587_v48, %v2588_v24  ;;  %v2649_v2 = vsel %vm1695_vm3, -inf, %v2587_v48  ;;  %v1922_v39 = vrot.slane %v403_v45, 1  ;;  %v2206_v61 = vrot.slane %v2132_v19, 1 }
 0x1e4   : > { %v2674_v10 = vmax.f32 %v2493_v34, %v2649_v2  ;;  %v2675_v8 = vmax.f32 %v2553_v27, %v2589_v22  ;;  %v2207_v13 = vrot.slane %v2133_v21, 1  ;;  %v2302_v54 = vrot.slane %v2132_v19, 7 }
 0x1e5   : > { %v2303_v55 = vrot.slane %v2133_v21, 7  ;;  %v1923_v26 = vsel %vm444_vm0, %v1921_v59, %v1922_v39  ;;  %v1979_v3 = vsel %vm444_vm0, %v1922_v39, -inf  ;;  %v2017_v53 = vrot.slane %v402_v30, 7 }
 0x1e6   : > { %v2706_v42 = vmax.f32 %v2418_v38, %v2674_v10  ;;  %v2707_v31 = vmax.f32 %v2419_v49, %v2675_v8  ;;  %v2208_v15 = vsel %vm444_vm0, %v2206_v61, %v2207_v13  ;;  %v2266_v32 = vsel %vm444_vm0, %v2207_v13, -inf }
 0x1e7   : > { %v2304_v1 = vsel %vm541_vm1, %v2302_v54, %v2303_v55  ;;  %v2362_v23 = vsel %vm541_vm1, -inf, %v2302_v54  ;;  %v2018_v20 = vrot.slane %v403_v45, 7  ;;  %v2075_v41 = vsel %vm541_vm1, -inf, %v2017_v53 }
 0x1e8   : > { %v2779_v18 = vrot.slane %v2706_v42, 2  ;;  %v2780_v25 = vrot.slane %v2707_v31, 2  ;;  %v2875_v28 = vrot.slane %v2706_v42, 6  ;;  %v2876_v60 = vrot.slane %v2707_v31, 6 }
 0x1e9   : > { %v2388_v50 = vmax.f32 %v2208_v15, %v2362_v23  ;;  %v2389_v4 = vmax.f32 %v2266_v32, %v2304_v1  ;;  %v2019_v36 = vsel %vm541_vm1, %v2017_v53, %v2018_v20  ;;  %v376_v14 = vmax.f32 %v5982_v12, %v5104_v52 }
 0x1ea   : > { %v2781_v9 = vsel %vm1598_vm2, %v2779_v18, %v2780_v25  ;;  %v2937_v6 = vsel %vm1695_vm3, -inf, %v2875_v28  ;;  %v2841_v62 = vsel %vm1598_vm2, %v2780_v25, -inf  ;;  %v2877_v46 = vsel %vm1695_vm3, %v2875_v28, %v2876_v60 }
 0x1eb   : > { %v2962_v57 = vmax.f32 %v2781_v9, %v2937_v6  ;;  %v2963_v38 = vmax.f32 %v2841_v62, %v2877_v46  ;;  %v2420_v49 = vmax.f32 %v2132_v19, %v2388_v50  ;;  %v2421_v40 = vmax.f32 %v2133_v21, %v2389_v4 }
 0x1ec   : > { %v377_v5 = vmax.f32 %v5983_v16, %v5977_v7  ;;  %v2102_v58 = vmax.f32 %v1923_v26, %v2075_v41  ;;  %v2103_v34 = vmax.f32 %v1979_v3, %v2019_v36  ;;  %v404_v2 = vmax.f32 %v5979_v11, %v376_v14 }
 0x1ed   : > { %v2994_v35 = vmax.f32 %v2706_v42, %v2962_v57  ;;  %v2995_v44 = vmax.f32 %v2707_v31, %v2963_v38  ;;  %v2494_v29 = vrot.slane %v2420_v49, 2  ;;  %v2495_v48 = vrot.slane %v2421_v40, 2 }
 0x1ee   : > { %v2590_v24 = vrot.slane %v2420_v49, 6  ;;  %v2591_v37 = vrot.slane %v2421_v40, 6  ;;  %v405_v52 = vmax.f32 %v5980_v56, %v377_v5  ;;  %v2134_v21 = vmax.f32 %v402_v30, %v2102_v58 }
 0x1ef   : > { %3859 = vst [vmem:[%s4199_s5 + $0x390] sm:$0xff] %v2994_v35  ;;  %3860 = vst [vmem:[%s4199_s5 + $0x398] sm:$0xff] %v2995_v44  ;;  %v2496_v27 = vsel %vm1598_vm2, %v2494_v29, %v2495_v48  ;;  %v2554_v22 = vsel %vm1598_vm2, %v2495_v48, -inf  ;;  %v2135_v10 = vmax.f32 %v403_v45, %v2103_v34  ;;  %v1924_v39 = vrot.slane %v404_v2, 1 }
 0x1f0   : > { %v2592_v7 = vsel %vm1695_vm3, %v2590_v24, %v2591_v37  ;;  %v2650_v19 = vsel %vm1695_vm3, -inf, %v2590_v24  ;;  %v1925_v61 = vrot.slane %v405_v52, 1  ;;  %v2209_v13 = vrot.slane %v2134_v21, 1 }
 0x1f1   : > { %v2676_v8 = vmax.f32 %v2496_v27, %v2650_v19  ;;  %v2677_v59 = vmax.f32 %v2554_v22, %v2592_v7  ;;  %v2210_v54 = vrot.slane %v2135_v10, 1  ;;  %v2305_v55 = vrot.slane %v2134_v21, 7 }
 0x1f2   : > { %v2306_v42 = vrot.slane %v2135_v10, 7  ;;  %v1926_v3 = vsel %vm444_vm0, %v1924_v39, %v1925_v61  ;;  %v1980_v15 = vsel %vm444_vm0, %v1925_v61, -inf  ;;  %v2020_v4 = vrot.slane %v404_v2, 7 }
 0x1f3   : > { %v2708_v31 = vmax.f32 %v2420_v49, %v2676_v8  ;;  %v2709_v26 = vmax.f32 %v2421_v40, %v2677_v59  ;;  %v2211_v32 = vsel %vm444_vm0, %v2209_v13, %v2210_v54  ;;  %v2267_v1 = vsel %vm444_vm0, %v2210_v54, -inf }
 0x1f4   : > { %v2307_v30 = vsel %vm541_vm1, %v2305_v55, %v2306_v42  ;;  %v2363_v45 = vsel %vm541_vm1, -inf, %v2305_v55  ;;  %v2021_v53 = vrot.slane %v405_v52, 7  ;;  %v2076_v36 = vsel %vm541_vm1, -inf, %v2020_v4 }
 0x1f5   : > { %v2782_v23 = vrot.slane %v2708_v31, 2  ;;  %v2783_v18 = vrot.slane %v2709_v26, 2  ;;  %v2878_v25 = vrot.slane %v2708_v31, 6  ;;  %v2879_v28 = vrot.slane %v2709_v26, 6 }
 0x1f6   : > { %v2390_v60 = vmax.f32 %v2211_v32, %v2363_v45  ;;  %v2391_v50 = vmax.f32 %v2267_v1, %v2307_v30  ;;  %v2022_v40 = vsel %vm541_vm1, %v2020_v4, %v2021_v53  ;;  %v378_v41 = vmax.f32 %v5984_v33, %v5124_v43 }
 0x1f7   : > { %v2784_v20 = vsel %vm1598_vm2, %v2782_v23, %v2783_v18  ;;  %v2938_v9 = vsel %vm1695_vm3, -inf, %v2878_v25  ;;  %v2842_v6 = vsel %vm1598_vm2, %v2783_v18, -inf  ;;  %v2880_v62 = vsel %vm1695_vm3, %v2878_v25, %v2879_v28 }
 0x1f8   : > { %v2964_v46 = vmax.f32 %v2784_v20, %v2938_v9  ;;  %v2965_v57 = vmax.f32 %v2842_v6, %v2880_v62  ;;  %v2422_v38 = vmax.f32 %v2134_v21, %v2390_v60  ;;  %v2423_v49 = vmax.f32 %v2135_v10, %v2391_v50 }
 0x1f9   : > { %v5558_v14 = vmax.f32 %v4824_v51, %v379_v63  ;;  %v2104_v37 = vmax.f32 %v1926_v3, %v2076_v36  ;;  %v2105_v58 = vmax.f32 %v1980_v15, %v2022_v40  ;;  %v406_v27 = vmax.f32 %v5981_v17, %v378_v41 }
 0x1fa   : > { %v2996_v5 = vmax.f32 %v2708_v31, %v2964_v46  ;;  %v2997_v35 = vmax.f32 %v2709_v26, %v2965_v57  ;;  %v2497_v44 = vrot.slane %v2422_v38, 2  ;;  %v2498_v29 = vrot.slane %v2423_v49, 2 }
 0x1fb   : > { %v2593_v48 = vrot.slane %v2422_v38, 6  ;;  %v2594_v24 = vrot.slane %v2423_v49, 6  ;;  %v1928_v47 = vrot.slane %v5558_v14, 1  ;;  %v2136_v7 = vmax.f32 %v404_v2, %v2104_v37 }
 0x1fc   : > { %3861 = vst [vmem:[%s4199_s5 + $0x3a0] sm:$0xff] %v2996_v5  ;;  %3862 = vst [vmem:[%s4199_s5 + $0x3a8] sm:$0xff] %v2997_v35  ;;  %v2499_v34 = vsel %vm1598_vm2, %v2497_v44, %v2498_v29  ;;  %v2555_v43 = vsel %vm1598_vm2, %v2498_v29, -inf  ;;  %v2137_v19 = vmax.f32 %v405_v52, %v2105_v58  ;;  %v1927_v8 = vrot.slane %v406_v27, 1 }
 0x1fd   : > { %v2595_v63 = vsel %vm1695_vm3, %v2593_v48, %v2594_v24  ;;  %v2651_v22 = vsel %vm1695_vm3, -inf, %v2593_v48  ;;  %v1981_v59 = vsel %vm444_vm0, %v1928_v47, -inf  ;;  %v2212_v39 = vrot.slane %v2136_v7, 1 }
 0x1fe   : > { %v2678_v21 = vmax.f32 %v2499_v34, %v2651_v22  ;;  %v2679_v10 = vmax.f32 %v2555_v43, %v2595_v63  ;;  %v2213_v61 = vrot.slane %v2137_v19, 1  ;;  %v2308_v13 = vrot.slane %v2136_v7, 7 }
 0x1ff   : > { %v2309_v54 = vrot.slane %v2137_v19, 7  ;;  %v1929_v31 = vsel %vm444_vm0, %v1927_v8, %v1928_v47  ;;  %v2023_v26 = vrot.slane %v406_v27, 7  ;;  %v2024_v25 = vrot.slane %v5558_v14, 7 }
 0x200   : > { %v2710_v55 = vmax.f32 %v2422_v38, %v2678_v21  ;;  %v2711_v42 = vmax.f32 %v2423_v49, %v2679_v10  ;;  %v2214_v3 = vsel %vm444_vm0, %v2212_v39, %v2213_v61  ;;  %v2268_v15 = vsel %vm444_vm0, %v2213_v61, -inf }
 0x201   : > { %v2310_v2 = vsel %vm541_vm1, %v2308_v13, %v2309_v54  ;;  %v2364_v52 = vsel %vm541_vm1, -inf, %v2308_v13  ;;  %v2077_v28 = vsel %vm541_vm1, -inf, %v2023_v26  ;;  %v2025_v46 = vsel %vm541_vm1, %v2023_v26, %v2024_v25 }
 0x202   : > { %v2785_v32 = vrot.slane %v2710_v55, 2  ;;  %v2786_v1 = vrot.slane %v2711_v42, 2  ;;  %v2881_v30 = vrot.slane %v2710_v55, 6  ;;  %v2882_v45 = vrot.slane %v2711_v42, 6 }
 0x203   : > { %v2392_v23 = vmax.f32 %v2214_v3, %v2364_v52  ;;  %v2393_v18 = vmax.f32 %v2268_v15, %v2310_v2  ;;  %v2106_v57 = vmax.f32 %v1929_v31, %v2077_v28  ;;  %v408_v38 = vmax.f32 %v5982_v12, %v5979_v11 }
 0x204   : > { %v2787_v60 = vsel %vm1598_vm2, %v2785_v32, %v2786_v1  ;;  %v2939_v50 = vsel %vm1695_vm3, -inf, %v2881_v30  ;;  %v2843_v4 = vsel %vm1598_vm2, %v2786_v1, -inf  ;;  %v2883_v53 = vsel %vm1695_vm3, %v2881_v30, %v2882_v45 }
 0x205   : > { %v2966_v20 = vmax.f32 %v2787_v60, %v2939_v50  ;;  %v2967_v9 = vmax.f32 %v2843_v4, %v2883_v53  ;;  %v2424_v6 = vmax.f32 %v2136_v7, %v2392_v23  ;;  %v2425_v62 = vmax.f32 %v2137_v19, %v2393_v18 }
 0x206   : > { %v409_v49 = vmax.f32 %v5983_v16, %v5980_v56  ;;  %v2107_v29 = vmax.f32 %v1981_v59, %v2025_v46  ;;  %v2138_v48 = vmax.f32 %v406_v27, %v2106_v57  ;;  %v1930_v58 = vrot.slane %v408_v38, 1 }
 0x207   : > { %v2998_v40 = vmax.f32 %v2710_v55, %v2966_v20  ;;  %v2999_v36 = vmax.f32 %v2711_v42, %v2967_v9  ;;  %v2500_v41 = vrot.slane %v2424_v6, 2  ;;  %v2501_v5 = vrot.slane %v2425_v62, 2 }
 0x208   : > { %v2596_v35 = vrot.slane %v2424_v6, 6  ;;  %v2597_v44 = vrot.slane %v2425_v62, 6  ;;  %v1931_v34 = vrot.slane %v409_v49, 1  ;;  %v2139_v12 = vmax.f32 %v5558_v14, %v2107_v29 }
 0x209   : > { %3863 = vst [vmem:[%s4199_s5 + $0x3b0] sm:$0xff] %v2998_v40  ;;  %3864 = vst [vmem:[%s4199_s5 + $0x3b8] sm:$0xff] %v2999_v36  ;;  %v2502_v24 = vsel %vm1598_vm2, %v2500_v41, %v2501_v5  ;;  %v2556_v37 = vsel %vm1598_vm2, %v2501_v5, -inf  ;;  %v2215_v16 = vrot.slane %v2138_v48, 1  ;;  %v2311_v63 = vrot.slane %v2138_v48, 7 }
 0x20a   : > { %v2598_v11 = vsel %vm1695_vm3, %v2596_v35, %v2597_v44  ;;  %v2652_v56 = vsel %vm1695_vm3, -inf, %v2596_v35  ;;  %v1932_v27 = vsel %vm444_vm0, %v1930_v58, %v1931_v34  ;;  %v2216_v22 = vrot.slane %v2139_v12, 1 }
 0x20b   : > { %v2680_v43 = vmax.f32 %v2502_v24, %v2652_v56  ;;  %v2681_v47 = vmax.f32 %v2556_v37, %v2598_v11  ;;  %v2312_v7 = vrot.slane %v2139_v12, 7  ;;  %v1982_v19 = vsel %vm444_vm0, %v1931_v34, -inf }
 0x20c   : > { %v2026_v21 = vrot.slane %v408_v38, 7  ;;  %v2365_v59 = vsel %vm541_vm1, -inf, %v2311_v63  ;;  %v2027_v39 = vrot.slane %v409_v49, 7  ;;  %v2217_v61 = vsel %vm444_vm0, %v2215_v16, %v2216_v22 }
 0x20d   : > { %v2712_v10 = vmax.f32 %v2424_v6, %v2680_v43  ;;  %v2713_v8 = vmax.f32 %v2425_v62, %v2681_v47  ;;  %v2269_v14 = vsel %vm444_vm0, %v2216_v22, -inf  ;;  %v2313_v13 = vsel %vm541_vm1, %v2311_v63, %v2312_v7 }
 0x20e   : > { %v2078_v54 = vsel %vm541_vm1, -inf, %v2026_v21  ;;  %v2394_v3 = vmax.f32 %v2217_v61, %v2365_v59  ;;  %v2395_v15 = vmax.f32 %v2269_v14, %v2313_v13  ;;  %v2028_v2 = vsel %vm541_vm1, %v2026_v21, %v2027_v39 }
 0x20f   : > { %v2788_v55 = vrot.slane %v2712_v10, 2  ;;  %v2789_v42 = vrot.slane %v2713_v8, 2  ;;  %v2884_v31 = vrot.slane %v2712_v10, 6  ;;  %v2885_v26 = vrot.slane %v2713_v8, 6 }
 0x210   : > { %v2108_v52 = vmax.f32 %v1932_v27, %v2078_v54  ;;  %v2426_v25 = vmax.f32 %v2138_v48, %v2394_v3  ;;  %v2427_v28 = vmax.f32 %v2139_v12, %v2395_v15  ;;  %v2109_v60 = vmax.f32 %v1982_v19, %v2028_v2 }
 0x211   : > { %v2790_v32 = vsel %vm1598_vm2, %v2788_v55, %v2789_v42  ;;  %v2940_v1 = vsel %vm1695_vm3, -inf, %v2884_v31  ;;  %v2844_v30 = vsel %vm1598_vm2, %v2789_v42, -inf  ;;  %v2886_v45 = vsel %vm1695_vm3, %v2884_v31, %v2885_v26 }
 0x212   : > { %v2968_v23 = vmax.f32 %v2790_v32, %v2940_v1  ;;  %v2969_v18 = vmax.f32 %v2844_v30, %v2886_v45  ;;  %v2140_v50 = vmax.f32 %v408_v38, %v2108_v52  ;;  %v410_v4 = vmax.f32 %v5984_v33, %v5981_v17 }
 0x213   : > { %v411_v53 = vmax.f32 %v4597_v0, %v4824_v51  ;;  %v2503_v6 = vrot.slane %v2426_v25, 2  ;;  %v2504_v62 = vrot.slane %v2427_v28, 2  ;;  %v2599_v46 = vrot.slane %v2426_v25, 6 }
 0x214   : > { %v3000_v20 = vmax.f32 %v2712_v10, %v2968_v23  ;;  %v3001_v9 = vmax.f32 %v2713_v8, %v2969_v18  ;;  %v2600_v57 = vrot.slane %v2427_v28, 6  ;;  %v2141_v40 = vmax.f32 %v409_v49, %v2109_v60 }
 0x215   : > { %v2218_v36 = vrot.slane %v2140_v50, 1  ;;  %v2505_v41 = vsel %vm1598_vm2, %v2503_v6, %v2504_v62  ;;  %v2557_v38 = vsel %vm1598_vm2, %v2504_v62, -inf  ;;  %v2314_v5 = vrot.slane %v2140_v50, 7 }
 0x216   : > { %3865 = vst [vmem:[%s4199_s5 + $0x3c0] sm:$0xff] %v3000_v20  ;;  %3866 = vst [vmem:[%s4199_s5 + $0x3c8] sm:$0xff] %v3001_v9  ;;  %v1933_v35 = vrot.slane %v410_v4, 1  ;;  %v2601_v17 = vsel %vm1695_vm3, %v2599_v46, %v2600_v57  ;;  %v2653_v0 = vsel %vm1695_vm3, -inf, %v2599_v46  ;;  %v2219_v51 = vrot.slane %v2141_v40, 1 }
 0x217   : > { %v2315_v33 = vrot.slane %v2141_v40, 7  ;;  %v2682_v44 = vmax.f32 %v2505_v41, %v2653_v0  ;;  %v2683_v29 = vmax.f32 %v2557_v38, %v2601_v17  ;;  %v2366_v48 = vsel %vm541_vm1, -inf, %v2314_v5 }
 0x218   : > { %v1934_v49 = vrot.slane %v411_v53, 1  ;;  %v2220_v24 = vsel %vm444_vm0, %v2218_v36, %v2219_v51  ;;  %v2270_v37 = vsel %vm444_vm0, %v2219_v51, -inf  ;;  %v2029_v34 = vrot.slane %v410_v4, 7 }
 0x219   : > { %v2316_v58 = vsel %vm541_vm1, %v2314_v5, %v2315_v33  ;;  %v2714_v11 = vmax.f32 %v2426_v25, %v2682_v44  ;;  %v2715_v56 = vmax.f32 %v2427_v28, %v2683_v29  ;;  %v2396_v12 = vmax.f32 %v2220_v24, %v2366_v48 }
 0x21a   : > { %v2397_v16 = vmax.f32 %v2270_v37, %v2316_v58  ;;  %v1935_v43 = vsel %vm444_vm0, %v1933_v35, %v1934_v49  ;;  %v1983_v47 = vsel %vm444_vm0, %v1934_v49, -inf  ;;  %v2030_v63 = vrot.slane %v411_v53, 7 }
 0x21b   : > { %v2079_v27 = vsel %vm541_vm1, -inf, %v2029_v34  ;;  %v2791_v22 = vrot.slane %v2714_v11, 2  ;;  %v2792_v7 = vrot.slane %v2715_v56, 2  ;;  %v2887_v19 = vrot.slane %v2714_v11, 6 }
 0x21c   : > { %v2888_v21 = vrot.slane %v2715_v56, 6  ;;  %v2428_v10 = vmax.f32 %v2140_v50, %v2396_v12  ;;  %v2429_v8 = vmax.f32 %v2141_v40, %v2397_v16  ;;  %v2031_v59 = vsel %vm541_vm1, %v2029_v34, %v2030_v63 }
 0x21d   : > { %v2110_v39 = vmax.f32 %v1935_v43, %v2079_v27  ;;  %v2793_v61 = vsel %vm1598_vm2, %v2791_v22, %v2792_v7  ;;  %v2941_v14 = vsel %vm1695_vm3, -inf, %v2887_v19  ;;  %v2845_v13 = vsel %vm1598_vm2, %v2792_v7, -inf }
 0x21e   : > { %v2889_v54 = vsel %vm1695_vm3, %v2887_v19, %v2888_v21  ;;  %v2970_v55 = vmax.f32 %v2793_v61, %v2941_v14  ;;  %v2506_v31 = vrot.slane %v2428_v10, 2  ;;  %v2507_v26 = vrot.slane %v2429_v8, 2 }
 0x21f   : > { %v2971_v42 = vmax.f32 %v2845_v13, %v2889_v54  ;;  %v2602_v3 = vrot.slane %v2428_v10, 6  ;;  %v2603_v15 = vrot.slane %v2429_v8, 6  ;;  %v2111_v2 = vmax.f32 %v1983_v47, %v2031_v59 }
 0x220   : > { %v2142_v52 = vmax.f32 %v410_v4, %v2110_v39  ;;  %v3002_v32 = vmax.f32 %v2714_v11, %v2970_v55  ;;  %v2508_v30 = vsel %vm1598_vm2, %v2506_v31, %v2507_v26  ;;  %v2558_v45 = vsel %vm1598_vm2, %v2507_v26, -inf  ;;  %v3431_v26 = vld [vmem:[%s4199_s5] sm:$0xff] (%p5985_p7) }
 0x221   : > { %v3003_v1 = vmax.f32 %v2715_v56, %v2971_v42  ;;  %v2604_v23 = vsel %vm1695_vm3, %v2602_v3, %v2603_v15  ;;  %v2654_v18 = vsel %vm1695_vm3, -inf, %v2602_v3  ;;  %v2143_v25 = vmax.f32 %v411_v53, %v2111_v2  ;;  %v3433_v3 = vld [vmem:[%s4199_s5 + $0x8] sm:$0xff] (%p5985_p7)  ;;  %v3435_v15 = vld [vmem:[%s4199_s5 + $0x10] sm:$0xff] (%p5985_p7)  ;;  %v3437_v2 = vld [vmem:[%s4199_s5 + $0x18] sm:$0xff] (%p5985_p7)  ;;  %3432 = vst [vmem:[%s5668_s25] sm:$0xff] (%p5985_p7), %v3431_v26 }
 0x222   : > { %v2221_v28 = vrot.slane %v2142_v52, 1  ;;  %3867 = vst [vmem:[%s4199_s5 + $0x3d0] sm:$0xff] %v3002_v32  ;;  %v2684_v60 = vmax.f32 %v2508_v30, %v2654_v18  ;;  %v2685_v50 = vmax.f32 %v2558_v45, %v2604_v23  ;;  %v2317_v20 = vrot.slane %v2142_v52, 7  ;;  %v3441_v32 = vld [vmem:[%s4199_s5 + $0x28] sm:$0xff] (%p5985_p7)  ;;  %v3445_v30 = vld [vmem:[%s4199_s5 + $0x38] sm:$0xff] (%p5985_p7)  ;;  %v3447_v45 = vld [vmem:[%s4199_s5 + $0x40] sm:$0xff] (%p5985_p7) }
 0x223   : > { %3868 = vst [vmem:[%s4199_s5 + $0x3d8] sm:$0xff] %v3003_v1  ;;  %v2222_v9 = vrot.slane %v2143_v25, 1  ;;  %v2318_v6 = vrot.slane %v2143_v25, 7  ;;  %v3443_v1 = vld [vmem:[%s4199_s5 + $0x30] sm:$0xff] (%p5985_p7)  ;;  %v3449_v23 = vld [vmem:[%s4199_s5 + $0x48] sm:$0xff] (%p5985_p7)  ;;  %3434 = vst [vmem:[%s5668_s25 + $0x10] sm:$0xff] (%p5985_p7), %v3433_v3 }
 0x224   : > { %v2716_v4 = vmax.f32 %v2428_v10, %v2684_v60  ;;  %v2717_v62 = vmax.f32 %v2429_v8, %v2685_v50  ;;  %v2367_v46 = vsel %vm541_vm1, -inf, %v2317_v20  ;;  %v3451_v18 = vld [vmem:[%s4199_s5 + $0x50] sm:$0xff] (%p5985_p7)  ;;  %3436 = vst [vmem:[%s5668_s25 + $0x20] sm:$0xff] (%p5985_p7), %v3435_v15  ;;  %3438 = vst [vmem:[%s5668_s25 + $0x30] sm:$0xff] (%p5985_p7), %v3437_v2  ;;  %v3457_v60 = vld [vmem:[%s4199_s5 + $0x68] sm:$0xff] (%p5985_p7) }
 0x225   : > { %v2223_v57 = vsel %vm444_vm0, %v2221_v28, %v2222_v9  ;;  %v2271_v40 = vsel %vm444_vm0, %v2222_v9, -inf  ;;  %v2319_v36 = vsel %vm541_vm1, %v2317_v20, %v2318_v6  ;;  %3442 = vst [vmem:[%s5668_s25 + $0x50] sm:$0xff] (%p5985_p7), %v3441_v32  ;;  %3444 = vst [vmem:[%s5668_s25 + $0x60] sm:$0xff] (%p5985_p7), %v3443_v1  ;;  %v3455_v28 = vld [vmem:[%s4199_s5 + $0x60] sm:$0xff] (%p5985_p7)  ;;  %v3459_v50 = vld [vmem:[%s4199_s5 + $0x70] sm:$0xff] (%p5985_p7) }
 0x226   : > { %v2794_v41 = vrot.slane %v2716_v4, 2  ;;  %v2795_v53 = vrot.slane %v2717_v62, 2  ;;  %v2890_v38 = vrot.slane %v2716_v4, 6  ;;  %v2891_v5 = vrot.slane %v2717_v62, 6  ;;  %3446 = vst [vmem:[%s5668_s25 + $0x70] sm:$0xff] (%p5985_p7), %v3445_v30  ;;  %3448 = vst [vmem:[%s5668_s25 + $0x80] sm:$0xff] (%p5985_p7), %v3447_v45 }
 0x227   : > { %v2398_v35 = vmax.f32 %v2223_v57, %v2367_v46  ;;  %v2399_v17 = vmax.f32 %v2271_v40, %v2319_v36  ;;  %3450 = vst [vmem:[%s5668_s25 + $0x90] sm:$0xff] (%p5985_p7), %v3449_v23  ;;  %3452 = vst [vmem:[%s5668_s25 + $0xa0] sm:$0xff] (%p5985_p7), %v3451_v18  ;;  %v3461_v20 = vld [vmem:[%s4199_s5 + $0x78] sm:$0xff] (%p5985_p7)  ;;  %v3463_v9 = vld [vmem:[%s4199_s5 + $0x80] sm:$0xff] (%p5985_p7) }
 0x228   : > { %v2796_v0 = vsel %vm1598_vm2, %v2794_v41, %v2795_v53  ;;  %v2942_v51 = vsel %vm1695_vm3, -inf, %v2890_v38  ;;  %v2846_v33 = vsel %vm1598_vm2, %v2795_v53, -inf  ;;  %v2892_v44 = vsel %vm1695_vm3, %v2890_v38, %v2891_v5  ;;  %3456 = vst [vmem:[%s5668_s25 + $0xc0] sm:$0xff] (%p5985_p7), %v3455_v28  ;;  %3458 = vst [vmem:[%s5668_s25 + $0xd0] sm:$0xff] (%p5985_p7), %v3457_v60  ;;  %v3465_v6 = vld [vmem:[%s4199_s5 + $0x88] sm:$0xff] (%p5985_p7)  ;;  %v3471_v46 = vld [vmem:[%s4199_s5 + $0xa0] sm:$0xff] (%p5985_p7) }
 0x229   : > { %v2972_v29 = vmax.f32 %v2796_v0, %v2942_v51  ;;  %v2973_v48 = vmax.f32 %v2846_v33, %v2892_v44  ;;  %v2430_v49 = vmax.f32 %v2142_v52, %v2398_v35  ;;  %v2431_v24 = vmax.f32 %v2143_v25, %v2399_v17  ;;  %v3439_v52 = vld [vmem:[%s4199_s5 + $0x20] sm:$0xff] (%p5985_p7)  ;;  %v3453_v25 = vld [vmem:[%s4199_s5 + $0x58] sm:$0xff] (%p5985_p7)  ;;  %3460 = vst [vmem:[%s5668_s25 + $0xe0] sm:$0xff] (%p5985_p7), %v3459_v50  ;;  %v3473_v57 = vld [vmem:[%s4199_s5 + $0xa8] sm:$0xff] (%p5985_p7) }
 0x22a   : > { %3440 = vst [vmem:[%s5668_s25 + $0x40] sm:$0xff] (%p5985_p7), %v3439_v52  ;;  %3454 = vst [vmem:[%s5668_s25 + $0xb0] sm:$0xff] (%p5985_p7), %v3453_v25  ;;  %v3475_v40 = vld [vmem:[%s4199_s5 + $0xb0] sm:$0xff] (%p5985_p7)  ;;  %v3477_v36 = vld [vmem:[%s4199_s5 + $0xb8] sm:$0xff] (%p5985_p7) }
 0x22b   : > { %v3004_v37 = vmax.f32 %v2716_v4, %v2972_v29  ;;  %v3005_v58 = vmax.f32 %v2717_v62, %v2973_v48  ;;  %v2509_v34 = vrot.slane %v2430_v49, 2  ;;  %v2510_v11 = vrot.slane %v2431_v24, 2  ;;  %3462 = vst [vmem:[%s5668_s25 + $0xf0] sm:$0xff] (%p5985_p7), %v3461_v20  ;;  %3464 = vst [vmem:[%s5668_s25 + $0x100] sm:$0xff] (%p5985_p7), %v3463_v9  ;;  %v3467_v4 = vld [vmem:[%s4199_s5 + $0x90] sm:$0xff] (%p5985_p7)  ;;  %v3469_v62 = vld [vmem:[%s4199_s5 + $0x98] sm:$0xff] (%p5985_p7) }
 0x22c   : > { %v2605_v56 = vrot.slane %v2430_v49, 6  ;;  %v2606_v12 = vrot.slane %v2431_v24, 6  ;;  %3466 = vst [vmem:[%s5668_s25 + $0x110] sm:$0xff] (%p5985_p7), %v3465_v6  ;;  %3468 = vst [vmem:[%s5668_s25 + $0x120] sm:$0xff] (%p5985_p7), %v3467_v4  ;;  %v3479_v41 = vld [vmem:[%s4199_s5 + $0xc0] sm:$0xff] (%p5985_p7)  ;;  %v3481_v53 = vld [vmem:[%s4199_s5 + $0xc8] sm:$0xff] (%p5985_p7) }
 0x22d   : > { %3869 = vst [vmem:[%s4199_s5 + $0x3e0] sm:$0xff] %v3004_v37  ;;  %3870 = vst [vmem:[%s4199_s5 + $0x3e8] sm:$0xff] %v3005_v58  ;;  %v2511_v16 = vsel %vm1598_vm2, %v2509_v34, %v2510_v11  ;;  %v2559_v43 = vsel %vm1598_vm2, %v2510_v11, -inf  ;;  %v3483_v38 = vld [vmem:[%s4199_s5 + $0xd0] sm:$0xff] (%p5985_p7)  ;;  %v3485_v5 = vld [vmem:[%s4199_s5 + $0xd8] sm:$0xff] (%p5985_p7) }
 0x22e   : > { %v2607_v47 = vsel %vm1695_vm3, %v2605_v56, %v2606_v12  ;;  %v2655_v63 = vsel %vm1695_vm3, -inf, %v2605_v56  ;;  %3470 = vst [vmem:[%s5668_s25 + $0x130] sm:$0xff] (%p5985_p7), %v3469_v62  ;;  %3472 = vst [vmem:[%s5668_s25 + $0x140] sm:$0xff] (%p5985_p7), %v3471_v46  ;;  %v3487_v35 = vld [vmem:[%s4199_s5 + $0xe0] sm:$0xff] (%p5985_p7)  ;;  %v3489_v17 = vld [vmem:[%s4199_s5 + $0xe8] sm:$0xff] (%p5985_p7) }
 0x22f   : > { %v2686_v27 = vmax.f32 %v2511_v16, %v2655_v63  ;;  %v2687_v22 = vmax.f32 %v2559_v43, %v2607_v47  ;;  %3474 = vst [vmem:[%s5668_s25 + $0x150] sm:$0xff] (%p5985_p7), %v3473_v57  ;;  %3476 = vst [vmem:[%s5668_s25 + $0x160] sm:$0xff] (%p5985_p7), %v3475_v40  ;;  %v3491_v0 = vld [vmem:[%s4199_s5 + $0xf0] sm:$0xff] (%p5985_p7)  ;;  %v3493_v51 = vld [vmem:[%s4199_s5 + $0xf8] sm:$0xff] (%p5985_p7) }
 0x230   : > { %3478 = vst [vmem:[%s5668_s25 + $0x170] sm:$0xff] (%p5985_p7), %v3477_v36  ;;  %3480 = vst [vmem:[%s5668_s25 + $0x180] sm:$0xff] (%p5985_p7), %v3479_v41  ;;  %v3495_v33 = vld [vmem:[%s4199_s5 + $0x100] sm:$0xff] (%p5985_p7)  ;;  %v3497_v44 = vld [vmem:[%s4199_s5 + $0x108] sm:$0xff] (%p5985_p7) }
 0x231   : > { %v2718_v7 = vmax.f32 %v2430_v49, %v2686_v27  ;;  %v2719_v19 = vmax.f32 %v2431_v24, %v2687_v22  ;;  %3482 = vst [vmem:[%s5668_s25 + $0x190] sm:$0xff] (%p5985_p7), %v3481_v53  ;;  %3484 = vst [vmem:[%s5668_s25 + $0x1a0] sm:$0xff] (%p5985_p7), %v3483_v38  ;;  %v3499_v29 = vld [vmem:[%s4199_s5 + $0x110] sm:$0xff] (%p5985_p7)  ;;  %v3501_v48 = vld [vmem:[%s4199_s5 + $0x118] sm:$0xff] (%p5985_p7) }
 0x232   : > { %3486 = vst [vmem:[%s5668_s25 + $0x1b0] sm:$0xff] (%p5985_p7), %v3485_v5  ;;  %3488 = vst [vmem:[%s5668_s25 + $0x1c0] sm:$0xff] (%p5985_p7), %v3487_v35  ;;  %v3503_v49 = vld [vmem:[%s4199_s5 + $0x120] sm:$0xff] (%p5985_p7)  ;;  %v3505_v24 = vld [vmem:[%s4199_s5 + $0x128] sm:$0xff] (%p5985_p7) }
 0x233   : > { %v2797_v21 = vrot.slane %v2718_v7, 2  ;;  %v2798_v10 = vrot.slane %v2719_v19, 2  ;;  %v2893_v8 = vrot.slane %v2718_v7, 6  ;;  %v2894_v59 = vrot.slane %v2719_v19, 6  ;;  %3490 = vst [vmem:[%s5668_s25 + $0x1d0] sm:$0xff] (%p5985_p7), %v3489_v17  ;;  %3492 = vst [vmem:[%s5668_s25 + $0x1e0] sm:$0xff] (%p5985_p7), %v3491_v0 }
 0x234   : > { %3145 = sbr.rel (!%p5985_p7) target bundleno = 614 (0x266), region = 32  ;;  %3494 = vst [vmem:[%s5668_s25 + $0x1f0] sm:$0xff] (%p5985_p7), %v3493_v51  ;;  %3496 = vst [vmem:[%s5668_s25 + $0x200] sm:$0xff] (%p5985_p7), %v3495_v33  ;;  %v3507_v37 = vld [vmem:[%s4199_s5 + $0x130] sm:$0xff] (%p5985_p7)  ;;  %v3509_v58 = vld [vmem:[%s4199_s5 + $0x138] sm:$0xff] (%p5985_p7) }
 0x235   : > { %v2799_v39 = vsel %vm1598_vm2, %v2797_v21, %v2798_v10  ;;  %v2943_v61 = vsel %vm1695_vm3, -inf, %v2893_v8  ;;  %v2847_v14 = vsel %vm1598_vm2, %v2798_v10, -inf  ;;  %v2895_v13 = vsel %vm1695_vm3, %v2893_v8, %v2894_v59  ;;  %3498 = vst [vmem:[%s5668_s25 + $0x210] sm:$0xff] (%p5985_p7), %v3497_v44  ;;  %3500 = vst [vmem:[%s5668_s25 + $0x220] sm:$0xff] (%p5985_p7), %v3499_v29  ;;  %v3511_v34 = vld [vmem:[%s4199_s5 + $0x140] sm:$0xff] (%p5985_p7)  ;;  %v3513_v11 = vld [vmem:[%s4199_s5 + $0x148] sm:$0xff] (%p5985_p7) }
 0x236   : > { %v2974_v54 = vmax.f32 %v2799_v39, %v2943_v61  ;;  %v2975_v55 = vmax.f32 %v2847_v14, %v2895_v13  ;;  %3502 = vst [vmem:[%s5668_s25 + $0x230] sm:$0xff] (%p5985_p7), %v3501_v48  ;;  %3504 = vst [vmem:[%s5668_s25 + $0x240] sm:$0xff] (%p5985_p7), %v3503_v49  ;;  %v3515_v56 = vld [vmem:[%s4199_s5 + $0x150] sm:$0xff] (%p5985_p7)  ;;  %v3517_v12 = vld [vmem:[%s4199_s5 + $0x158] sm:$0xff] (%p5985_p7) }
 0x237   : > { %3506 = vst [vmem:[%s5668_s25 + $0x250] sm:$0xff] (%p5985_p7), %v3505_v24  ;;  %3508 = vst [vmem:[%s5668_s25 + $0x260] sm:$0xff] (%p5985_p7), %v3507_v37  ;;  %v3519_v16 = vld [vmem:[%s4199_s5 + $0x160] sm:$0xff] (%p5985_p7)  ;;  %v3521_v43 = vld [vmem:[%s4199_s5 + $0x168] sm:$0xff] (%p5985_p7) }
 0x238   : > { %v3006_v42 = vmax.f32 %v2718_v7, %v2974_v54  ;;  %v3007_v31 = vmax.f32 %v2719_v19, %v2975_v55  ;;  %3510 = vst [vmem:[%s5668_s25 + $0x270] sm:$0xff] (%p5985_p7), %v3509_v58  ;;  %3512 = vst [vmem:[%s5668_s25 + $0x280] sm:$0xff] (%p5985_p7), %v3511_v34  ;;  %v3523_v47 = vld [vmem:[%s4199_s5 + $0x170] sm:$0xff] (%p5985_p7)  ;;  %v3525_v63 = vld [vmem:[%s4199_s5 + $0x178] sm:$0xff] (%p5985_p7) }
 0x239   : > { %3514 = vst [vmem:[%s5668_s25 + $0x290] sm:$0xff] (%p5985_p7), %v3513_v11  ;;  %3516 = vst [vmem:[%s5668_s25 + $0x2a0] sm:$0xff] (%p5985_p7), %v3515_v56  ;;  %v3527_v27 = vld [vmem:[%s4199_s5 + $0x180] sm:$0xff] (%p5985_p7)  ;;  %v3529_v22 = vld [vmem:[%s4199_s5 + $0x188] sm:$0xff] (%p5985_p7) }
 0x23a   : > { %3871 = vst [vmem:[%s4199_s5 + $0x3f0] sm:$0xff] %v3006_v42  ;;  %3872 = vst [vmem:[%s4199_s5 + $0x3f8] sm:$0xff] %v3007_v31  ;;  %v3531_v7 = vld [vmem:[%s4199_s5 + $0x190] sm:$0xff] (%p5985_p7)  ;;  %v3533_v19 = vld [vmem:[%s4199_s5 + $0x198] sm:$0xff] (%p5985_p7) }
 0x23b   : > { %3518 = vst [vmem:[%s5668_s25 + $0x2b0] sm:$0xff] %v3517_v12  ;;  %3520 = vst [vmem:[%s5668_s25 + $0x2c0] sm:$0xff] %v3519_v16  ;;  %v3535_v21 = vld [vmem:[%s4199_s5 + $0x1a0] sm:$0xff]  ;;  %v3537_v10 = vld [vmem:[%s4199_s5 + $0x1a8] sm:$0xff] }
 0x23c   : > { %3522 = vst [vmem:[%s5668_s25 + $0x2d0] sm:$0xff] %v3521_v43  ;;  %3524 = vst [vmem:[%s5668_s25 + $0x2e0] sm:$0xff] %v3523_v47  ;;  %v3539_v8 = vld [vmem:[%s4199_s5 + $0x1b0] sm:$0xff]  ;;  %v3541_v59 = vld [vmem:[%s4199_s5 + $0x1b8] sm:$0xff] }
 0x23d   : > { %3526 = vst [vmem:[%s5668_s25 + $0x2f0] sm:$0xff] %v3525_v63  ;;  %3528 = vst [vmem:[%s5668_s25 + $0x300] sm:$0xff] %v3527_v27  ;;  %v3543_v39 = vld [vmem:[%s4199_s5 + $0x1c0] sm:$0xff]  ;;  %v3545_v61 = vld [vmem:[%s4199_s5 + $0x1c8] sm:$0xff] }
 0x23e   : > { %3530 = vst [vmem:[%s5668_s25 + $0x310] sm:$0xff] %v3529_v22  ;;  %3532 = vst [vmem:[%s5668_s25 + $0x320] sm:$0xff] %v3531_v7  ;;  %v3547_v14 = vld [vmem:[%s4199_s5 + $0x1d0] sm:$0xff]  ;;  %v3549_v13 = vld [vmem:[%s4199_s5 + $0x1d8] sm:$0xff] }
 0x23f   : > { %3534 = vst [vmem:[%s5668_s25 + $0x330] sm:$0xff] %v3533_v19  ;;  %3536 = vst [vmem:[%s5668_s25 + $0x340] sm:$0xff] %v3535_v21  ;;  %v3551_v54 = vld [vmem:[%s4199_s5 + $0x1e0] sm:$0xff]  ;;  %v3553_v55 = vld [vmem:[%s4199_s5 + $0x1e8] sm:$0xff] }
 0x240   : > { %3538 = vst [vmem:[%s5668_s25 + $0x350] sm:$0xff] %v3537_v10  ;;  %3540 = vst [vmem:[%s5668_s25 + $0x360] sm:$0xff] %v3539_v8  ;;  %v3555_v42 = vld [vmem:[%s4199_s5 + $0x1f0] sm:$0xff]  ;;  %v3557_v31 = vld [vmem:[%s4199_s5 + $0x1f8] sm:$0xff] }
 0x241   : > { %3542 = vst [vmem:[%s5668_s25 + $0x370] sm:$0xff] %v3541_v59  ;;  %3544 = vst [vmem:[%s5668_s25 + $0x380] sm:$0xff] %v3543_v39  ;;  %v3559_v26 = vld [vmem:[%s4199_s5 + $0x200] sm:$0xff]  ;;  %v3561_v3 = vld [vmem:[%s4199_s5 + $0x208] sm:$0xff] }
 0x242   : > { %3546 = vst [vmem:[%s5668_s25 + $0x390] sm:$0xff] %v3545_v61  ;;  %3548 = vst [vmem:[%s5668_s25 + $0x3a0] sm:$0xff] %v3547_v14  ;;  %v3563_v15 = vld [vmem:[%s4199_s5 + $0x210] sm:$0xff]  ;;  %v3565_v2 = vld [vmem:[%s4199_s5 + $0x218] sm:$0xff] }
 0x243   : > { %3550 = vst [vmem:[%s5668_s25 + $0x3b0] sm:$0xff] %v3549_v13  ;;  %3552 = vst [vmem:[%s5668_s25 + $0x3c0] sm:$0xff] %v3551_v54  ;;  %v3567_v52 = vld [vmem:[%s4199_s5 + $0x220] sm:$0xff]  ;;  %v3569_v32 = vld [vmem:[%s4199_s5 + $0x228] sm:$0xff] }
 0x244   : > { %3554 = vst [vmem:[%s5668_s25 + $0x3d0] sm:$0xff] %v3553_v55  ;;  %3556 = vst [vmem:[%s5668_s25 + $0x3e0] sm:$0xff] %v3555_v42  ;;  %v3571_v1 = vld [vmem:[%s4199_s5 + $0x230] sm:$0xff]  ;;  %v3573_v30 = vld [vmem:[%s4199_s5 + $0x238] sm:$0xff] }
 0x245   : > { %3558 = vst [vmem:[%s5668_s25 + $0x3f0] sm:$0xff] %v3557_v31  ;;  %3560 = vst [vmem:[%s5668_s25 + $0x400] sm:$0xff] %v3559_v26  ;;  %v3575_v45 = vld [vmem:[%s4199_s5 + $0x240] sm:$0xff]  ;;  %v3577_v23 = vld [vmem:[%s4199_s5 + $0x248] sm:$0xff] }
 0x246   : > { %3562 = vst [vmem:[%s5668_s25 + $0x410] sm:$0xff] %v3561_v3  ;;  %3564 = vst [vmem:[%s5668_s25 + $0x420] sm:$0xff] %v3563_v15  ;;  %v3579_v18 = vld [vmem:[%s4199_s5 + $0x250] sm:$0xff]  ;;  %v3581_v25 = vld [vmem:[%s4199_s5 + $0x258] sm:$0xff] }
 0x247   : > { %3566 = vst [vmem:[%s5668_s25 + $0x430] sm:$0xff] %v3565_v2  ;;  %3568 = vst [vmem:[%s5668_s25 + $0x440] sm:$0xff] %v3567_v52  ;;  %v3583_v28 = vld [vmem:[%s4199_s5 + $0x260] sm:$0xff]  ;;  %v3585_v60 = vld [vmem:[%s4199_s5 + $0x268] sm:$0xff] }
 0x248   : > { %3570 = vst [vmem:[%s5668_s25 + $0x450] sm:$0xff] %v3569_v32  ;;  %3572 = vst [vmem:[%s5668_s25 + $0x460] sm:$0xff] %v3571_v1  ;;  %v3587_v50 = vld [vmem:[%s4199_s5 + $0x270] sm:$0xff]  ;;  %v3589_v20 = vld [vmem:[%s4199_s5 + $0x278] sm:$0xff] }
 0x249   : > { %3574 = vst [vmem:[%s5668_s25 + $0x470] sm:$0xff] %v3573_v30  ;;  %3576 = vst [vmem:[%s5668_s25 + $0x480] sm:$0xff] %v3575_v45  ;;  %v3591_v9 = vld [vmem:[%s4199_s5 + $0x280] sm:$0xff]  ;;  %v3593_v6 = vld [vmem:[%s4199_s5 + $0x288] sm:$0xff] }
 0x24a   : > { %3578 = vst [vmem:[%s5668_s25 + $0x490] sm:$0xff] %v3577_v23  ;;  %3580 = vst [vmem:[%s5668_s25 + $0x4a0] sm:$0xff] %v3579_v18  ;;  %v3595_v4 = vld [vmem:[%s4199_s5 + $0x290] sm:$0xff]  ;;  %v3597_v62 = vld [vmem:[%s4199_s5 + $0x298] sm:$0xff] }
 0x24b   : > { %3582 = vst [vmem:[%s5668_s25 + $0x4b0] sm:$0xff] %v3581_v25  ;;  %3584 = vst [vmem:[%s5668_s25 + $0x4c0] sm:$0xff] %v3583_v28  ;;  %v3599_v46 = vld [vmem:[%s4199_s5 + $0x2a0] sm:$0xff]  ;;  %v3601_v57 = vld [vmem:[%s4199_s5 + $0x2a8] sm:$0xff] }
 0x24c   : > { %3586 = vst [vmem:[%s5668_s25 + $0x4d0] sm:$0xff] %v3585_v60  ;;  %3588 = vst [vmem:[%s5668_s25 + $0x4e0] sm:$0xff] %v3587_v50  ;;  %v3603_v40 = vld [vmem:[%s4199_s5 + $0x2b0] sm:$0xff]  ;;  %v3605_v36 = vld [vmem:[%s4199_s5 + $0x2b8] sm:$0xff] }
 0x24d   : > { %3590 = vst [vmem:[%s5668_s25 + $0x4f0] sm:$0xff] %v3589_v20  ;;  %3592 = vst [vmem:[%s5668_s25 + $0x500] sm:$0xff] %v3591_v9  ;;  %v3607_v41 = vld [vmem:[%s4199_s5 + $0x2c0] sm:$0xff]  ;;  %v3609_v53 = vld [vmem:[%s4199_s5 + $0x2c8] sm:$0xff] }
 0x24e   : > { %3594 = vst [vmem:[%s5668_s25 + $0x510] sm:$0xff] %v3593_v6  ;;  %3596 = vst [vmem:[%s5668_s25 + $0x520] sm:$0xff] %v3595_v4  ;;  %v3611_v38 = vld [vmem:[%s4199_s5 + $0x2d0] sm:$0xff]  ;;  %v3613_v5 = vld [vmem:[%s4199_s5 + $0x2d8] sm:$0xff] }
 0x24f   : > { %3598 = vst [vmem:[%s5668_s25 + $0x530] sm:$0xff] %v3597_v62  ;;  %3600 = vst [vmem:[%s5668_s25 + $0x540] sm:$0xff] %v3599_v46  ;;  %v3615_v35 = vld [vmem:[%s4199_s5 + $0x2e0] sm:$0xff]  ;;  %v3617_v17 = vld [vmem:[%s4199_s5 + $0x2e8] sm:$0xff] }
 0x250   : > { %3602 = vst [vmem:[%s5668_s25 + $0x550] sm:$0xff] %v3601_v57  ;;  %3604 = vst [vmem:[%s5668_s25 + $0x560] sm:$0xff] %v3603_v40  ;;  %v3619_v0 = vld [vmem:[%s4199_s5 + $0x2f0] sm:$0xff]  ;;  %v3621_v51 = vld [vmem:[%s4199_s5 + $0x2f8] sm:$0xff] }
 0x251   : > { %3606 = vst [vmem:[%s5668_s25 + $0x570] sm:$0xff] %v3605_v36  ;;  %3608 = vst [vmem:[%s5668_s25 + $0x580] sm:$0xff] %v3607_v41  ;;  %v3623_v33 = vld [vmem:[%s4199_s5 + $0x300] sm:$0xff]  ;;  %v3625_v44 = vld [vmem:[%s4199_s5 + $0x308] sm:$0xff] }
 0x252   : > { %3610 = vst [vmem:[%s5668_s25 + $0x590] sm:$0xff] %v3609_v53  ;;  %3612 = vst [vmem:[%s5668_s25 + $0x5a0] sm:$0xff] %v3611_v38  ;;  %v3627_v29 = vld [vmem:[%s4199_s5 + $0x310] sm:$0xff]  ;;  %v3629_v48 = vld [vmem:[%s4199_s5 + $0x318] sm:$0xff] }
 0x253   : > { %3614 = vst [vmem:[%s5668_s25 + $0x5b0] sm:$0xff] %v3613_v5  ;;  %3616 = vst [vmem:[%s5668_s25 + $0x5c0] sm:$0xff] %v3615_v35  ;;  %v3631_v49 = vld [vmem:[%s4199_s5 + $0x320] sm:$0xff]  ;;  %v3633_v24 = vld [vmem:[%s4199_s5 + $0x328] sm:$0xff] }
 0x254   : > { %3618 = vst [vmem:[%s5668_s25 + $0x5d0] sm:$0xff] %v3617_v17  ;;  %3620 = vst [vmem:[%s5668_s25 + $0x5e0] sm:$0xff] %v3619_v0  ;;  %v3635_v37 = vld [vmem:[%s4199_s5 + $0x330] sm:$0xff]  ;;  %v3637_v58 = vld [vmem:[%s4199_s5 + $0x338] sm:$0xff] }
 0x255   : > { %3622 = vst [vmem:[%s5668_s25 + $0x5f0] sm:$0xff] %v3621_v51  ;;  %3624 = vst [vmem:[%s5668_s25 + $0x600] sm:$0xff] %v3623_v33  ;;  %v3639_v34 = vld [vmem:[%s4199_s5 + $0x340] sm:$0xff]  ;;  %v3641_v11 = vld [vmem:[%s4199_s5 + $0x348] sm:$0xff] }
 0x256   : > { %3626 = vst [vmem:[%s5668_s25 + $0x610] sm:$0xff] %v3625_v44  ;;  %3628 = vst [vmem:[%s5668_s25 + $0x620] sm:$0xff] %v3627_v29  ;;  %v3643_v56 = vld [vmem:[%s4199_s5 + $0x350] sm:$0xff]  ;;  %v3645_v12 = vld [vmem:[%s4199_s5 + $0x358] sm:$0xff] }
 0x257   : > { %3630 = vst [vmem:[%s5668_s25 + $0x630] sm:$0xff] %v3629_v48  ;;  %3632 = vst [vmem:[%s5668_s25 + $0x640] sm:$0xff] %v3631_v49  ;;  %v3647_v16 = vld [vmem:[%s4199_s5 + $0x360] sm:$0xff]  ;;  %v3649_v43 = vld [vmem:[%s4199_s5 + $0x368] sm:$0xff] }
 0x258   : > { %3634 = vst [vmem:[%s5668_s25 + $0x650] sm:$0xff] %v3633_v24  ;;  %3636 = vst [vmem:[%s5668_s25 + $0x660] sm:$0xff] %v3635_v37  ;;  %v3651_v47 = vld [vmem:[%s4199_s5 + $0x370] sm:$0xff]  ;;  %v3653_v63 = vld [vmem:[%s4199_s5 + $0x378] sm:$0xff] }
 0x259   : > { %3638 = vst [vmem:[%s5668_s25 + $0x670] sm:$0xff] %v3637_v58  ;;  %3640 = vst [vmem:[%s5668_s25 + $0x680] sm:$0xff] %v3639_v34  ;;  %v3655_v27 = vld [vmem:[%s4199_s5 + $0x380] sm:$0xff]  ;;  %v3657_v22 = vld [vmem:[%s4199_s5 + $0x388] sm:$0xff] }
 0x25a   : > { %3642 = vst [vmem:[%s5668_s25 + $0x690] sm:$0xff] %v3641_v11  ;;  %3644 = vst [vmem:[%s5668_s25 + $0x6a0] sm:$0xff] %v3643_v56  ;;  %v3659_v7 = vld [vmem:[%s4199_s5 + $0x390] sm:$0xff]  ;;  %v3661_v19 = vld [vmem:[%s4199_s5 + $0x398] sm:$0xff] }
 0x25b   : > { %3646 = vst [vmem:[%s5668_s25 + $0x6b0] sm:$0xff] %v3645_v12  ;;  %3648 = vst [vmem:[%s5668_s25 + $0x6c0] sm:$0xff] %v3647_v16  ;;  %v3663_v21 = vld [vmem:[%s4199_s5 + $0x3a0] sm:$0xff]  ;;  %v3665_v10 = vld [vmem:[%s4199_s5 + $0x3a8] sm:$0xff] }
 0x25c   : > { %3650 = vst [vmem:[%s5668_s25 + $0x6d0] sm:$0xff] %v3649_v43  ;;  %3652 = vst [vmem:[%s5668_s25 + $0x6e0] sm:$0xff] %v3651_v47  ;;  %v3667_v8 = vld [vmem:[%s4199_s5 + $0x3b0] sm:$0xff]  ;;  %v3669_v59 = vld [vmem:[%s4199_s5 + $0x3b8] sm:$0xff] }
 0x25d   : > { %3654 = vst [vmem:[%s5668_s25 + $0x6f0] sm:$0xff] %v3653_v63  ;;  %3656 = vst [vmem:[%s5668_s25 + $0x700] sm:$0xff] %v3655_v27  ;;  %v3671_v39 = vld [vmem:[%s4199_s5 + $0x3c0] sm:$0xff]  ;;  %v3673_v61 = vld [vmem:[%s4199_s5 + $0x3c8] sm:$0xff] }
 0x25e   : > { %3658 = vst [vmem:[%s5668_s25 + $0x710] sm:$0xff] %v3657_v22  ;;  %3660 = vst [vmem:[%s5668_s25 + $0x720] sm:$0xff] %v3659_v7  ;;  %v3675_v14 = vld [vmem:[%s4199_s5 + $0x3d0] sm:$0xff]  ;;  %v3677_v13 = vld [vmem:[%s4199_s5 + $0x3d8] sm:$0xff] }
 0x25f   : > { %3662 = vst [vmem:[%s5668_s25 + $0x730] sm:$0xff] %v3661_v19  ;;  %3664 = vst [vmem:[%s5668_s25 + $0x740] sm:$0xff] %v3663_v21  ;;  %v3679_v54 = vld [vmem:[%s4199_s5 + $0x3e0] sm:$0xff]  ;;  %v3681_v55 = vld [vmem:[%s4199_s5 + $0x3e8] sm:$0xff] }
 0x260   : > { %3666 = vst [vmem:[%s5668_s25 + $0x750] sm:$0xff] %v3665_v10  ;;  %3668 = vst [vmem:[%s5668_s25 + $0x760] sm:$0xff] %v3667_v8  ;;  %v3683_v42 = vld [vmem:[%s4199_s5 + $0x3f0] sm:$0xff]  ;;  %v3685_v31 = vld [vmem:[%s4199_s5 + $0x3f8] sm:$0xff] }
 0x261   : > { %3670 = vst [vmem:[%s5668_s25 + $0x770] sm:$0xff] %v3669_v59  ;;  %3672 = vst [vmem:[%s5668_s25 + $0x780] sm:$0xff] %v3671_v39 }
 0x262   : > { %3674 = vst [vmem:[%s5668_s25 + $0x790] sm:$0xff] %v3673_v61  ;;  %3676 = vst [vmem:[%s5668_s25 + $0x7a0] sm:$0xff] %v3675_v14 }
 0x263   : > { %3678 = vst [vmem:[%s5668_s25 + $0x7b0] sm:$0xff] %v3677_v13  ;;  %3680 = vst [vmem:[%s5668_s25 + $0x7c0] sm:$0xff] %v3679_v54 }
 0x264   : > { %3682 = vst [vmem:[%s5668_s25 + $0x7d0] sm:$0xff] %v3681_v55  ;;  %3684 = vst [vmem:[%s5668_s25 + $0x7e0] sm:$0xff] %v3683_v42 }
 0x265   : > { %3686 = vst [vmem:[%s5668_s25 + $0x7f0] sm:$0xff] %v3685_v31 }
 0x266 PF: > { %s14_s13 = sadd.s32 1, %s4048_s13   ;;  %s5986_s6 = smov %s4024_s7 }
 0x267   : > { %p11_p9 = scmp.ge.s32.totalorder %s14_s13, 6   ;;  %s5987_s7 = smov %s4028_s8 }
 0x268   : > { %s5988_s8 = smov %s4141_s26  ;;  %s5989_s9 = smov %s4040_s11 }
 0x269   : > { %s5990_s10 = smov %s4044_s12  ;;  %s5991_s11 = smov %s5994_s15 }
 0x26a   : > { %s5992_s12 = smov %s5998_s16  ;;  %13 = sbr.rel (!%p11_p9) target bundleno = 5 (0x5), region = 105 }
 0x271   :  { %3702 = vsyncpa [#allocation3], 1 }
 0x272   :  { %3704 = vsyncpa [#allocation3 + $0x1], 1 }

</bundles_post_ra>
